<compile_context>
chip_gen: v7x
topology: tpu7x:2x2x1
jax: 0.10.0
libtpu: 0.0.40
codegen_flags: <defaults>
</compile_context>

<pallas_src>
import functools

import jax
import jax.numpy as jnp
import numpy as np
from jax.experimental import pallas as pl
from jax.experimental.pallas import tpu as pltpu

# Keep the XLA-side reference math (QR, einsums) at full f32 accuracy so the
# tolerance below is meaningful.
jax.config.update("jax_default_matmul_precision", "highest")


def _grassmann_projector_kernel(x_ref, w_ref, el_ref, er_ref, o_ref):
    """One grid step: TILE_B samples x n_w FRMap weights -> flattened projectors.

    x_ref : (p*TILE_B, d_in)      row j*TILE_B + t = column j of tile sample t
    w_ref : (n_w, d_in, d_out)    stacked Stiefel weights (q / k / v)
    el_ref: (d_out, d_out*d_out)  (q @ el)[b, k*d_out + l] = q[b, k]
    er_ref: (d_out, d_out*d_out)  (q @ er)[b, k*d_out + l] = q[b, l]
    o_ref : (n_w, TILE_B, d_out*d_out)  row-major flattened Q @ Q^T
    """
    n_w, _, d_out = w_ref.shape
    tile_b = o_ref.shape[1]
    p = x_ref.shape[0] // tile_b

    e_left = el_ref[...]
    e_right = er_ref[...]
    x_all = x_ref[...]                                    # (p*TILE_B, d_in)

    for s in range(n_w):
        # FRMap for the whole step in a single MXU matmul:
        # row (j*TILE_B + t) of y_all is column j of Y_t = W^T X_t.
        y_all = jnp.dot(x_all, w_ref[s], preferred_element_type=jnp.float32)

        # Modified Gram-Schmidt over the p columns, vectorized over the batch
        # tile.  All state stays in vregs; slices are static and 8-aligned.
        q_cols = []
        for j in range(p):
            v = y_all[j * tile_b:(j + 1) * tile_b, :]     # (TILE_B, d_out)
            for qi in q_cols:
                coeff = jnp.sum(qi * v, axis=-1, keepdims=True)
                v = v - coeff * qi
            sq_norm = jnp.sum(v * v, axis=-1, keepdims=True)
            q_cols.append(v * jax.lax.rsqrt(sq_norm + 1e-12))

        # Projector Q Q^T, flattened lane-dense without in-kernel reshape:
        # outer(q, q)[k*d+l] = (q @ e_left) * (q @ e_right); sum over columns.
        q_all = jnp.concatenate(q_cols, axis=0)           # (p*TILE_B, d_out)
        prod = (
            jnp.dot(q_all, e_left, preferred_element_type=jnp.float32)
            * jnp.dot(q_all, e_right, preferred_element_type=jnp.float32)
        )                                                 # (p*TILE_B, d_out^2)
        proj = prod[0:tile_b, :]
        for j in range(1, p):
            proj = proj + prod[j * tile_b:(j + 1) * tile_b, :]
        o_ref[s] = proj


@functools.partial(jax.jit, static_argnames=("tile_b",))
def grassmann_projectors(x, weights, *, tile_b=8):
    """Batched FRMap -> QR -> Projmap.

    x:       (bs, m, d_in, p) float32
    weights: (n_w, d_in, d_out) float32 (orthonormal columns)
    returns: (n_w, bs, m, d_out, d_out), the projectors Q Q^T of qr(W^T x).Q.
    """
    bs, m, d_in, p = x.shape
    n_w, d_in_w, d_out = weights.shape
    assert d_in_w == d_in
    assert p <= d_out, "reduced QR assumes p <= d_out (full-column-rank projector)"

    b_total = bs * m
    nb = -(-b_total // tile_b)
    b_pad = nb * tile_b

    # Wrapper-side layout plumbing keeps transposes/reshapes out of the kernel:
    # x_tiled[blk, j*tile_b + t, :] = column j of sample (blk*tile_b + t).
    x_cols = jnp.transpose(
        x.reshape(b_total, d_in, p).astype(jnp.float32), (2, 0, 1)
    )                                                     # (p, B, d_in)
    if b_pad != b_total:
        x_cols = jnp.pad(x_cols, ((0, 0), (0, b_pad - b_total), (0, 0)))
    x_tiled = jnp.transpose(
        x_cols.reshape(p, nb, tile_b, d_in), (1, 0, 2, 3)
    ).reshape(nb, p * tile_b, d_in)

    # Constant expansion matrices used to flatten outer products q q^T inside
    # the kernel without any in-kernel reshape.
    eye = np.eye(d_out, dtype=np.float32)
    e_left = jnp.asarray(np.repeat(eye, d_out, axis=1))   # (d_out, d_out^2)
    e_right = jnp.asarray(np.tile(eye, (1, d_out)))       # (d_out, d_out^2)

    out_flat = pl.pallas_call(
        _grassmann_projector_kernel,
        out_shape=jax.ShapeDtypeStruct((n_w, b_pad, d_out * d_out), jnp.float32),
        grid_spec=pltpu.PrefetchScalarGridSpec(
            num_scalar_prefetch=0,
            grid=(nb,),
            in_specs=[
                pl.BlockSpec((None, p * tile_b, d_in), lambda b: (b, 0, 0)),
                pl.BlockSpec((n_w, d_in, d_out), lambda b: (0, 0, 0)),
                pl.BlockSpec((d_out, d_out * d_out), lambda b: (0, 0)),
                pl.BlockSpec((d_out, d_out * d_out), lambda b: (0, 0)),
            ],
            out_specs=pl.BlockSpec(
                (n_w, tile_b, d_out * d_out), lambda b: (0, b, 0)
            ),
        ),
        compiler_params=pltpu.CompilerParams(
            dimension_semantics=("parallel",),   # v7x: two TCs split the batch
        ),
    )(x_tiled, weights.astype(jnp.float32), e_left, e_right)

    return out_flat[:, :b_total, :].reshape(n_w, bs, m, d_out, d_out)


def attention_manifold_forward(x, w_q, w_k, w_v, *, tile_b=8):
    """JAX/Pallas port of AttentionManifold.forward for 4-D x (bs, m, d_in, p)."""
    x = x.astype(jnp.float32)
    bs, m, _, _ = x.shape
    projs = grassmann_projectors(x, jnp.stack([w_q, w_k, w_v]), tile_b=tile_b)
    p_q, p_k, p_v = projs[0], projs[1], projs[2]          # (bs, m, d_out, d_out)

    # TODO(synk): the (bs, m, m)-sized attention epilogue below stays in plain
    # JAX; it is far too small to benefit from a Pallas kernel.
    # projection_metric(Q_expand, K_expand) reduces to pairwise projector
    # differences: energy[b, i, j] = || D D^T ||_F with D = Pq[b, j] - Pk[b, i].
    diff = p_q[:, None, :, :, :] - p_k[:, :, None, :, :]  # (bs, m, m, d, d)
    inner = jnp.matmul(diff, jnp.swapaxes(diff, -1, -2))
    energy = jnp.sqrt(jnp.sum(inner * inner, axis=(-2, -1)))    # (bs, m, m)

    scores = 1.0 / (1.0 + jnp.log(1.0 + energy))
    atten_prob = jnp.transpose(jax.nn.softmax(scores, axis=-2), (0, 2, 1))

    # w_frechet_distance_mean overwrites output[b, i] inside its j-loop in the
    # original module, so only j = m-1 survives; reproduced faithfully.
    output = (
        atten_prob[:, :, m - 1][:, :, None, None] * p_v[:, m - 1][:, None, :, :]
    )
    shape = [bs, m, -1]
    return output, shape


def _torch_reference(x, w_q, w_k, w_v):
    """Pure-JAX transcription of the torch AttentionManifold.forward (QR-based)."""
    bs, m, d_in, p = x.shape
    d_out = w_q.shape[1]
    xf = x.reshape(bs * m, d_in, p).astype(jnp.float32)

    def frmap_qr(w):
        y = jnp.einsum("io,bip->bop", w, xf).reshape(bs, m, d_out, p)
        q, _ = jnp.linalg.qr(y)
        return q

    q_mat, k_mat, v_mat = frmap_qr(w_q), frmap_qr(w_k), frmap_qr(w_v)
    q_expand = jnp.tile(q_mat, (1, m, 1, 1))          # torch .repeat(1, m, 1, 1)
    k_expand = jnp.repeat(k_mat, m, axis=1)           # unsqueeze(2).repeat().view()

    def projection_metric(a, b):
        inner = jnp.matmul(a, jnp.swapaxes(a, -1, -2)) - jnp.matmul(
            b, jnp.swapaxes(b, -1, -2)
        )
        inner_multi = jnp.matmul(inner, jnp.swapaxes(inner, -1, -2))
        return jnp.sqrt(jnp.sum(inner_multi**2, axis=(-2, -1)))

    energy = projection_metric(q_expand, k_expand).reshape(bs, m, m)
    scores = 1.0 / (1.0 + jnp.log(1.0 + energy))
    atten_prob = jnp.transpose(jax.nn.softmax(scores, axis=-2), (0, 2, 1))
    v_proj = jnp.matmul(v_mat, jnp.swapaxes(v_mat, -1, -2))
    return (
        atten_prob[:, :, m - 1][:, :, None, None] * v_proj[:, m - 1][:, None, :, :]
    )


def orthogonal_init(key, d_in, d_out):
    """Deterministic stand-in for nn.init.orthogonal_ on a (d_in, d_out) weight."""
    a = jax.random.normal(key, (d_in, d_out), jnp.float32)
    q, r = jnp.linalg.qr(a)
    signs = jnp.where(jnp.diagonal(r) >= 0, 1.0, -1.0)
    return (q * signs[None, :]).astype(jnp.float32)


if __name__ == "__main__":
    key = jax.random.PRNGKey(0)
    kx, kq, kk, kv = jax.random.split(key, 4)

    bs, m, d_in, d_out, p = 2, 8, 32, 16, 8
    x = jax.random.normal(kx, (bs, m, d_in, p), jnp.float32)
    w_q = orthogonal_init(kq, d_in, d_out)
    w_k = orthogonal_init(kk, d_in, d_out)
    w_v = orthogonal_init(kv, d_in, d_out)

    out, out_shape_hint = attention_manifold_forward(x, w_q, w_k, w_v)
    jax.block_until_ready(out)

    # 1) Kernel projectors vs. QR-based projectors.
    projs = grassmann_projectors(x, jnp.stack([w_q, w_k, w_v]))
    xf = x.reshape(bs * m, d_in, p)
    for idx, w in enumerate((w_q, w_k, w_v)):
        y = jnp.einsum("io,bip->bop", w, xf)
        q_ref, _ = jnp.linalg.qr(y)
        proj_ref = jnp.einsum("bkp,blp->bkl", q_ref, q_ref).reshape(
            bs, m, d_out, d_out
        )
        assert jnp.allclose(projs[idx], proj_ref, atol=2e-3, rtol=2e-3)

    # 2) Full forward vs. a literal pure-JAX transcription of the torch code.
    ref = _torch_reference(x, w_q, w_k, w_v)
    assert out.shape == (bs, m, d_out, d_out)
    assert out_shape_hint == [bs, m, -1]
    assert jnp.allclose(out, ref, atol=2e-3, rtol=2e-3)

    print("KERNEL_OK")
</pallas_src>

<mosaic_0001>
module attributes {stable_mosaic.version = 11 : i64} {
  func.func @_grassmann_projector_kernel(%arg0: i32, %arg1: memref<1x64x32xf32, #tpu.memory_space<vmem>>, %arg2: memref<3x32x16xf32, #tpu.memory_space<vmem>>, %arg3: memref<16x256xf32, #tpu.memory_space<vmem>>, %arg4: memref<16x256xf32, #tpu.memory_space<vmem>>, %arg5: memref<3x8x256xf32, #tpu.memory_space<vmem>>) attributes {dimension_semantics = [#tpu.dimension_semantics<parallel>], iteration_bounds = array<i64: 2>, scalar_prefetch = 0 : i64, scratch_operands = 0 : i64, tpu.core_type = #tpu.core_type<tc>, window_params = [{transform_indices = @transform_0, window_bounds = array<i64: 1, 64, 32>}, {pipeline_mode = #tpu.pipeline_mode<synchronous>, transform_indices = @transform_1, window_bounds = array<i64: 3, 32, 16>}, {pipeline_mode = #tpu.pipeline_mode<synchronous>, transform_indices = @transform_2, window_bounds = array<i64: 16, 256>}, {pipeline_mode = #tpu.pipeline_mode<synchronous>, transform_indices = @transform_3, window_bounds = array<i64: 16, 256>}, {transform_indices = @transform_4, window_bounds = array<i64: 3, 8, 256>}]} {
    %c0 = arith.constant 0 : index
    %c0_0 = arith.constant 0 : index
    %0 = vector.load %arg3[%c0, %c0_0] : memref<16x256xf32, #tpu.memory_space<vmem>>, vector<16x256xf32>
    %c0_1 = arith.constant 0 : index
    %c0_2 = arith.constant 0 : index
    %1 = vector.load %arg4[%c0_1, %c0_2] : memref<16x256xf32, #tpu.memory_space<vmem>>, vector<16x256xf32>
    %c0_3 = arith.constant 0 : index
    %c0_4 = arith.constant 0 : index
    %c0_5 = arith.constant 0 : index
    %2 = vector.load %arg1[%c0_3, %c0_4, %c0_5] : memref<1x64x32xf32, #tpu.memory_space<vmem>>, vector<1x64x32xf32>
    %3 = vector.shape_cast %2 : vector<1x64x32xf32> to vector<64x32xf32>
    %c0_6 = arith.constant 0 : index
    %c0_7 = arith.constant 0 : index
    %c0_8 = arith.constant 0 : index
    %4 = vector.load %arg2[%c0_6, %c0_7, %c0_8] : memref<3x32x16xf32, #tpu.memory_space<vmem>>, vector<1x32x16xf32>
    %5 = vector.shape_cast %4 : vector<1x32x16xf32> to vector<32x16xf32>
    %cst = arith.constant dense<0.000000e+00> : vector<64x16xf32>
    %6 = tpu.matmul %3, %5, %cst {dimension_numbers = #tpu.dot_dimension_numbers<[1], [0], [0], [1], [0, 0, 1, 1], [], []>, precision = #tpu.contract_precision<fp32>} : vector<64x32xf32>, vector<32x16xf32>, vector<64x16xf32> -> vector<64x16xf32>
    %7 = vector.extract_strided_slice %6 {offsets = [0, 0], sizes = [8, 16], strides = [1, 1]} : vector<64x16xf32> to vector<8x16xf32>
    %8 = arith.mulf %7, %7 : vector<8x16xf32>
    %cst_9 = arith.constant dense<0.000000e+00> : vector<8xf32>
    %9 = vector.multi_reduction <add>, %8, %cst_9 [1] : vector<8x16xf32> to vector<8xf32>
    %10 = vector.shape_cast %9 : vector<8xf32> to vector<8x1xf32>
    %cst_10 = arith.constant 9.99999996E-13 : f32
    %11 = vector.broadcast %cst_10 : f32 to vector<8x1xf32>
    %12 = arith.addf %10, %11 : vector<8x1xf32>
    %13 = math.rsqrt %12 : vector<8x1xf32>
    %14 = vector.broadcast %13 : vector<8x1xf32> to vector<8x16xf32>
    %15 = arith.mulf %7, %14 : vector<8x16xf32>
    %16 = vector.extract_strided_slice %6 {offsets = [8, 0], sizes = [8, 16], strides = [1, 1]} : vector<64x16xf32> to vector<8x16xf32>
    %17 = arith.mulf %15, %16 : vector<8x16xf32>
    %cst_11 = arith.constant dense<0.000000e+00> : vector<8xf32>
    %18 = vector.multi_reduction <add>, %17, %cst_11 [1] : vector<8x16xf32> to vector<8xf32>
    %19 = vector.shape_cast %18 : vector<8xf32> to vector<8x1xf32>
    %20 = vector.broadcast %19 : vector<8x1xf32> to vector<8x16xf32>
    %21 = arith.mulf %20, %15 : vector<8x16xf32>
    %22 = arith.subf %16, %21 : vector<8x16xf32>
    %23 = arith.mulf %22, %22 : vector<8x16xf32>
    %cst_12 = arith.constant dense<0.000000e+00> : vector<8xf32>
    %24 = vector.multi_reduction <add>, %23, %cst_12 [1] : vector<8x16xf32> to vector<8xf32>
    %25 = vector.shape_cast %24 : vector<8xf32> to vector<8x1xf32>
    %cst_13 = arith.constant 9.99999996E-13 : f32
    %26 = vector.broadcast %cst_13 : f32 to vector<8x1xf32>
    %27 = arith.addf %25, %26 : vector<8x1xf32>
    %28 = math.rsqrt %27 : vector<8x1xf32>
    %29 = vector.broadcast %28 : vector<8x1xf32> to vector<8x16xf32>
    %30 = arith.mulf %22, %29 : vector<8x16xf32>
    %31 = vector.extract_strided_slice %6 {offsets = [16, 0], sizes = [8, 16], strides = [1, 1]} : vector<64x16xf32> to vector<8x16xf32>
    %32 = arith.mulf %15, %31 : vector<8x16xf32>
    %cst_14 = arith.constant dense<0.000000e+00> : vector<8xf32>
    %33 = vector.multi_reduction <add>, %32, %cst_14 [1] : vector<8x16xf32> to vector<8xf32>
    %34 = vector.shape_cast %33 : vector<8xf32> to vector<8x1xf32>
    %35 = vector.broadcast %34 : vector<8x1xf32> to vector<8x16xf32>
    %36 = arith.mulf %35, %15 : vector<8x16xf32>
    %37 = arith.subf %31, %36 : vector<8x16xf32>
    %38 = arith.mulf %30, %37 : vector<8x16xf32>
    %cst_15 = arith.constant dense<0.000000e+00> : vector<8xf32>
    %39 = vector.multi_reduction <add>, %38, %cst_15 [1] : vector<8x16xf32> to vector<8xf32>
    %40 = vector.shape_cast %39 : vector<8xf32> to vector<8x1xf32>
    %41 = vector.broadcast %40 : vector<8x1xf32> to vector<8x16xf32>
    %42 = arith.mulf %41, %30 : vector<8x16xf32>
    %43 = arith.subf %37, %42 : vector<8x16xf32>
    %44 = arith.mulf %43, %43 : vector<8x16xf32>
    %cst_16 = arith.constant dense<0.000000e+00> : vector<8xf32>
    %45 = vector.multi_reduction <add>, %44, %cst_16 [1] : vector<8x16xf32> to vector<8xf32>
    %46 = vector.shape_cast %45 : vector<8xf32> to vector<8x1xf32>
    %cst_17 = arith.constant 9.99999996E-13 : f32
    %47 = vector.broadcast %cst_17 : f32 to vector<8x1xf32>
    %48 = arith.addf %46, %47 : vector<8x1xf32>
    %49 = math.rsqrt %48 : vector<8x1xf32>
    %50 = vector.broadcast %49 : vector<8x1xf32> to vector<8x16xf32>
    %51 = arith.mulf %43, %50 : vector<8x16xf32>
    %52 = vector.extract_strided_slice %6 {offsets = [24, 0], sizes = [8, 16], strides = [1, 1]} : vector<64x16xf32> to vector<8x16xf32>
    %53 = arith.mulf %15, %52 : vector<8x16xf32>
    %cst_18 = arith.constant dense<0.000000e+00> : vector<8xf32>
    %54 = vector.multi_reduction <add>, %53, %cst_18 [1] : vector<8x16xf32> to vector<8xf32>
    %55 = vector.shape_cast %54 : vector<8xf32> to vector<8x1xf32>
    %56 = vector.broadcast %55 : vector<8x1xf32> to vector<8x16xf32>
    %57 = arith.mulf %56, %15 : vector<8x16xf32>
    %58 = arith.subf %52, %57 : vector<8x16xf32>
    %59 = arith.mulf %30, %58 : vector<8x16xf32>
    %cst_19 = arith.constant dense<0.000000e+00> : vector<8xf32>
    %60 = vector.multi_reduction <add>, %59, %cst_19 [1] : vector<8x16xf32> to vector<8xf32>
    %61 = vector.shape_cast %60 : vector<8xf32> to vector<8x1xf32>
    %62 = vector.broadcast %61 : vector<8x1xf32> to vector<8x16xf32>
    %63 = arith.mulf %62, %30 : vector<8x16xf32>
    %64 = arith.subf %58, %63 : vector<8x16xf32>
    %65 = arith.mulf %51, %64 : vector<8x16xf32>
    %cst_20 = arith.constant dense<0.000000e+00> : vector<8xf32>
    %66 = vector.multi_reduction <add>, %65, %cst_20 [1] : vector<8x16xf32> to vector<8xf32>
    %67 = vector.shape_cast %66 : vector<8xf32> to vector<8x1xf32>
    %68 = vector.broadcast %67 : vector<8x1xf32> to vector<8x16xf32>
    %69 = arith.mulf %68, %51 : vector<8x16xf32>
    %70 = arith.subf %64, %69 : vector<8x16xf32>
    %71 = arith.mulf %70, %70 : vector<8x16xf32>
    %cst_21 = arith.constant dense<0.000000e+00> : vector<8xf32>
    %72 = vector.multi_reduction <add>, %71, %cst_21 [1] : vector<8x16xf32> to vector<8xf32>
    %73 = vector.shape_cast %72 : vector<8xf32> to vector<8x1xf32>
    %cst_22 = arith.constant 9.99999996E-13 : f32
    %74 = vector.broadcast %cst_22 : f32 to vector<8x1xf32>
    %75 = arith.addf %73, %74 : vector<8x1xf32>
    %76 = math.rsqrt %75 : vector<8x1xf32>
    %77 = vector.broadcast %76 : vector<8x1xf32> to vector<8x16xf32>
    %78 = arith.mulf %70, %77 : vector<8x16xf32>
    %79 = vector.extract_strided_slice %6 {offsets = [32, 0], sizes = [8, 16], strides = [1, 1]} : vector<64x16xf32> to vector<8x16xf32>
    %80 = arith.mulf %15, %79 : vector<8x16xf32>
    %cst_23 = arith.constant dense<0.000000e+00> : vector<8xf32>
    %81 = vector.multi_reduction <add>, %80, %cst_23 [1] : vector<8x16xf32> to vector<8xf32>
    %82 = vector.shape_cast %81 : vector<8xf32> to vector<8x1xf32>
    %83 = vector.broadcast %82 : vector<8x1xf32> to vector<8x16xf32>
    %84 = arith.mulf %83, %15 : vector<8x16xf32>
    %85 = arith.subf %79, %84 : vector<8x16xf32>
    %86 = arith.mulf %30, %85 : vector<8x16xf32>
    %cst_24 = arith.constant dense<0.000000e+00> : vector<8xf32>
    %87 = vector.multi_reduction <add>, %86, %cst_24 [1] : vector<8x16xf32> to vector<8xf32>
    %88 = vector.shape_cast %87 : vector<8xf32> to vector<8x1xf32>
    %89 = vector.broadcast %88 : vector<8x1xf32> to vector<8x16xf32>
    %90 = arith.mulf %89, %30 : vector<8x16xf32>
    %91 = arith.subf %85, %90 : vector<8x16xf32>
    %92 = arith.mulf %51, %91 : vector<8x16xf32>
    %cst_25 = arith.constant dense<0.000000e+00> : vector<8xf32>
    %93 = vector.multi_reduction <add>, %92, %cst_25 [1] : vector<8x16xf32> to vector<8xf32>
    %94 = vector.shape_cast %93 : vector<8xf32> to vector<8x1xf32>
    %95 = vector.broadcast %94 : vector<8x1xf32> to vector<8x16xf32>
    %96 = arith.mulf %95, %51 : vector<8x16xf32>
    %97 = arith.subf %91, %96 : vector<8x16xf32>
    %98 = arith.mulf %78, %97 : vector<8x16xf32>
    %cst_26 = arith.constant dense<0.000000e+00> : vector<8xf32>
    %99 = vector.multi_reduction <add>, %98, %cst_26 [1] : vector<8x16xf32> to vector<8xf32>
    %100 = vector.shape_cast %99 : vector<8xf32> to vector<8x1xf32>
    %101 = vector.broadcast %100 : vector<8x1xf32> to vector<8x16xf32>
    %102 = arith.mulf %101, %78 : vector<8x16xf32>
    %103 = arith.subf %97, %102 : vector<8x16xf32>
    %104 = arith.mulf %103, %103 : vector<8x16xf32>
    %cst_27 = arith.constant dense<0.000000e+00> : vector<8xf32>
    %105 = vector.multi_reduction <add>, %104, %cst_27 [1] : vector<8x16xf32> to vector<8xf32>
    %106 = vector.shape_cast %105 : vector<8xf32> to vector<8x1xf32>
    %cst_28 = arith.constant 9.99999996E-13 : f32
    %107 = vector.broadcast %cst_28 : f32 to vector<8x1xf32>
    %108 = arith.addf %106, %107 : vector<8x1xf32>
    %109 = math.rsqrt %108 : vector<8x1xf32>
    %110 = vector.broadcast %109 : vector<8x1xf32> to vector<8x16xf32>
    %111 = arith.mulf %103, %110 : vector<8x16xf32>
    %112 = vector.extract_strided_slice %6 {offsets = [40, 0], sizes = [8, 16], strides = [1, 1]} : vector<64x16xf32> to vector<8x16xf32>
    %113 = arith.mulf %15, %112 : vector<8x16xf32>
    %cst_29 = arith.constant dense<0.000000e+00> : vector<8xf32>
    %114 = vector.multi_reduction <add>, %113, %cst_29 [1] : vector<8x16xf32> to vector<8xf32>
    %115 = vector.shape_cast %114 : vector<8xf32> to vector<8x1xf32>
    %116 = vector.broadcast %115 : vector<8x1xf32> to vector<8x16xf32>
    %117 = arith.mulf %116, %15 : vector<8x16xf32>
    %118 = arith.subf %112, %117 : vector<8x16xf32>
    %119 = arith.mulf %30, %118 : vector<8x16xf32>
    %cst_30 = arith.constant dense<0.000000e+00> : vector<8xf32>
    %120 = vector.multi_reduction <add>, %119, %cst_30 [1] : vector<8x16xf32> to vector<8xf32>
    %121 = vector.shape_cast %120 : vector<8xf32> to vector<8x1xf32>
    %122 = vector.broadcast %121 : vector<8x1xf32> to vector<8x16xf32>
    %123 = arith.mulf %122, %30 : vector<8x16xf32>
    %124 = arith.subf %118, %123 : vector<8x16xf32>
    %125 = arith.mulf %51, %124 : vector<8x16xf32>
    %cst_31 = arith.constant dense<0.000000e+00> : vector<8xf32>
    %126 = vector.multi_reduction <add>, %125, %cst_31 [1] : vector<8x16xf32> to vector<8xf32>
    %127 = vector.shape_cast %126 : vector<8xf32> to vector<8x1xf32>
    %128 = vector.broadcast %127 : vector<8x1xf32> to vector<8x16xf32>
    %129 = arith.mulf %128, %51 : vector<8x16xf32>
    %130 = arith.subf %124, %129 : vector<8x16xf32>
    %131 = arith.mulf %78, %130 : vector<8x16xf32>
    %cst_32 = arith.constant dense<0.000000e+00> : vector<8xf32>
    %132 = vector.multi_reduction <add>, %131, %cst_32 [1] : vector<8x16xf32> to vector<8xf32>
    %133 = vector.shape_cast %132 : vector<8xf32> to vector<8x1xf32>
    %134 = vector.broadcast %133 : vector<8x1xf32> to vector<8x16xf32>
    %135 = arith.mulf %134, %78 : vector<8x16xf32>
    %136 = arith.subf %130, %135 : vector<8x16xf32>
    %137 = arith.mulf %111, %136 : vector<8x16xf32>
    %cst_33 = arith.constant dense<0.000000e+00> : vector<8xf32>
    %138 = vector.multi_reduction <add>, %137, %cst_33 [1] : vector<8x16xf32> to vector<8xf32>
    %139 = vector.shape_cast %138 : vector<8xf32> to vector<8x1xf32>
    %140 = vector.broadcast %139 : vector<8x1xf32> to vector<8x16xf32>
    %141 = arith.mulf %140, %111 : vector<8x16xf32>
    %142 = arith.subf %136, %141 : vector<8x16xf32>
    %143 = arith.mulf %142, %142 : vector<8x16xf32>
    %cst_34 = arith.constant dense<0.000000e+00> : vector<8xf32>
    %144 = vector.multi_reduction <add>, %143, %cst_34 [1] : vector<8x16xf32> to vector<8xf32>
    %145 = vector.shape_cast %144 : vector<8xf32> to vector<8x1xf32>
    %cst_35 = arith.constant 9.99999996E-13 : f32
    %146 = vector.broadcast %cst_35 : f32 to vector<8x1xf32>
    %147 = arith.addf %145, %146 : vector<8x1xf32>
    %148 = math.rsqrt %147 : vector<8x1xf32>
    %149 = vector.broadcast %148 : vector<8x1xf32> to vector<8x16xf32>
    %150 = arith.mulf %142, %149 : vector<8x16xf32>
    %151 = vector.extract_strided_slice %6 {offsets = [48, 0], sizes = [8, 16], strides = [1, 1]} : vector<64x16xf32> to vector<8x16xf32>
    %152 = arith.mulf %15, %151 : vector<8x16xf32>
    %cst_36 = arith.constant dense<0.000000e+00> : vector<8xf32>
    %153 = vector.multi_reduction <add>, %152, %cst_36 [1] : vector<8x16xf32> to vector<8xf32>
    %154 = vector.shape_cast %153 : vector<8xf32> to vector<8x1xf32>
    %155 = vector.broadcast %154 : vector<8x1xf32> to vector<8x16xf32>
    %156 = arith.mulf %155, %15 : vector<8x16xf32>
    %157 = arith.subf %151, %156 : vector<8x16xf32>
    %158 = arith.mulf %30, %157 : vector<8x16xf32>
    %cst_37 = arith.constant dense<0.000000e+00> : vector<8xf32>
    %159 = vector.multi_reduction <add>, %158, %cst_37 [1] : vector<8x16xf32> to vector<8xf32>
    %160 = vector.shape_cast %159 : vector<8xf32> to vector<8x1xf32>
    %161 = vector.broadcast %160 : vector<8x1xf32> to vector<8x16xf32>
    %162 = arith.mulf %161, %30 : vector<8x16xf32>
    %163 = arith.subf %157, %162 : vector<8x16xf32>
    %164 = arith.mulf %51, %163 : vector<8x16xf32>
    %cst_38 = arith.constant dense<0.000000e+00> : vector<8xf32>
    %165 = vector.multi_reduction <add>, %164, %cst_38 [1] : vector<8x16xf32> to vector<8xf32>
    %166 = vector.shape_cast %165 : vector<8xf32> to vector<8x1xf32>
    %167 = vector.broadcast %166 : vector<8x1xf32> to vector<8x16xf32>
    %168 = arith.mulf %167, %51 : vector<8x16xf32>
    %169 = arith.subf %163, %168 : vector<8x16xf32>
    %170 = arith.mulf %78, %169 : vector<8x16xf32>
    %cst_39 = arith.constant dense<0.000000e+00> : vector<8xf32>
    %171 = vector.multi_reduction <add>, %170, %cst_39 [1] : vector<8x16xf32> to vector<8xf32>
    %172 = vector.shape_cast %171 : vector<8xf32> to vector<8x1xf32>
    %173 = vector.broadcast %172 : vector<8x1xf32> to vector<8x16xf32>
    %174 = arith.mulf %173, %78 : vector<8x16xf32>
    %175 = arith.subf %169, %174 : vector<8x16xf32>
    %176 = arith.mulf %111, %175 : vector<8x16xf32>
    %cst_40 = arith.constant dense<0.000000e+00> : vector<8xf32>
    %177 = vector.multi_reduction <add>, %176, %cst_40 [1] : vector<8x16xf32> to vector<8xf32>
    %178 = vector.shape_cast %177 : vector<8xf32> to vector<8x1xf32>
    %179 = vector.broadcast %178 : vector<8x1xf32> to vector<8x16xf32>
    %180 = arith.mulf %179, %111 : vector<8x16xf32>
    %181 = arith.subf %175, %180 : vector<8x16xf32>
    %182 = arith.mulf %150, %181 : vector<8x16xf32>
    %cst_41 = arith.constant dense<0.000000e+00> : vector<8xf32>
    %183 = vector.multi_reduction <add>, %182, %cst_41 [1] : vector<8x16xf32> to vector<8xf32>
    %184 = vector.shape_cast %183 : vector<8xf32> to vector<8x1xf32>
    %185 = vector.broadcast %184 : vector<8x1xf32> to vector<8x16xf32>
    %186 = arith.mulf %185, %150 : vector<8x16xf32>
    %187 = arith.subf %181, %186 : vector<8x16xf32>
    %188 = arith.mulf %187, %187 : vector<8x16xf32>
    %cst_42 = arith.constant dense<0.000000e+00> : vector<8xf32>
    %189 = vector.multi_reduction <add>, %188, %cst_42 [1] : vector<8x16xf32> to vector<8xf32>
    %190 = vector.shape_cast %189 : vector<8xf32> to vector<8x1xf32>
    %cst_43 = arith.constant 9.99999996E-13 : f32
    %191 = vector.broadcast %cst_43 : f32 to vector<8x1xf32>
    %192 = arith.addf %190, %191 : vector<8x1xf32>
    %193 = math.rsqrt %192 : vector<8x1xf32>
    %194 = vector.broadcast %193 : vector<8x1xf32> to vector<8x16xf32>
    %195 = arith.mulf %187, %194 : vector<8x16xf32>
    %196 = vector.extract_strided_slice %6 {offsets = [56, 0], sizes = [8, 16], strides = [1, 1]} : vector<64x16xf32> to vector<8x16xf32>
    %197 = arith.mulf %15, %196 : vector<8x16xf32>
    %cst_44 = arith.constant dense<0.000000e+00> : vector<8xf32>
    %198 = vector.multi_reduction <add>, %197, %cst_44 [1] : vector<8x16xf32> to vector<8xf32>
    %199 = vector.shape_cast %198 : vector<8xf32> to vector<8x1xf32>
    %200 = vector.broadcast %199 : vector<8x1xf32> to vector<8x16xf32>
    %201 = arith.mulf %200, %15 : vector<8x16xf32>
    %202 = arith.subf %196, %201 : vector<8x16xf32>
    %203 = arith.mulf %30, %202 : vector<8x16xf32>
    %cst_45 = arith.constant dense<0.000000e+00> : vector<8xf32>
    %204 = vector.multi_reduction <add>, %203, %cst_45 [1] : vector<8x16xf32> to vector<8xf32>
    %205 = vector.shape_cast %204 : vector<8xf32> to vector<8x1xf32>
    %206 = vector.broadcast %205 : vector<8x1xf32> to vector<8x16xf32>
    %207 = arith.mulf %206, %30 : vector<8x16xf32>
    %208 = arith.subf %202, %207 : vector<8x16xf32>
    %209 = arith.mulf %51, %208 : vector<8x16xf32>
    %cst_46 = arith.constant dense<0.000000e+00> : vector<8xf32>
    %210 = vector.multi_reduction <add>, %209, %cst_46 [1] : vector<8x16xf32> to vector<8xf32>
    %211 = vector.shape_cast %210 : vector<8xf32> to vector<8x1xf32>
    %212 = vector.broadcast %211 : vector<8x1xf32> to vector<8x16xf32>
    %213 = arith.mulf %212, %51 : vector<8x16xf32>
    %214 = arith.subf %208, %213 : vector<8x16xf32>
    %215 = arith.mulf %78, %214 : vector<8x16xf32>
    %cst_47 = arith.constant dense<0.000000e+00> : vector<8xf32>
    %216 = vector.multi_reduction <add>, %215, %cst_47 [1] : vector<8x16xf32> to vector<8xf32>
    %217 = vector.shape_cast %216 : vector<8xf32> to vector<8x1xf32>
    %218 = vector.broadcast %217 : vector<8x1xf32> to vector<8x16xf32>
    %219 = arith.mulf %218, %78 : vector<8x16xf32>
    %220 = arith.subf %214, %219 : vector<8x16xf32>
    %221 = arith.mulf %111, %220 : vector<8x16xf32>
    %cst_48 = arith.constant dense<0.000000e+00> : vector<8xf32>
    %222 = vector.multi_reduction <add>, %221, %cst_48 [1] : vector<8x16xf32> to vector<8xf32>
    %223 = vector.shape_cast %222 : vector<8xf32> to vector<8x1xf32>
    %224 = vector.broadcast %223 : vector<8x1xf32> to vector<8x16xf32>
    %225 = arith.mulf %224, %111 : vector<8x16xf32>
    %226 = arith.subf %220, %225 : vector<8x16xf32>
    %227 = arith.mulf %150, %226 : vector<8x16xf32>
    %cst_49 = arith.constant dense<0.000000e+00> : vector<8xf32>
    %228 = vector.multi_reduction <add>, %227, %cst_49 [1] : vector<8x16xf32> to vector<8xf32>
    %229 = vector.shape_cast %228 : vector<8xf32> to vector<8x1xf32>
    %230 = vector.broadcast %229 : vector<8x1xf32> to vector<8x16xf32>
    %231 = arith.mulf %230, %150 : vector<8x16xf32>
    %232 = arith.subf %226, %231 : vector<8x16xf32>
    %233 = arith.mulf %195, %232 : vector<8x16xf32>
    %cst_50 = arith.constant dense<0.000000e+00> : vector<8xf32>
    %234 = vector.multi_reduction <add>, %233, %cst_50 [1] : vector<8x16xf32> to vector<8xf32>
    %235 = vector.shape_cast %234 : vector<8xf32> to vector<8x1xf32>
    %236 = vector.broadcast %235 : vector<8x1xf32> to vector<8x16xf32>
    %237 = arith.mulf %236, %195 : vector<8x16xf32>
    %238 = arith.subf %232, %237 : vector<8x16xf32>
    %239 = arith.mulf %238, %238 : vector<8x16xf32>
    %cst_51 = arith.constant dense<0.000000e+00> : vector<8xf32>
    %240 = vector.multi_reduction <add>, %239, %cst_51 [1] : vector<8x16xf32> to vector<8xf32>
    %241 = vector.shape_cast %240 : vector<8xf32> to vector<8x1xf32>
    %cst_52 = arith.constant 9.99999996E-13 : f32
    %242 = vector.broadcast %cst_52 : f32 to vector<8x1xf32>
    %243 = arith.addf %241, %242 : vector<8x1xf32>
    %244 = math.rsqrt %243 : vector<8x1xf32>
    %245 = vector.broadcast %244 : vector<8x1xf32> to vector<8x16xf32>
    %246 = arith.mulf %238, %245 : vector<8x16xf32>
    %247 = tpu.concatenate %15, %30, %51, %78, %111, %150, %195, %246 in 0 : vector<8x16xf32>, vector<8x16xf32>, vector<8x16xf32>, vector<8x16xf32>, vector<8x16xf32>, vector<8x16xf32>, vector<8x16xf32>, vector<8x16xf32> -> vector<64x16xf32>
    %cst_53 = arith.constant dense<0.000000e+00> : vector<64x256xf32>
    %248 = tpu.matmul %247, %0, %cst_53 {dimension_numbers = #tpu.dot_dimension_numbers<[1], [0], [0], [1], [0, 0, 1, 1], [], []>, precision = #tpu.contract_precision<fp32>} : vector<64x16xf32>, vector<16x256xf32>, vector<64x256xf32> -> vector<64x256xf32>
    %cst_54 = arith.constant dense<0.000000e+00> : vector<64x256xf32>
    %249 = tpu.matmul %247, %1, %cst_54 {dimension_numbers = #tpu.dot_dimension_numbers<[1], [0], [0], [1], [0, 0, 1, 1], [], []>, precision = #tpu.contract_precision<fp32>} : vector<64x16xf32>, vector<16x256xf32>, vector<64x256xf32> -> vector<64x256xf32>
    %250 = arith.mulf %248, %249 : vector<64x256xf32>
    %251 = vector.extract_strided_slice %250 {offsets = [0, 0], sizes = [8, 256], strides = [1, 1]} : vector<64x256xf32> to vector<8x256xf32>
    %252 = vector.extract_strided_slice %250 {offsets = [8, 0], sizes = [8, 256], strides = [1, 1]} : vector<64x256xf32> to vector<8x256xf32>
    %253 = arith.addf %251, %252 : vector<8x256xf32>
    %254 = vector.extract_strided_slice %250 {offsets = [16, 0], sizes = [8, 256], strides = [1, 1]} : vector<64x256xf32> to vector<8x256xf32>
    %255 = arith.addf %253, %254 : vector<8x256xf32>
    %256 = vector.extract_strided_slice %250 {offsets = [24, 0], sizes = [8, 256], strides = [1, 1]} : vector<64x256xf32> to vector<8x256xf32>
    %257 = arith.addf %255, %256 : vector<8x256xf32>
    %258 = vector.extract_strided_slice %250 {offsets = [32, 0], sizes = [8, 256], strides = [1, 1]} : vector<64x256xf32> to vector<8x256xf32>
    %259 = arith.addf %257, %258 : vector<8x256xf32>
    %260 = vector.extract_strided_slice %250 {offsets = [40, 0], sizes = [8, 256], strides = [1, 1]} : vector<64x256xf32> to vector<8x256xf32>
    %261 = arith.addf %259, %260 : vector<8x256xf32>
    %262 = vector.extract_strided_slice %250 {offsets = [48, 0], sizes = [8, 256], strides = [1, 1]} : vector<64x256xf32> to vector<8x256xf32>
    %263 = arith.addf %261, %262 : vector<8x256xf32>
    %264 = vector.extract_strided_slice %250 {offsets = [56, 0], sizes = [8, 256], strides = [1, 1]} : vector<64x256xf32> to vector<8x256xf32>
    %265 = arith.addf %263, %264 : vector<8x256xf32>
    %c0_55 = arith.constant 0 : index
    %c0_56 = arith.constant 0 : index
    %c0_57 = arith.constant 0 : index
    %266 = vector.load %arg5[%c0_55, %c0_56, %c0_57] : memref<3x8x256xf32, #tpu.memory_space<vmem>>, vector<1x8x256xf32>
    %267 = vector.shape_cast %266 : vector<1x8x256xf32> to vector<8x256xf32>
    %268 = vector.shape_cast %265 : vector<8x256xf32> to vector<1x8x256xf32>
    tpu.vector_store %arg5[%c0_55, %c0_56, %c0_57], %268 {strides = array<i32>} : memref<3x8x256xf32, #tpu.memory_space<vmem>>, vector<1x8x256xf32>,
    %c1 = arith.constant 1 : index
    %c0_58 = arith.constant 0 : index
    %c0_59 = arith.constant 0 : index
    %269 = vector.load %arg2[%c1, %c0_58, %c0_59] : memref<3x32x16xf32, #tpu.memory_space<vmem>>, vector<1x32x16xf32>
    %270 = vector.shape_cast %269 : vector<1x32x16xf32> to vector<32x16xf32>
    %cst_60 = arith.constant dense<0.000000e+00> : vector<64x16xf32>
    %271 = tpu.matmul %3, %270, %cst_60 {dimension_numbers = #tpu.dot_dimension_numbers<[1], [0], [0], [1], [0, 0, 1, 1], [], []>, precision = #tpu.contract_precision<fp32>} : vector<64x32xf32>, vector<32x16xf32>, vector<64x16xf32> -> vector<64x16xf32>
    %272 = vector.extract_strided_slice %271 {offsets = [0, 0], sizes = [8, 16], strides = [1, 1]} : vector<64x16xf32> to vector<8x16xf32>
    %273 = arith.mulf %272, %272 : vector<8x16xf32>
    %cst_61 = arith.constant dense<0.000000e+00> : vector<8xf32>
    %274 = vector.multi_reduction <add>, %273, %cst_61 [1] : vector<8x16xf32> to vector<8xf32>
    %275 = vector.shape_cast %274 : vector<8xf32> to vector<8x1xf32>
    %cst_62 = arith.constant 9.99999996E-13 : f32
    %276 = vector.broadcast %cst_62 : f32 to vector<8x1xf32>
    %277 = arith.addf %275, %276 : vector<8x1xf32>
    %278 = math.rsqrt %277 : vector<8x1xf32>
    %279 = vector.broadcast %278 : vector<8x1xf32> to vector<8x16xf32>
    %280 = arith.mulf %272, %279 : vector<8x16xf32>
    %281 = vector.extract_strided_slice %271 {offsets = [8, 0], sizes = [8, 16], strides = [1, 1]} : vector<64x16xf32> to vector<8x16xf32>
    %282 = arith.mulf %280, %281 : vector<8x16xf32>
    %cst_63 = arith.constant dense<0.000000e+00> : vector<8xf32>
    %283 = vector.multi_reduction <add>, %282, %cst_63 [1] : vector<8x16xf32> to vector<8xf32>
    %284 = vector.shape_cast %283 : vector<8xf32> to vector<8x1xf32>
    %285 = vector.broadcast %284 : vector<8x1xf32> to vector<8x16xf32>
    %286 = arith.mulf %285, %280 : vector<8x16xf32>
    %287 = arith.subf %281, %286 : vector<8x16xf32>
    %288 = arith.mulf %287, %287 : vector<8x16xf32>
    %cst_64 = arith.constant dense<0.000000e+00> : vector<8xf32>
    %289 = vector.multi_reduction <add>, %288, %cst_64 [1] : vector<8x16xf32> to vector<8xf32>
    %290 = vector.shape_cast %289 : vector<8xf32> to vector<8x1xf32>
    %cst_65 = arith.constant 9.99999996E-13 : f32
    %291 = vector.broadcast %cst_65 : f32 to vector<8x1xf32>
    %292 = arith.addf %290, %291 : vector<8x1xf32>
    %293 = math.rsqrt %292 : vector<8x1xf32>
    %294 = vector.broadcast %293 : vector<8x1xf32> to vector<8x16xf32>
    %295 = arith.mulf %287, %294 : vector<8x16xf32>
    %296 = vector.extract_strided_slice %271 {offsets = [16, 0], sizes = [8, 16], strides = [1, 1]} : vector<64x16xf32> to vector<8x16xf32>
    %297 = arith.mulf %280, %296 : vector<8x16xf32>
    %cst_66 = arith.constant dense<0.000000e+00> : vector<8xf32>
    %298 = vector.multi_reduction <add>, %297, %cst_66 [1] : vector<8x16xf32> to vector<8xf32>
    %299 = vector.shape_cast %298 : vector<8xf32> to vector<8x1xf32>
    %300 = vector.broadcast %299 : vector<8x1xf32> to vector<8x16xf32>
    %301 = arith.mulf %300, %280 : vector<8x16xf32>
    %302 = arith.subf %296, %301 : vector<8x16xf32>
    %303 = arith.mulf %295, %302 : vector<8x16xf32>
    %cst_67 = arith.constant dense<0.000000e+00> : vector<8xf32>
    %304 = vector.multi_reduction <add>, %303, %cst_67 [1] : vector<8x16xf32> to vector<8xf32>
    %305 = vector.shape_cast %304 : vector<8xf32> to vector<8x1xf32>
    %306 = vector.broadcast %305 : vector<8x1xf32> to vector<8x16xf32>
    %307 = arith.mulf %306, %295 : vector<8x16xf32>
    %308 = arith.subf %302, %307 : vector<8x16xf32>
    %309 = arith.mulf %308, %308 : vector<8x16xf32>
    %cst_68 = arith.constant dense<0.000000e+00> : vector<8xf32>
    %310 = vector.multi_reduction <add>, %309, %cst_68 [1] : vector<8x16xf32> to vector<8xf32>
    %311 = vector.shape_cast %310 : vector<8xf32> to vector<8x1xf32>
    %cst_69 = arith.constant 9.99999996E-13 : f32
    %312 = vector.broadcast %cst_69 : f32 to vector<8x1xf32>
    %313 = arith.addf %311, %312 : vector<8x1xf32>
    %314 = math.rsqrt %313 : vector<8x1xf32>
    %315 = vector.broadcast %314 : vector<8x1xf32> to vector<8x16xf32>
    %316 = arith.mulf %308, %315 : vector<8x16xf32>
    %317 = vector.extract_strided_slice %271 {offsets = [24, 0], sizes = [8, 16], strides = [1, 1]} : vector<64x16xf32> to vector<8x16xf32>
    %318 = arith.mulf %280, %317 : vector<8x16xf32>
    %cst_70 = arith.constant dense<0.000000e+00> : vector<8xf32>
    %319 = vector.multi_reduction <add>, %318, %cst_70 [1] : vector<8x16xf32> to vector<8xf32>
    %320 = vector.shape_cast %319 : vector<8xf32> to vector<8x1xf32>
    %321 = vector.broadcast %320 : vector<8x1xf32> to vector<8x16xf32>
    %322 = arith.mulf %321, %280 : vector<8x16xf32>
    %323 = arith.subf %317, %322 : vector<8x16xf32>
    %324 = arith.mulf %295, %323 : vector<8x16xf32>
    %cst_71 = arith.constant dense<0.000000e+00> : vector<8xf32>
    %325 = vector.multi_reduction <add>, %324, %cst_71 [1] : vector<8x16xf32> to vector<8xf32>
    %326 = vector.shape_cast %325 : vector<8xf32> to vector<8x1xf32>
    %327 = vector.broadcast %326 : vector<8x1xf32> to vector<8x16xf32>
    %328 = arith.mulf %327, %295 : vector<8x16xf32>
    %329 = arith.subf %323, %328 : vector<8x16xf32>
    %330 = arith.mulf %316, %329 : vector<8x16xf32>
    %cst_72 = arith.constant dense<0.000000e+00> : vector<8xf32>
    %331 = vector.multi_reduction <add>, %330, %cst_72 [1] : vector<8x16xf32> to vector<8xf32>
    %332 = vector.shape_cast %331 : vector<8xf32> to vector<8x1xf32>
    %333 = vector.broadcast %332 : vector<8x1xf32> to vector<8x16xf32>
    %334 = arith.mulf %333, %316 : vector<8x16xf32>
    %335 = arith.subf %329, %334 : vector<8x16xf32>
    %336 = arith.mulf %335, %335 : vector<8x16xf32>
    %cst_73 = arith.constant dense<0.000000e+00> : vector<8xf32>
    %337 = vector.multi_reduction <add>, %336, %cst_73 [1] : vector<8x16xf32> to vector<8xf32>
    %338 = vector.shape_cast %337 : vector<8xf32> to vector<8x1xf32>
    %cst_74 = arith.constant 9.99999996E-13 : f32
    %339 = vector.broadcast %cst_74 : f32 to vector<8x1xf32>
    %340 = arith.addf %338, %339 : vector<8x1xf32>
    %341 = math.rsqrt %340 : vector<8x1xf32>
    %342 = vector.broadcast %341 : vector<8x1xf32> to vector<8x16xf32>
    %343 = arith.mulf %335, %342 : vector<8x16xf32>
    %344 = vector.extract_strided_slice %271 {offsets = [32, 0], sizes = [8, 16], strides = [1, 1]} : vector<64x16xf32> to vector<8x16xf32>
    %345 = arith.mulf %280, %344 : vector<8x16xf32>
    %cst_75 = arith.constant dense<0.000000e+00> : vector<8xf32>
    %346 = vector.multi_reduction <add>, %345, %cst_75 [1] : vector<8x16xf32> to vector<8xf32>
    %347 = vector.shape_cast %346 : vector<8xf32> to vector<8x1xf32>
    %348 = vector.broadcast %347 : vector<8x1xf32> to vector<8x16xf32>
    %349 = arith.mulf %348, %280 : vector<8x16xf32>
    %350 = arith.subf %344, %349 : vector<8x16xf32>
    %351 = arith.mulf %295, %350 : vector<8x16xf32>
    %cst_76 = arith.constant dense<0.000000e+00> : vector<8xf32>
    %352 = vector.multi_reduction <add>, %351, %cst_76 [1] : vector<8x16xf32> to vector<8xf32>
    %353 = vector.shape_cast %352 : vector<8xf32> to vector<8x1xf32>
    %354 = vector.broadcast %353 : vector<8x1xf32> to vector<8x16xf32>
    %355 = arith.mulf %354, %295 : vector<8x16xf32>
    %356 = arith.subf %350, %355 : vector<8x16xf32>
    %357 = arith.mulf %316, %356 : vector<8x16xf32>
    %cst_77 = arith.constant dense<0.000000e+00> : vector<8xf32>
    %358 = vector.multi_reduction <add>, %357, %cst_77 [1] : vector<8x16xf32> to vector<8xf32>
    %359 = vector.shape_cast %358 : vector<8xf32> to vector<8x1xf32>
    %360 = vector.broadcast %359 : vector<8x1xf32> to vector<8x16xf32>
    %361 = arith.mulf %360, %316 : vector<8x16xf32>
    %362 = arith.subf %356, %361 : vector<8x16xf32>
    %363 = arith.mulf %343, %362 : vector<8x16xf32>
    %cst_78 = arith.constant dense<0.000000e+00> : vector<8xf32>
    %364 = vector.multi_reduction <add>, %363, %cst_78 [1] : vector<8x16xf32> to vector<8xf32>
    %365 = vector.shape_cast %364 : vector<8xf32> to vector<8x1xf32>
    %366 = vector.broadcast %365 : vector<8x1xf32> to vector<8x16xf32>
    %367 = arith.mulf %366, %343 : vector<8x16xf32>
    %368 = arith.subf %362, %367 : vector<8x16xf32>
    %369 = arith.mulf %368, %368 : vector<8x16xf32>
    %cst_79 = arith.constant dense<0.000000e+00> : vector<8xf32>
    %370 = vector.multi_reduction <add>, %369, %cst_79 [1] : vector<8x16xf32> to vector<8xf32>
    %371 = vector.shape_cast %370 : vector<8xf32> to vector<8x1xf32>
    %cst_80 = arith.constant 9.99999996E-13 : f32
    %372 = vector.broadcast %cst_80 : f32 to vector<8x1xf32>
    %373 = arith.addf %371, %372 : vector<8x1xf32>
    %374 = math.rsqrt %373 : vector<8x1xf32>
    %375 = vector.broadcast %374 : vector<8x1xf32> to vector<8x16xf32>
    %376 = arith.mulf %368, %375 : vector<8x16xf32>
    %377 = vector.extract_strided_slice %271 {offsets = [40, 0], sizes = [8, 16], strides = [1, 1]} : vector<64x16xf32> to vector<8x16xf32>
    %378 = arith.mulf %280, %377 : vector<8x16xf32>
    %cst_81 = arith.constant dense<0.000000e+00> : vector<8xf32>
    %379 = vector.multi_reduction <add>, %378, %cst_81 [1] : vector<8x16xf32> to vector<8xf32>
    %380 = vector.shape_cast %379 : vector<8xf32> to vector<8x1xf32>
    %381 = vector.broadcast %380 : vector<8x1xf32> to vector<8x16xf32>
    %382 = arith.mulf %381, %280 : vector<8x16xf32>
    %383 = arith.subf %377, %382 : vector<8x16xf32>
    %384 = arith.mulf %295, %383 : vector<8x16xf32>
    %cst_82 = arith.constant dense<0.000000e+00> : vector<8xf32>
    %385 = vector.multi_reduction <add>, %384, %cst_82 [1] : vector<8x16xf32> to vector<8xf32>
    %386 = vector.shape_cast %385 : vector<8xf32> to vector<8x1xf32>
    %387 = vector.broadcast %386 : vector<8x1xf32> to vector<8x16xf32>
    %388 = arith.mulf %387, %295 : vector<8x16xf32>
    %389 = arith.subf %383, %388 : vector<8x16xf32>
    %390 = arith.mulf %316, %389 : vector<8x16xf32>
    %cst_83 = arith.constant dense<0.000000e+00> : vector<8xf32>
    %391 = vector.multi_reduction <add>, %390, %cst_83 [1] : vector<8x16xf32> to vector<8xf32>
    %392 = vector.shape_cast %391 : vector<8xf32> to vector<8x1xf32>
    %393 = vector.broadcast %392 : vector<8x1xf32> to vector<8x16xf32>
    %394 = arith.mulf %393, %316 : vector<8x16xf32>
    %395 = arith.subf %389, %394 : vector<8x16xf32>
    %396 = arith.mulf %343, %395 : vector<8x16xf32>
    %cst_84 = arith.constant dense<0.000000e+00> : vector<8xf32>
    %397 = vector.multi_reduction <add>, %396, %cst_84 [1] : vector<8x16xf32> to vector<8xf32>
    %398 = vector.shape_cast %397 : vector<8xf32> to vector<8x1xf32>
    %399 = vector.broadcast %398 : vector<8x1xf32> to vector<8x16xf32>
    %400 = arith.mulf %399, %343 : vector<8x16xf32>
    %401 = arith.subf %395, %400 : vector<8x16xf32>
    %402 = arith.mulf %376, %401 : vector<8x16xf32>
    %cst_85 = arith.constant dense<0.000000e+00> : vector<8xf32>
    %403 = vector.multi_reduction <add>, %402, %cst_85 [1] : vector<8x16xf32> to vector<8xf32>
    %404 = vector.shape_cast %403 : vector<8xf32> to vector<8x1xf32>
    %405 = vector.broadcast %404 : vector<8x1xf32> to vector<8x16xf32>
    %406 = arith.mulf %405, %376 : vector<8x16xf32>
    %407 = arith.subf %401, %406 : vector<8x16xf32>
    %408 = arith.mulf %407, %407 : vector<8x16xf32>
    %cst_86 = arith.constant dense<0.000000e+00> : vector<8xf32>
    %409 = vector.multi_reduction <add>, %408, %cst_86 [1] : vector<8x16xf32> to vector<8xf32>
    %410 = vector.shape_cast %409 : vector<8xf32> to vector<8x1xf32>
    %cst_87 = arith.constant 9.99999996E-13 : f32
    %411 = vector.broadcast %cst_87 : f32 to vector<8x1xf32>
    %412 = arith.addf %410, %411 : vector<8x1xf32>
    %413 = math.rsqrt %412 : vector<8x1xf32>
    %414 = vector.broadcast %413 : vector<8x1xf32> to vector<8x16xf32>
    %415 = arith.mulf %407, %414 : vector<8x16xf32>
    %416 = vector.extract_strided_slice %271 {offsets = [48, 0], sizes = [8, 16], strides = [1, 1]} : vector<64x16xf32> to vector<8x16xf32>
    %417 = arith.mulf %280, %416 : vector<8x16xf32>
    %cst_88 = arith.constant dense<0.000000e+00> : vector<8xf32>
    %418 = vector.multi_reduction <add>, %417, %cst_88 [1] : vector<8x16xf32> to vector<8xf32>
    %419 = vector.shape_cast %418 : vector<8xf32> to vector<8x1xf32>
    %420 = vector.broadcast %419 : vector<8x1xf32> to vector<8x16xf32>
    %421 = arith.mulf %420, %280 : vector<8x16xf32>
    %422 = arith.subf %416, %421 : vector<8x16xf32>
    %423 = arith.mulf %295, %422 : vector<8x16xf32>
    %cst_89 = arith.constant dense<0.000000e+00> : vector<8xf32>
    %424 = vector.multi_reduction <add>, %423, %cst_89 [1] : vector<8x16xf32> to vector<8xf32>
    %425 = vector.shape_cast %424 : vector<8xf32> to vector<8x1xf32>
    %426 = vector.broadcast %425 : vector<8x1xf32> to vector<8x16xf32>
    %427 = arith.mulf %426, %295 : vector<8x16xf32>
    %428 = arith.subf %422, %427 : vector<8x16xf32>
    %429 = arith.mulf %316, %428 : vector<8x16xf32>
    %cst_90 = arith.constant dense<0.000000e+00> : vector<8xf32>
    %430 = vector.multi_reduction <add>, %429, %cst_90 [1] : vector<8x16xf32> to vector<8xf32>
    %431 = vector.shape_cast %430 : vector<8xf32> to vector<8x1xf32>
    %432 = vector.broadcast %431 : vector<8x1xf32> to vector<8x16xf32>
    %433 = arith.mulf %432, %316 : vector<8x16xf32>
    %434 = arith.subf %428, %433 : vector<8x16xf32>
    %435 = arith.mulf %343, %434 : vector<8x16xf32>
    %cst_91 = arith.constant dense<0.000000e+00> : vector<8xf32>
    %436 = vector.multi_reduction <add>, %435, %cst_91 [1] : vector<8x16xf32> to vector<8xf32>
    %437 = vector.shape_cast %436 : vector<8xf32> to vector<8x1xf32>
    %438 = vector.broadcast %437 : vector<8x1xf32> to vector<8x16xf32>
    %439 = arith.mulf %438, %343 : vector<8x16xf32>
    %440 = arith.subf %434, %439 : vector<8x16xf32>
    %441 = arith.mulf %376, %440 : vector<8x16xf32>
    %cst_92 = arith.constant dense<0.000000e+00> : vector<8xf32>
    %442 = vector.multi_reduction <add>, %441, %cst_92 [1] : vector<8x16xf32> to vector<8xf32>
    %443 = vector.shape_cast %442 : vector<8xf32> to vector<8x1xf32>
    %444 = vector.broadcast %443 : vector<8x1xf32> to vector<8x16xf32>
    %445 = arith.mulf %444, %376 : vector<8x16xf32>
    %446 = arith.subf %440, %445 : vector<8x16xf32>
    %447 = arith.mulf %415, %446 : vector<8x16xf32>
    %cst_93 = arith.constant dense<0.000000e+00> : vector<8xf32>
    %448 = vector.multi_reduction <add>, %447, %cst_93 [1] : vector<8x16xf32> to vector<8xf32>
    %449 = vector.shape_cast %448 : vector<8xf32> to vector<8x1xf32>
    %450 = vector.broadcast %449 : vector<8x1xf32> to vector<8x16xf32>
    %451 = arith.mulf %450, %415 : vector<8x16xf32>
    %452 = arith.subf %446, %451 : vector<8x16xf32>
    %453 = arith.mulf %452, %452 : vector<8x16xf32>
    %cst_94 = arith.constant dense<0.000000e+00> : vector<8xf32>
    %454 = vector.multi_reduction <add>, %453, %cst_94 [1] : vector<8x16xf32> to vector<8xf32>
    %455 = vector.shape_cast %454 : vector<8xf32> to vector<8x1xf32>
    %cst_95 = arith.constant 9.99999996E-13 : f32
    %456 = vector.broadcast %cst_95 : f32 to vector<8x1xf32>
    %457 = arith.addf %455, %456 : vector<8x1xf32>
    %458 = math.rsqrt %457 : vector<8x1xf32>
    %459 = vector.broadcast %458 : vector<8x1xf32> to vector<8x16xf32>
    %460 = arith.mulf %452, %459 : vector<8x16xf32>
    %461 = vector.extract_strided_slice %271 {offsets = [56, 0], sizes = [8, 16], strides = [1, 1]} : vector<64x16xf32> to vector<8x16xf32>
    %462 = arith.mulf %280, %461 : vector<8x16xf32>
    %cst_96 = arith.constant dense<0.000000e+00> : vector<8xf32>
    %463 = vector.multi_reduction <add>, %462, %cst_96 [1] : vector<8x16xf32> to vector<8xf32>
    %464 = vector.shape_cast %463 : vector<8xf32> to vector<8x1xf32>
    %465 = vector.broadcast %464 : vector<8x1xf32> to vector<8x16xf32>
    %466 = arith.mulf %465, %280 : vector<8x16xf32>
    %467 = arith.subf %461, %466 : vector<8x16xf32>
    %468 = arith.mulf %295, %467 : vector<8x16xf32>
    %cst_97 = arith.constant dense<0.000000e+00> : vector<8xf32>
    %469 = vector.multi_reduction <add>, %468, %cst_97 [1] : vector<8x16xf32> to vector<8xf32>
    %470 = vector.shape_cast %469 : vector<8xf32> to vector<8x1xf32>
    %471 = vector.broadcast %470 : vector<8x1xf32> to vector<8x16xf32>
    %472 = arith.mulf %471, %295 : vector<8x16xf32>
    %473 = arith.subf %467, %472 : vector<8x16xf32>
    %474 = arith.mulf %316, %473 : vector<8x16xf32>
    %cst_98 = arith.constant dense<0.000000e+00> : vector<8xf32>
    %475 = vector.multi_reduction <add>, %474, %cst_98 [1] : vector<8x16xf32> to vector<8xf32>
    %476 = vector.shape_cast %475 : vector<8xf32> to vector<8x1xf32>
    %477 = vector.broadcast %476 : vector<8x1xf32> to vector<8x16xf32>
    %478 = arith.mulf %477, %316 : vector<8x16xf32>
    %479 = arith.subf %473, %478 : vector<8x16xf32>
    %480 = arith.mulf %343, %479 : vector<8x16xf32>
    %cst_99 = arith.constant dense<0.000000e+00> : vector<8xf32>
    %481 = vector.multi_reduction <add>, %480, %cst_99 [1] : vector<8x16xf32> to vector<8xf32>
    %482 = vector.shape_cast %481 : vector<8xf32> to vector<8x1xf32>
    %483 = vector.broadcast %482 : vector<8x1xf32> to vector<8x16xf32>
    %484 = arith.mulf %483, %343 : vector<8x16xf32>
    %485 = arith.subf %479, %484 : vector<8x16xf32>
    %486 = arith.mulf %376, %485 : vector<8x16xf32>
    %cst_100 = arith.constant dense<0.000000e+00> : vector<8xf32>
    %487 = vector.multi_reduction <add>, %486, %cst_100 [1] : vector<8x16xf32> to vector<8xf32>
    %488 = vector.shape_cast %487 : vector<8xf32> to vector<8x1xf32>
    %489 = vector.broadcast %488 : vector<8x1xf32> to vector<8x16xf32>
    %490 = arith.mulf %489, %376 : vector<8x16xf32>
    %491 = arith.subf %485, %490 : vector<8x16xf32>
    %492 = arith.mulf %415, %491 : vector<8x16xf32>
    %cst_101 = arith.constant dense<0.000000e+00> : vector<8xf32>
    %493 = vector.multi_reduction <add>, %492, %cst_101 [1] : vector<8x16xf32> to vector<8xf32>
    %494 = vector.shape_cast %493 : vector<8xf32> to vector<8x1xf32>
    %495 = vector.broadcast %494 : vector<8x1xf32> to vector<8x16xf32>
    %496 = arith.mulf %495, %415 : vector<8x16xf32>
    %497 = arith.subf %491, %496 : vector<8x16xf32>
    %498 = arith.mulf %460, %497 : vector<8x16xf32>
    %cst_102 = arith.constant dense<0.000000e+00> : vector<8xf32>
    %499 = vector.multi_reduction <add>, %498, %cst_102 [1] : vector<8x16xf32> to vector<8xf32>
    %500 = vector.shape_cast %499 : vector<8xf32> to vector<8x1xf32>
    %501 = vector.broadcast %500 : vector<8x1xf32> to vector<8x16xf32>
    %502 = arith.mulf %501, %460 : vector<8x16xf32>
    %503 = arith.subf %497, %502 : vector<8x16xf32>
    %504 = arith.mulf %503, %503 : vector<8x16xf32>
    %cst_103 = arith.constant dense<0.000000e+00> : vector<8xf32>
    %505 = vector.multi_reduction <add>, %504, %cst_103 [1] : vector<8x16xf32> to vector<8xf32>
    %506 = vector.shape_cast %505 : vector<8xf32> to vector<8x1xf32>
    %cst_104 = arith.constant 9.99999996E-13 : f32
    %507 = vector.broadcast %cst_104 : f32 to vector<8x1xf32>
    %508 = arith.addf %506, %507 : vector<8x1xf32>
    %509 = math.rsqrt %508 : vector<8x1xf32>
    %510 = vector.broadcast %509 : vector<8x1xf32> to vector<8x16xf32>
    %511 = arith.mulf %503, %510 : vector<8x16xf32>
    %512 = tpu.concatenate %280, %295, %316, %343, %376, %415, %460, %511 in 0 : vector<8x16xf32>, vector<8x16xf32>, vector<8x16xf32>, vector<8x16xf32>, vector<8x16xf32>, vector<8x16xf32>, vector<8x16xf32>, vector<8x16xf32> -> vector<64x16xf32>
    %cst_105 = arith.constant dense<0.000000e+00> : vector<64x256xf32>
    %513 = tpu.matmul %512, %0, %cst_105 {dimension_numbers = #tpu.dot_dimension_numbers<[1], [0], [0], [1], [0, 0, 1, 1], [], []>, precision = #tpu.contract_precision<fp32>} : vector<64x16xf32>, vector<16x256xf32>, vector<64x256xf32> -> vector<64x256xf32>
    %cst_106 = arith.constant dense<0.000000e+00> : vector<64x256xf32>
    %514 = tpu.matmul %512, %1, %cst_106 {dimension_numbers = #tpu.dot_dimension_numbers<[1], [0], [0], [1], [0, 0, 1, 1], [], []>, precision = #tpu.contract_precision<fp32>} : vector<64x16xf32>, vector<16x256xf32>, vector<64x256xf32> -> vector<64x256xf32>
    %515 = arith.mulf %513, %514 : vector<64x256xf32>
    %516 = vector.extract_strided_slice %515 {offsets = [0, 0], sizes = [8, 256], strides = [1, 1]} : vector<64x256xf32> to vector<8x256xf32>
    %517 = vector.extract_strided_slice %515 {offsets = [8, 0], sizes = [8, 256], strides = [1, 1]} : vector<64x256xf32> to vector<8x256xf32>
    %518 = arith.addf %516, %517 : vector<8x256xf32>
    %519 = vector.extract_strided_slice %515 {offsets = [16, 0], sizes = [8, 256], strides = [1, 1]} : vector<64x256xf32> to vector<8x256xf32>
    %520 = arith.addf %518, %519 : vector<8x256xf32>
    %521 = vector.extract_strided_slice %515 {offsets = [24, 0], sizes = [8, 256], strides = [1, 1]} : vector<64x256xf32> to vector<8x256xf32>
    %522 = arith.addf %520, %521 : vector<8x256xf32>
    %523 = vector.extract_strided_slice %515 {offsets = [32, 0], sizes = [8, 256], strides = [1, 1]} : vector<64x256xf32> to vector<8x256xf32>
    %524 = arith.addf %522, %523 : vector<8x256xf32>
    %525 = vector.extract_strided_slice %515 {offsets = [40, 0], sizes = [8, 256], strides = [1, 1]} : vector<64x256xf32> to vector<8x256xf32>
    %526 = arith.addf %524, %525 : vector<8x256xf32>
    %527 = vector.extract_strided_slice %515 {offsets = [48, 0], sizes = [8, 256], strides = [1, 1]} : vector<64x256xf32> to vector<8x256xf32>
    %528 = arith.addf %526, %527 : vector<8x256xf32>
    %529 = vector.extract_strided_slice %515 {offsets = [56, 0], sizes = [8, 256], strides = [1, 1]} : vector<64x256xf32> to vector<8x256xf32>
    %530 = arith.addf %528, %529 : vector<8x256xf32>
    %c1_107 = arith.constant 1 : index
    %c0_108 = arith.constant 0 : index
    %c0_109 = arith.constant 0 : index
    %531 = vector.load %arg5[%c1_107, %c0_108, %c0_109] : memref<3x8x256xf32, #tpu.memory_space<vmem>>, vector<1x8x256xf32>
    %532 = vector.shape_cast %531 : vector<1x8x256xf32> to vector<8x256xf32>
    %533 = vector.shape_cast %530 : vector<8x256xf32> to vector<1x8x256xf32>
    tpu.vector_store %arg5[%c1_107, %c0_108, %c0_109], %533 {strides = array<i32>} : memref<3x8x256xf32, #tpu.memory_space<vmem>>, vector<1x8x256xf32>,
    %c2 = arith.constant 2 : index
    %c0_110 = arith.constant 0 : index
    %c0_111 = arith.constant 0 : index
    %534 = vector.load %arg2[%c2, %c0_110, %c0_111] : memref<3x32x16xf32, #tpu.memory_space<vmem>>, vector<1x32x16xf32>
    %535 = vector.shape_cast %534 : vector<1x32x16xf32> to vector<32x16xf32>
    %cst_112 = arith.constant dense<0.000000e+00> : vector<64x16xf32>
    %536 = tpu.matmul %3, %535, %cst_112 {dimension_numbers = #tpu.dot_dimension_numbers<[1], [0], [0], [1], [0, 0, 1, 1], [], []>, precision = #tpu.contract_precision<fp32>} : vector<64x32xf32>, vector<32x16xf32>, vector<64x16xf32> -> vector<64x16xf32>
    %537 = vector.extract_strided_slice %536 {offsets = [0, 0], sizes = [8, 16], strides = [1, 1]} : vector<64x16xf32> to vector<8x16xf32>
    %538 = arith.mulf %537, %537 : vector<8x16xf32>
    %cst_113 = arith.constant dense<0.000000e+00> : vector<8xf32>
    %539 = vector.multi_reduction <add>, %538, %cst_113 [1] : vector<8x16xf32> to vector<8xf32>
    %540 = vector.shape_cast %539 : vector<8xf32> to vector<8x1xf32>
    %cst_114 = arith.constant 9.99999996E-13 : f32
    %541 = vector.broadcast %cst_114 : f32 to vector<8x1xf32>
    %542 = arith.addf %540, %541 : vector<8x1xf32>
    %543 = math.rsqrt %542 : vector<8x1xf32>
    %544 = vector.broadcast %543 : vector<8x1xf32> to vector<8x16xf32>
    %545 = arith.mulf %537, %544 : vector<8x16xf32>
    %546 = vector.extract_strided_slice %536 {offsets = [8, 0], sizes = [8, 16], strides = [1, 1]} : vector<64x16xf32> to vector<8x16xf32>
    %547 = arith.mulf %545, %546 : vector<8x16xf32>
    %cst_115 = arith.constant dense<0.000000e+00> : vector<8xf32>
    %548 = vector.multi_reduction <add>, %547, %cst_115 [1] : vector<8x16xf32> to vector<8xf32>
    %549 = vector.shape_cast %548 : vector<8xf32> to vector<8x1xf32>
    %550 = vector.broadcast %549 : vector<8x1xf32> to vector<8x16xf32>
    %551 = arith.mulf %550, %545 : vector<8x16xf32>
    %552 = arith.subf %546, %551 : vector<8x16xf32>
    %553 = arith.mulf %552, %552 : vector<8x16xf32>
    %cst_116 = arith.constant dense<0.000000e+00> : vector<8xf32>
    %554 = vector.multi_reduction <add>, %553, %cst_116 [1] : vector<8x16xf32> to vector<8xf32>
    %555 = vector.shape_cast %554 : vector<8xf32> to vector<8x1xf32>
    %cst_117 = arith.constant 9.99999996E-13 : f32
    %556 = vector.broadcast %cst_117 : f32 to vector<8x1xf32>
    %557 = arith.addf %555, %556 : vector<8x1xf32>
    %558 = math.rsqrt %557 : vector<8x1xf32>
    %559 = vector.broadcast %558 : vector<8x1xf32> to vector<8x16xf32>
    %560 = arith.mulf %552, %559 : vector<8x16xf32>
    %561 = vector.extract_strided_slice %536 {offsets = [16, 0], sizes = [8, 16], strides = [1, 1]} : vector<64x16xf32> to vector<8x16xf32>
    %562 = arith.mulf %545, %561 : vector<8x16xf32>
    %cst_118 = arith.constant dense<0.000000e+00> : vector<8xf32>
    %563 = vector.multi_reduction <add>, %562, %cst_118 [1] : vector<8x16xf32> to vector<8xf32>
    %564 = vector.shape_cast %563 : vector<8xf32> to vector<8x1xf32>
    %565 = vector.broadcast %564 : vector<8x1xf32> to vector<8x16xf32>
    %566 = arith.mulf %565, %545 : vector<8x16xf32>
    %567 = arith.subf %561, %566 : vector<8x16xf32>
    %568 = arith.mulf %560, %567 : vector<8x16xf32>
    %cst_119 = arith.constant dense<0.000000e+00> : vector<8xf32>
    %569 = vector.multi_reduction <add>, %568, %cst_119 [1] : vector<8x16xf32> to vector<8xf32>
    %570 = vector.shape_cast %569 : vector<8xf32> to vector<8x1xf32>
    %571 = vector.broadcast %570 : vector<8x1xf32> to vector<8x16xf32>
    %572 = arith.mulf %571, %560 : vector<8x16xf32>
    %573 = arith.subf %567, %572 : vector<8x16xf32>
    %574 = arith.mulf %573, %573 : vector<8x16xf32>
    %cst_120 = arith.constant dense<0.000000e+00> : vector<8xf32>
    %575 = vector.multi_reduction <add>, %574, %cst_120 [1] : vector<8x16xf32> to vector<8xf32>
    %576 = vector.shape_cast %575 : vector<8xf32> to vector<8x1xf32>
    %cst_121 = arith.constant 9.99999996E-13 : f32
    %577 = vector.broadcast %cst_121 : f32 to vector<8x1xf32>
    %578 = arith.addf %576, %577 : vector<8x1xf32>
    %579 = math.rsqrt %578 : vector<8x1xf32>
    %580 = vector.broadcast %579 : vector<8x1xf32> to vector<8x16xf32>
    %581 = arith.mulf %573, %580 : vector<8x16xf32>
    %582 = vector.extract_strided_slice %536 {offsets = [24, 0], sizes = [8, 16], strides = [1, 1]} : vector<64x16xf32> to vector<8x16xf32>
    %583 = arith.mulf %545, %582 : vector<8x16xf32>
    %cst_122 = arith.constant dense<0.000000e+00> : vector<8xf32>
    %584 = vector.multi_reduction <add>, %583, %cst_122 [1] : vector<8x16xf32> to vector<8xf32>
    %585 = vector.shape_cast %584 : vector<8xf32> to vector<8x1xf32>
    %586 = vector.broadcast %585 : vector<8x1xf32> to vector<8x16xf32>
    %587 = arith.mulf %586, %545 : vector<8x16xf32>
    %588 = arith.subf %582, %587 : vector<8x16xf32>
    %589 = arith.mulf %560, %588 : vector<8x16xf32>
    %cst_123 = arith.constant dense<0.000000e+00> : vector<8xf32>
    %590 = vector.multi_reduction <add>, %589, %cst_123 [1] : vector<8x16xf32> to vector<8xf32>
    %591 = vector.shape_cast %590 : vector<8xf32> to vector<8x1xf32>
    %592 = vector.broadcast %591 : vector<8x1xf32> to vector<8x16xf32>
    %593 = arith.mulf %592, %560 : vector<8x16xf32>
    %594 = arith.subf %588, %593 : vector<8x16xf32>
    %595 = arith.mulf %581, %594 : vector<8x16xf32>
    %cst_124 = arith.constant dense<0.000000e+00> : vector<8xf32>
    %596 = vector.multi_reduction <add>, %595, %cst_124 [1] : vector<8x16xf32> to vector<8xf32>
    %597 = vector.shape_cast %596 : vector<8xf32> to vector<8x1xf32>
    %598 = vector.broadcast %597 : vector<8x1xf32> to vector<8x16xf32>
    %599 = arith.mulf %598, %581 : vector<8x16xf32>
    %600 = arith.subf %594, %599 : vector<8x16xf32>
    %601 = arith.mulf %600, %600 : vector<8x16xf32>
    %cst_125 = arith.constant dense<0.000000e+00> : vector<8xf32>
    %602 = vector.multi_reduction <add>, %601, %cst_125 [1] : vector<8x16xf32> to vector<8xf32>
    %603 = vector.shape_cast %602 : vector<8xf32> to vector<8x1xf32>
    %cst_126 = arith.constant 9.99999996E-13 : f32
    %604 = vector.broadcast %cst_126 : f32 to vector<8x1xf32>
    %605 = arith.addf %603, %604 : vector<8x1xf32>
    %606 = math.rsqrt %605 : vector<8x1xf32>
    %607 = vector.broadcast %606 : vector<8x1xf32> to vector<8x16xf32>
    %608 = arith.mulf %600, %607 : vector<8x16xf32>
    %609 = vector.extract_strided_slice %536 {offsets = [32, 0], sizes = [8, 16], strides = [1, 1]} : vector<64x16xf32> to vector<8x16xf32>
    %610 = arith.mulf %545, %609 : vector<8x16xf32>
    %cst_127 = arith.constant dense<0.000000e+00> : vector<8xf32>
    %611 = vector.multi_reduction <add>, %610, %cst_127 [1] : vector<8x16xf32> to vector<8xf32>
    %612 = vector.shape_cast %611 : vector<8xf32> to vector<8x1xf32>
    %613 = vector.broadcast %612 : vector<8x1xf32> to vector<8x16xf32>
    %614 = arith.mulf %613, %545 : vector<8x16xf32>
    %615 = arith.subf %609, %614 : vector<8x16xf32>
    %616 = arith.mulf %560, %615 : vector<8x16xf32>
    %cst_128 = arith.constant dense<0.000000e+00> : vector<8xf32>
    %617 = vector.multi_reduction <add>, %616, %cst_128 [1] : vector<8x16xf32> to vector<8xf32>
    %618 = vector.shape_cast %617 : vector<8xf32> to vector<8x1xf32>
    %619 = vector.broadcast %618 : vector<8x1xf32> to vector<8x16xf32>
    %620 = arith.mulf %619, %560 : vector<8x16xf32>
    %621 = arith.subf %615, %620 : vector<8x16xf32>
    %622 = arith.mulf %581, %621 : vector<8x16xf32>
    %cst_129 = arith.constant dense<0.000000e+00> : vector<8xf32>
    %623 = vector.multi_reduction <add>, %622, %cst_129 [1] : vector<8x16xf32> to vector<8xf32>
    %624 = vector.shape_cast %623 : vector<8xf32> to vector<8x1xf32>
    %625 = vector.broadcast %624 : vector<8x1xf32> to vector<8x16xf32>
    %626 = arith.mulf %625, %581 : vector<8x16xf32>
    %627 = arith.subf %621, %626 : vector<8x16xf32>
    %628 = arith.mulf %608, %627 : vector<8x16xf32>
    %cst_130 = arith.constant dense<0.000000e+00> : vector<8xf32>
    %629 = vector.multi_reduction <add>, %628, %cst_130 [1] : vector<8x16xf32> to vector<8xf32>
    %630 = vector.shape_cast %629 : vector<8xf32> to vector<8x1xf32>
    %631 = vector.broadcast %630 : vector<8x1xf32> to vector<8x16xf32>
    %632 = arith.mulf %631, %608 : vector<8x16xf32>
    %633 = arith.subf %627, %632 : vector<8x16xf32>
    %634 = arith.mulf %633, %633 : vector<8x16xf32>
    %cst_131 = arith.constant dense<0.000000e+00> : vector<8xf32>
    %635 = vector.multi_reduction <add>, %634, %cst_131 [1] : vector<8x16xf32> to vector<8xf32>
    %636 = vector.shape_cast %635 : vector<8xf32> to vector<8x1xf32>
    %cst_132 = arith.constant 9.99999996E-13 : f32
    %637 = vector.broadcast %cst_132 : f32 to vector<8x1xf32>
    %638 = arith.addf %636, %637 : vector<8x1xf32>
    %639 = math.rsqrt %638 : vector<8x1xf32>
    %640 = vector.broadcast %639 : vector<8x1xf32> to vector<8x16xf32>
    %641 = arith.mulf %633, %640 : vector<8x16xf32>
    %642 = vector.extract_strided_slice %536 {offsets = [40, 0], sizes = [8, 16], strides = [1, 1]} : vector<64x16xf32> to vector<8x16xf32>
    %643 = arith.mulf %545, %642 : vector<8x16xf32>
    %cst_133 = arith.constant dense<0.000000e+00> : vector<8xf32>
    %644 = vector.multi_reduction <add>, %643, %cst_133 [1] : vector<8x16xf32> to vector<8xf32>
    %645 = vector.shape_cast %644 : vector<8xf32> to vector<8x1xf32>
    %646 = vector.broadcast %645 : vector<8x1xf32> to vector<8x16xf32>
    %647 = arith.mulf %646, %545 : vector<8x16xf32>
    %648 = arith.subf %642, %647 : vector<8x16xf32>
    %649 = arith.mulf %560, %648 : vector<8x16xf32>
    %cst_134 = arith.constant dense<0.000000e+00> : vector<8xf32>
    %650 = vector.multi_reduction <add>, %649, %cst_134 [1] : vector<8x16xf32> to vector<8xf32>
    %651 = vector.shape_cast %650 : vector<8xf32> to vector<8x1xf32>
    %652 = vector.broadcast %651 : vector<8x1xf32> to vector<8x16xf32>
    %653 = arith.mulf %652, %560 : vector<8x16xf32>
    %654 = arith.subf %648, %653 : vector<8x16xf32>
    %655 = arith.mulf %581, %654 : vector<8x16xf32>
    %cst_135 = arith.constant dense<0.000000e+00> : vector<8xf32>
    %656 = vector.multi_reduction <add>, %655, %cst_135 [1] : vector<8x16xf32> to vector<8xf32>
    %657 = vector.shape_cast %656 : vector<8xf32> to vector<8x1xf32>
    %658 = vector.broadcast %657 : vector<8x1xf32> to vector<8x16xf32>
    %659 = arith.mulf %658, %581 : vector<8x16xf32>
    %660 = arith.subf %654, %659 : vector<8x16xf32>
    %661 = arith.mulf %608, %660 : vector<8x16xf32>
    %cst_136 = arith.constant dense<0.000000e+00> : vector<8xf32>
    %662 = vector.multi_reduction <add>, %661, %cst_136 [1] : vector<8x16xf32> to vector<8xf32>
    %663 = vector.shape_cast %662 : vector<8xf32> to vector<8x1xf32>
    %664 = vector.broadcast %663 : vector<8x1xf32> to vector<8x16xf32>
    %665 = arith.mulf %664, %608 : vector<8x16xf32>
    %666 = arith.subf %660, %665 : vector<8x16xf32>
    %667 = arith.mulf %641, %666 : vector<8x16xf32>
    %cst_137 = arith.constant dense<0.000000e+00> : vector<8xf32>
    %668 = vector.multi_reduction <add>, %667, %cst_137 [1] : vector<8x16xf32> to vector<8xf32>
    %669 = vector.shape_cast %668 : vector<8xf32> to vector<8x1xf32>
    %670 = vector.broadcast %669 : vector<8x1xf32> to vector<8x16xf32>
    %671 = arith.mulf %670, %641 : vector<8x16xf32>
    %672 = arith.subf %666, %671 : vector<8x16xf32>
    %673 = arith.mulf %672, %672 : vector<8x16xf32>
    %cst_138 = arith.constant dense<0.000000e+00> : vector<8xf32>
    %674 = vector.multi_reduction <add>, %673, %cst_138 [1] : vector<8x16xf32> to vector<8xf32>
    %675 = vector.shape_cast %674 : vector<8xf32> to vector<8x1xf32>
    %cst_139 = arith.constant 9.99999996E-13 : f32
    %676 = vector.broadcast %cst_139 : f32 to vector<8x1xf32>
    %677 = arith.addf %675, %676 : vector<8x1xf32>
    %678 = math.rsqrt %677 : vector<8x1xf32>
    %679 = vector.broadcast %678 : vector<8x1xf32> to vector<8x16xf32>
    %680 = arith.mulf %672, %679 : vector<8x16xf32>
    %681 = vector.extract_strided_slice %536 {offsets = [48, 0], sizes = [8, 16], strides = [1, 1]} : vector<64x16xf32> to vector<8x16xf32>
    %682 = arith.mulf %545, %681 : vector<8x16xf32>
    %cst_140 = arith.constant dense<0.000000e+00> : vector<8xf32>
    %683 = vector.multi_reduction <add>, %682, %cst_140 [1] : vector<8x16xf32> to vector<8xf32>
    %684 = vector.shape_cast %683 : vector<8xf32> to vector<8x1xf32>
    %685 = vector.broadcast %684 : vector<8x1xf32> to vector<8x16xf32>
    %686 = arith.mulf %685, %545 : vector<8x16xf32>
    %687 = arith.subf %681, %686 : vector<8x16xf32>
    %688 = arith.mulf %560, %687 : vector<8x16xf32>
    %cst_141 = arith.constant dense<0.000000e+00> : vector<8xf32>
    %689 = vector.multi_reduction <add>, %688, %cst_141 [1] : vector<8x16xf32> to vector<8xf32>
    %690 = vector.shape_cast %689 : vector<8xf32> to vector<8x1xf32>
    %691 = vector.broadcast %690 : vector<8x1xf32> to vector<8x16xf32>
    %692 = arith.mulf %691, %560 : vector<8x16xf32>
    %693 = arith.subf %687, %692 : vector<8x16xf32>
    %694 = arith.mulf %581, %693 : vector<8x16xf32>
    %cst_142 = arith.constant dense<0.000000e+00> : vector<8xf32>
    %695 = vector.multi_reduction <add>, %694, %cst_142 [1] : vector<8x16xf32> to vector<8xf32>
    %696 = vector.shape_cast %695 : vector<8xf32> to vector<8x1xf32>
    %697 = vector.broadcast %696 : vector<8x1xf32> to vector<8x16xf32>
    %698 = arith.mulf %697, %581 : vector<8x16xf32>
    %699 = arith.subf %693, %698 : vector<8x16xf32>
    %700 = arith.mulf %608, %699 : vector<8x16xf32>
    %cst_143 = arith.constant dense<0.000000e+00> : vector<8xf32>
    %701 = vector.multi_reduction <add>, %700, %cst_143 [1] : vector<8x16xf32> to vector<8xf32>
    %702 = vector.shape_cast %701 : vector<8xf32> to vector<8x1xf32>
    %703 = vector.broadcast %702 : vector<8x1xf32> to vector<8x16xf32>
    %704 = arith.mulf %703, %608 : vector<8x16xf32>
    %705 = arith.subf %699, %704 : vector<8x16xf32>
    %706 = arith.mulf %641, %705 : vector<8x16xf32>
    %cst_144 = arith.constant dense<0.000000e+00> : vector<8xf32>
    %707 = vector.multi_reduction <add>, %706, %cst_144 [1] : vector<8x16xf32> to vector<8xf32>
    %708 = vector.shape_cast %707 : vector<8xf32> to vector<8x1xf32>
    %709 = vector.broadcast %708 : vector<8x1xf32> to vector<8x16xf32>
    %710 = arith.mulf %709, %641 : vector<8x16xf32>
    %711 = arith.subf %705, %710 : vector<8x16xf32>
    %712 = arith.mulf %680, %711 : vector<8x16xf32>
    %cst_145 = arith.constant dense<0.000000e+00> : vector<8xf32>
    %713 = vector.multi_reduction <add>, %712, %cst_145 [1] : vector<8x16xf32> to vector<8xf32>
    %714 = vector.shape_cast %713 : vector<8xf32> to vector<8x1xf32>
    %715 = vector.broadcast %714 : vector<8x1xf32> to vector<8x16xf32>
    %716 = arith.mulf %715, %680 : vector<8x16xf32>
    %717 = arith.subf %711, %716 : vector<8x16xf32>
    %718 = arith.mulf %717, %717 : vector<8x16xf32>
    %cst_146 = arith.constant dense<0.000000e+00> : vector<8xf32>
    %719 = vector.multi_reduction <add>, %718, %cst_146 [1] : vector<8x16xf32> to vector<8xf32>
    %720 = vector.shape_cast %719 : vector<8xf32> to vector<8x1xf32>
    %cst_147 = arith.constant 9.99999996E-13 : f32
    %721 = vector.broadcast %cst_147 : f32 to vector<8x1xf32>
    %722 = arith.addf %720, %721 : vector<8x1xf32>
    %723 = math.rsqrt %722 : vector<8x1xf32>
    %724 = vector.broadcast %723 : vector<8x1xf32> to vector<8x16xf32>
    %725 = arith.mulf %717, %724 : vector<8x16xf32>
    %726 = vector.extract_strided_slice %536 {offsets = [56, 0], sizes = [8, 16], strides = [1, 1]} : vector<64x16xf32> to vector<8x16xf32>
    %727 = arith.mulf %545, %726 : vector<8x16xf32>
    %cst_148 = arith.constant dense<0.000000e+00> : vector<8xf32>
    %728 = vector.multi_reduction <add>, %727, %cst_148 [1] : vector<8x16xf32> to vector<8xf32>
    %729 = vector.shape_cast %728 : vector<8xf32> to vector<8x1xf32>
    %730 = vector.broadcast %729 : vector<8x1xf32> to vector<8x16xf32>
    %731 = arith.mulf %730, %545 : vector<8x16xf32>
    %732 = arith.subf %726, %731 : vector<8x16xf32>
    %733 = arith.mulf %560, %732 : vector<8x16xf32>
    %cst_149 = arith.constant dense<0.000000e+00> : vector<8xf32>
    %734 = vector.multi_reduction <add>, %733, %cst_149 [1] : vector<8x16xf32> to vector<8xf32>
    %735 = vector.shape_cast %734 : vector<8xf32> to vector<8x1xf32>
    %736 = vector.broadcast %735 : vector<8x1xf32> to vector<8x16xf32>
    %737 = arith.mulf %736, %560 : vector<8x16xf32>
    %738 = arith.subf %732, %737 : vector<8x16xf32>
    %739 = arith.mulf %581, %738 : vector<8x16xf32>
    %cst_150 = arith.constant dense<0.000000e+00> : vector<8xf32>
    %740 = vector.multi_reduction <add>, %739, %cst_150 [1] : vector<8x16xf32> to vector<8xf32>
    %741 = vector.shape_cast %740 : vector<8xf32> to vector<8x1xf32>
    %742 = vector.broadcast %741 : vector<8x1xf32> to vector<8x16xf32>
    %743 = arith.mulf %742, %581 : vector<8x16xf32>
    %744 = arith.subf %738, %743 : vector<8x16xf32>
    %745 = arith.mulf %608, %744 : vector<8x16xf32>
    %cst_151 = arith.constant dense<0.000000e+00> : vector<8xf32>
    %746 = vector.multi_reduction <add>, %745, %cst_151 [1] : vector<8x16xf32> to vector<8xf32>
    %747 = vector.shape_cast %746 : vector<8xf32> to vector<8x1xf32>
    %748 = vector.broadcast %747 : vector<8x1xf32> to vector<8x16xf32>
    %749 = arith.mulf %748, %608 : vector<8x16xf32>
    %750 = arith.subf %744, %749 : vector<8x16xf32>
    %751 = arith.mulf %641, %750 : vector<8x16xf32>
    %cst_152 = arith.constant dense<0.000000e+00> : vector<8xf32>
    %752 = vector.multi_reduction <add>, %751, %cst_152 [1] : vector<8x16xf32> to vector<8xf32>
    %753 = vector.shape_cast %752 : vector<8xf32> to vector<8x1xf32>
    %754 = vector.broadcast %753 : vector<8x1xf32> to vector<8x16xf32>
    %755 = arith.mulf %754, %641 : vector<8x16xf32>
    %756 = arith.subf %750, %755 : vector<8x16xf32>
    %757 = arith.mulf %680, %756 : vector<8x16xf32>
    %cst_153 = arith.constant dense<0.000000e+00> : vector<8xf32>
    %758 = vector.multi_reduction <add>, %757, %cst_153 [1] : vector<8x16xf32> to vector<8xf32>
    %759 = vector.shape_cast %758 : vector<8xf32> to vector<8x1xf32>
    %760 = vector.broadcast %759 : vector<8x1xf32> to vector<8x16xf32>
    %761 = arith.mulf %760, %680 : vector<8x16xf32>
    %762 = arith.subf %756, %761 : vector<8x16xf32>
    %763 = arith.mulf %725, %762 : vector<8x16xf32>
    %cst_154 = arith.constant dense<0.000000e+00> : vector<8xf32>
    %764 = vector.multi_reduction <add>, %763, %cst_154 [1] : vector<8x16xf32> to vector<8xf32>
    %765 = vector.shape_cast %764 : vector<8xf32> to vector<8x1xf32>
    %766 = vector.broadcast %765 : vector<8x1xf32> to vector<8x16xf32>
    %767 = arith.mulf %766, %725 : vector<8x16xf32>
    %768 = arith.subf %762, %767 : vector<8x16xf32>
    %769 = arith.mulf %768, %768 : vector<8x16xf32>
    %cst_155 = arith.constant dense<0.000000e+00> : vector<8xf32>
    %770 = vector.multi_reduction <add>, %769, %cst_155 [1] : vector<8x16xf32> to vector<8xf32>
    %771 = vector.shape_cast %770 : vector<8xf32> to vector<8x1xf32>
    %cst_156 = arith.constant 9.99999996E-13 : f32
    %772 = vector.broadcast %cst_156 : f32 to vector<8x1xf32>
    %773 = arith.addf %771, %772 : vector<8x1xf32>
    %774 = math.rsqrt %773 : vector<8x1xf32>
    %775 = vector.broadcast %774 : vector<8x1xf32> to vector<8x16xf32>
    %776 = arith.mulf %768, %775 : vector<8x16xf32>
    %777 = tpu.concatenate %545, %560, %581, %608, %641, %680, %725, %776 in 0 : vector<8x16xf32>, vector<8x16xf32>, vector<8x16xf32>, vector<8x16xf32>, vector<8x16xf32>, vector<8x16xf32>, vector<8x16xf32>, vector<8x16xf32> -> vector<64x16xf32>
    %cst_157 = arith.constant dense<0.000000e+00> : vector<64x256xf32>
    %778 = tpu.matmul %777, %0, %cst_157 {dimension_numbers = #tpu.dot_dimension_numbers<[1], [0], [0], [1], [0, 0, 1, 1], [], []>, precision = #tpu.contract_precision<fp32>} : vector<64x16xf32>, vector<16x256xf32>, vector<64x256xf32> -> vector<64x256xf32>
    %cst_158 = arith.constant dense<0.000000e+00> : vector<64x256xf32>
    %779 = tpu.matmul %777, %1, %cst_158 {dimension_numbers = #tpu.dot_dimension_numbers<[1], [0], [0], [1], [0, 0, 1, 1], [], []>, precision = #tpu.contract_precision<fp32>} : vector<64x16xf32>, vector<16x256xf32>, vector<64x256xf32> -> vector<64x256xf32>
    %780 = arith.mulf %778, %779 : vector<64x256xf32>
    %781 = vector.extract_strided_slice %780 {offsets = [0, 0], sizes = [8, 256], strides = [1, 1]} : vector<64x256xf32> to vector<8x256xf32>
    %782 = vector.extract_strided_slice %780 {offsets = [8, 0], sizes = [8, 256], strides = [1, 1]} : vector<64x256xf32> to vector<8x256xf32>
    %783 = arith.addf %781, %782 : vector<8x256xf32>
    %784 = vector.extract_strided_slice %780 {offsets = [16, 0], sizes = [8, 256], strides = [1, 1]} : vector<64x256xf32> to vector<8x256xf32>
    %785 = arith.addf %783, %784 : vector<8x256xf32>
    %786 = vector.extract_strided_slice %780 {offsets = [24, 0], sizes = [8, 256], strides = [1, 1]} : vector<64x256xf32> to vector<8x256xf32>
    %787 = arith.addf %785, %786 : vector<8x256xf32>
    %788 = vector.extract_strided_slice %780 {offsets = [32, 0], sizes = [8, 256], strides = [1, 1]} : vector<64x256xf32> to vector<8x256xf32>
    %789 = arith.addf %787, %788 : vector<8x256xf32>
    %790 = vector.extract_strided_slice %780 {offsets = [40, 0], sizes = [8, 256], strides = [1, 1]} : vector<64x256xf32> to vector<8x256xf32>
    %791 = arith.addf %789, %790 : vector<8x256xf32>
    %792 = vector.extract_strided_slice %780 {offsets = [48, 0], sizes = [8, 256], strides = [1, 1]} : vector<64x256xf32> to vector<8x256xf32>
    %793 = arith.addf %791, %792 : vector<8x256xf32>
    %794 = vector.extract_strided_slice %780 {offsets = [56, 0], sizes = [8, 256], strides = [1, 1]} : vector<64x256xf32> to vector<8x256xf32>
    %795 = arith.addf %793, %794 : vector<8x256xf32>
    %c2_159 = arith.constant 2 : index
    %c0_160 = arith.constant 0 : index
    %c0_161 = arith.constant 0 : index
    %796 = vector.load %arg5[%c2_159, %c0_160, %c0_161] : memref<3x8x256xf32, #tpu.memory_space<vmem>>, vector<1x8x256xf32>
    %797 = vector.shape_cast %796 : vector<1x8x256xf32> to vector<8x256xf32>
    %798 = vector.shape_cast %795 : vector<8x256xf32> to vector<1x8x256xf32>
    tpu.vector_store %arg5[%c2_159, %c0_160, %c0_161], %798 {strides = array<i32>} : memref<3x8x256xf32, #tpu.memory_space<vmem>>, vector<1x8x256xf32>,
    return
  }
  func.func @transform_0(%arg0: i32) -> (i32, i32, i32) {
    %c0_i32 = arith.constant 0 : i32
    %c0_i32_0 = arith.constant 0 : i32
    %c0_i32_1 = arith.constant 0 : i32
    return %arg0, %c0_i32, %c0_i32_0 : i32, i32, i32
  }
  func.func @transform_1(%arg0: i32) -> (i32, i32, i32) {
    %c0_i32 = arith.constant 0 : i32
    %c0_i32_0 = arith.constant 0 : i32
    %c0_i32_1 = arith.constant 0 : i32
    %c0_i32_2 = arith.constant 0 : i32
    return %c0_i32, %c0_i32_0, %c0_i32_1 : i32, i32, i32
  }
  func.func @transform_2(%arg0: i32) -> (i32, i32) {
    %c0_i32 = arith.constant 0 : i32
    %c0_i32_0 = arith.constant 0 : i32
    %c0_i32_1 = arith.constant 0 : i32
    return %c0_i32, %c0_i32_0 : i32, i32
  }
  func.func @transform_3(%arg0: i32) -> (i32, i32) {
    %c0_i32 = arith.constant 0 : i32
    %c0_i32_0 = arith.constant 0 : i32
    %c0_i32_1 = arith.constant 0 : i32
    return %c0_i32, %c0_i32_0 : i32, i32
  }
  func.func @transform_4(%arg0: i32) -> (i32, i32, i32) {
    %c0_i32 = arith.constant 0 : i32
    %c0_i32_0 = arith.constant 0 : i32
    %c0_i32_1 = arith.constant 0 : i32
    return %c0_i32, %arg0, %c0_i32_0 : i32, i32, i32
  }
}

</mosaic_0001>

<bundles_post_ra>
// kernel: grassmann_projectors.1
= control target key start
LH: loop header
LB: loop body
LE: loop exit
PB: predicated region body
PF: predicated region fallthrough
CT: control target
= control target key end

     0   :  { %s10154_s15 = smov 0   ;;  %s10156_s16 = smov 0   ;;  %s12094_s0 = inlined_call_operand.vmem [shape: f32[2,64,32], index: 0, kind: input, shape index: {}]   ;;  %s12095_s1 = inlined_call_operand.vmem [shape: f32[3,32,16], index: 1, kind: input, shape index: {}]   ;;  %s12096_s2 = inlined_call_operand.vmem [shape: f32[16,256], index: 2, kind: input, shape index: {}]   ;;  %s12097_s3 = inlined_call_operand.vmem [shape: f32[16,256], index: 3, kind: input, shape index: {}]   ;;  %s12098_s4 = inlined_call_operand.vmem [shape: f32[3,16,256], index: 4, kind: output, shape index: {}]  }
   0x1   :  { %s10158_s17 = smov 0  }
   0x2 LB: > { %s10167_s18 = sadd.s32 4294967295, %s10126_s17   ;;  %s10169_s19 = sadd.s32 1, %s10126_s17   ;;  %s10126_s17 = sphi %s10158_s17, %s12269_s17   ;;  %s10122_s16 = sphi %s10156_s16, %s12268_s16   ;;  %s10118_s15 = sphi %s10154_s15, %s12267_s15  }
   0x3   : > { %s107_s20 = ssub.s32 %s10126_s17, %s10169_s19  ;;  %s110_s21 = sadd.s32 1, %s10122_s16 }
   0x4   : > { %p108_p0 = scmp.eq.s32.totalorder %s107_s20, 0  ;;  %p120_p1 = scmp.ne.s32.totalorder %s10122_s16, %s10118_s15 }
   0x5   : > { %p121_p2 = scmp.eq.s32.totalorder %s10167_s18, 1  ;;  %p8543_p3 = scmp.ge.s32.totalorder %s10126_s17, 1 }
   0x6   : > { %s10177_s22 = scalar_select %p108_p0, %s10122_s16, %s110_s21  }
   0x7   : > { %p10179_p4 = por %p121_p2, %p120_p1  ;;  %p162_p5 = scmp.lt.s32.totalorder %s10126_s17, 3 }
   0x9   : > { %p163_p6 = pnand %p8543_p3, %p162_p5 }
   0xb   : > { %166 = sbr.rel (%p163_p6) target bundleno = 8592 (0x2190), region = 36 }
  0x12   : > { %v208_v0 = vld [vmem:[%s12095_s1] sm:$0xff]  ;;  %v209_v1 = vld [vmem:[%s12095_s1 + $0x8] sm:$0xff]  ;;  %v210_v2 = vld [vmem:[%s12095_s1 + $0x10] sm:$0xff]  ;;  %p187_p7 = scmp.lt.s32.totalorder %s10167_s18, 1  ;;  %vm212_vm0 = vcmask 261120   ;;  %vm1024_vm1 = vcmask 130048  }
  0x13   : > { %v238_v3 = vand.u32 4294901760, %v208_v0  ;;  %v241_v4 = vand.u32 4294901760, %v209_v1  ;;  %v211_v5 = vld [vmem:[%s12095_s1 + $0x18] sm:$0xff]  ;;  %v244_v6 = vand.u32 4294901760, %v210_v2  ;;  %s184_s17 = sand.u32 1, %s10118_s15   ;;  %s8563_s5 = sshll.u32 (%p10179_p4), %s10167_s18, 4 }
  0x14   : > { %v247_v7 = vand.u32 4294901760, %v211_v5  ;;  %s188_s6 = scalar_select %p187_p7, %s10167_s18, 1 }
  0x15   : > { %v10197_v8 = vpack.c.bf16 %v241_v4, %v238_v3  ;;  %v10199_v9 = vsub.f32 %v208_v0, %v238_v3  ;;  %v10201_v10 = vsub.f32 %v209_v1, %v241_v4  ;;  %v10203_v11 = vsub.f32 %v210_v2, %v244_v6  ;;  %s10030_s20 = smul.u32 48, %s184_s17  ;;  %s8461_s8 = scalar_lea.vmem (%p10179_p4), %s12098_s4, %s8563_s5 }
  0x16   : > { %v10205_v12 = vpack.c.bf16 %v247_v7, %v244_v6  ;;  %s8562_s7 = sshll.u32 %s188_s6, 6  ;;  %v10207_v13 = vsub.f32 %v211_v5, %v247_v7 }
  0x17   : > { %9141 = vmatprep.subr.bf16.mxu0 %v10197_v8  ;;  %s10213_s10 = scalar_lea.vmem %s12094_s0, %s8562_s7  ;;  %v389_v14 = vand.u32 4294901760, %v10199_v9  ;;  %v396_v15 = vand.u32 4294901760, %v10201_v10  ;;  %v403_v19 = vand.u32 4294901760, %v10203_v11  ;;  %s11163_s15 = scalar_lea.vmem [#allocation2], %s10030_s20 }
  0x18   : > { %9143 = vmatpush3.bf16.msra.mxu0 %v10197_v8  ;;  %v200_v16 = vld [vmem:[%s10213_s10] sm:$0xff]  ;;  %v201_v17 = vld [vmem:[%s10213_s10 + $0x8] sm:$0xff]  ;;  %v202_v18 = vld [vmem:[%s10213_s10 + $0x10] sm:$0xff]  ;;  %v410_v20 = vand.u32 4294901760, %v10207_v13 }
  0x19   : > { %9145 = vmatprep.subr.bf16.mxu0 %v10205_v12  ;;  %v214_v21 = vsel %vm212_vm0, %v200_v16, 0  ;;  %v390_v22 = vsub.f32 %v10199_v9, %v389_v14  ;;  %v397_v23 = vsub.f32 %v10201_v10, %v396_v15  ;;  %v217_v24 = vsel %vm212_vm0, %v201_v17, 0  ;;  %v203_v25 = vld [vmem:[%s10213_s10 + $0x18] sm:$0xff]  ;;  %v204_v26 = vld [vmem:[%s10213_s10 + $0x20] sm:$0xff]  ;;  %v205_v39 = vld [vmem:[%s10213_s10 + $0x28] sm:$0xff] }
  0x1a   : > { %v10234_v27 = vand.u32 4294901760, %v214_v21  ;;  %v10236_v28 = vand.u32 4294901760, %v217_v24  ;;  %v220_v29 = vsel %vm212_vm0, %v202_v18, 0  ;;  %v223_v30 = vsel %vm212_vm0, %v203_v25, 0  ;;  %v206_v48 = vld [vmem:[%s10213_s10 + $0x30] sm:$0xff]  ;;  %v207_v61 = vld [vmem:[%s10213_s10 + $0x38] sm:$0xff] }
  0x1b   : > { %v391_v31 = vand.u32 4294901760, %v390_v22  ;;  %v398_v32 = vand.u32 4294901760, %v397_v23  ;;  %v10240_v33 = vand.u32 4294901760, %v220_v29  ;;  %v10242_v34 = vand.u32 4294901760, %v223_v30 }
  0x1c   : > { %9147 = vmatpush3.bf16.msra.mxu0 %v10205_v12  ;;  %v10246_v35 = vsub.f32 %v214_v21, %v10234_v27  ;;  %v10249_v36 = vsub.f32 %v217_v24, %v10236_v28  ;;  %v226_v37 = vsel %vm212_vm0, %v204_v26, 0  ;;  %v404_v38 = vsub.f32 %v10203_v11, %v403_v19 }
  0x1d   : > { %v9148_v40 = vpack.c.bf16 %v398_v32, %v391_v31  ;;  %v10257_v41 = vsub.f32 %v220_v29, %v10240_v33  ;;  %v10260_v42 = vsub.f32 %v223_v30, %v10242_v34  ;;  %v10262_v43 = vand.u32 4294901760, %v226_v37 }
  0x1e   : > { %12166 = vst [vmem:[#allocation3_spill] sm:$0xff] %v10246_v35  ;;  %12167 = vst [vmem:[#allocation4_spill] sm:$0xff] %v10249_v36  ;;  %v10265_v44 = vand.u32 4294901760, %v10246_v35  ;;  %v10268_v45 = vand.u32 4294901760, %v10249_v36  ;;  %v405_v46 = vand.u32 4294901760, %v404_v38  ;;  %v411_v47 = vsub.f32 %v10207_v13, %v410_v20 }
  0x1f   : > { %12168 = vst [vmem:[#allocation5_spill] sm:$0xff] %v10257_v41  ;;  %12169 = vst [vmem:[#allocation6_spill] sm:$0xff] %v10260_v42  ;;  %9149 = vmatprep.subr.bf16.mxu0 %v9148_v40  ;;  %v10275_v49 = vand.u32 4294901760, %v10257_v41  ;;  %v10278_v50 = vand.u32 4294901760, %v10260_v42  ;;  %v10281_v51 = vsub.f32 %v226_v37, %v10262_v43  ;;  %v229_v52 = vsel %vm212_vm0, %v205_v39, 0 }
  0x20   : > { %12170 = vst [vmem:[#allocation7_spill] sm:$0xff] %v10262_v43  ;;  %12171 = vst [vmem:[#allocation8_spill] sm:$0xff] %v10265_v44  ;;  %v309_v53 = vsub.f32 %v10246_v35, %v10265_v44  ;;  %v319_v54 = vsub.f32 %v10249_v36, %v10268_v45  ;;  %v412_v55 = vand.u32 4294901760, %v411_v47  ;;  %v10288_v56 = vand.u32 4294901760, %v229_v52 }
  0x21   : > { %12172 = vst [vmem:[#allocation9_spill] sm:$0xff] %v10268_v45  ;;  %12173 = vst [vmem:[#allocation10_spill] sm:$0xff] %v10275_v49  ;;  %v329_v57 = vsub.f32 %v10257_v41, %v10275_v49  ;;  %v339_v58 = vsub.f32 %v10260_v42, %v10278_v50  ;;  %v10295_v59 = vand.u32 4294901760, %v10281_v51  ;;  %v232_v60 = vsel %vm212_vm0, %v206_v48, 0 }
  0x22   : > { %12174 = vst [vmem:[#allocation11_spill] sm:$0xff] %v10278_v50  ;;  %12175 = vst [vmem:[#allocation12_spill] sm:$0xff] %v10281_v51  ;;  %v10299_v62 = vand.u32 4294901760, %v309_v53  ;;  %v10301_v63 = vand.u32 4294901760, %v319_v54  ;;  %v10304_v0 = vsub.f32 %v229_v52, %v10288_v56  ;;  %v9152_v3 = vpack.c.bf16 %v412_v55, %v405_v46  ;;  %v10431_v46 = vld [vmem:[%s12096_s2 + $0x18] sm:$0xff]  ;;  %v10438_v52 = vld [vmem:[%s12096_s2] sm:$0xff] }
  0x23   : > { %12176 = vst [vmem:[#allocation13_spill] sm:$0xff] %v10288_v56  ;;  %12177 = vst [vmem:[#allocation14_spill] sm:$0xff] %v10295_v59  ;;  %v10306_v1 = vand.u32 4294901760, %v329_v57  ;;  %v349_v2 = vsub.f32 %v10281_v51, %v10295_v59  ;;  %v10310_v4 = vand.u32 4294901760, %v232_v60  ;;  %v235_v6 = vsel %vm212_vm0, %v207_v61, 0  ;;  %v10443_v53 = vld [vmem:[%s12096_s2 + $0x10] sm:$0xff] }
  0x24   : > { %12178 = vst [vmem:[#allocation15_spill] sm:$0xff] %v10304_v0  ;;  %8788 = vmatprep.mubr.f32.mxu0 %v10299_v62  ;;  %v10314_v5 = vand.u32 4294901760, %v10304_v0  ;;  %v10318_v7 = vand.u32 4294901760, %v339_v58  ;;  %v10323_v17 = vand.u32 4294901760, %v235_v6  ;;  %v9156_v24 = vpack.c.bf16 %v10201_v10, %v10199_v9 }
  0x25   : > { %12179 = vst [vmem:[#allocation16_spill] sm:$0xff] %v10310_v4  ;;  %8789 = vmatmul.mubr.f32.vlgmr.msra.gmra.mrb[0].mxu0 %v10301_v63  ;;  %v10321_v16 = vsub.f32 %v232_v60, %v10310_v4  ;;  %v10326_v18 = vand.u32 4294901760, %v349_v2  ;;  %v9160_v37 = vpack.c.bf16 %v10207_v13, %v10203_v11  ;;  %v9172_v38 = vpack.c.bf16 %v396_v15, %v389_v14 }
  0x26   : > { %12180 = vst [vmem:[#allocation17_spill] sm:$0xff] %v10314_v5  ;;  %12182 = vst [vmem:[#allocation19_spill] sm:$0xff] %v10323_v17  ;;  %9151 = vmatpush3.bf16.msra.mxu0 %v9148_v40  ;;  %8791 = vmatprep.mubr.f32.mxu0 %v10306_v1  ;;  %v359_v21 = vsub.f32 %v10304_v0, %v10314_v5  ;;  %v10334_v23 = vsub.f32 %v235_v6, %v10323_v17  ;;  %v10426_v40 = vld [vmem:[%s12096_s2 + $0x8] sm:$0xff]  ;;  %v12101_v48 = vand.u32 4294901760, %v10431_v46  ;;  %v12103_v57 = vmov 0.0  }
  0x27   : > { %12181 = vst [vmem:[#allocation18_spill] sm:$0xff] %v10321_v16  ;;  %9153 = vmatprep.subr.bf16.mxu0 %v9152_v3  ;;  %v10331_v22 = vand.u32 4294901760, %v10321_v16  ;;  %v9176_v9 = vpack.c.bf16 %v410_v20, %v403_v19  ;;  %v12102_v47 = vand.u32 4294901760, %v10426_v40  ;;  %v12100_v54 = vand.u32 4294901760, %v10438_v52  ;;  %1534 = vmatprep.mubr.f32.mxu1 %v12103_v57 }
  0x28   : > { %12184 = vst [vmem:[#allocation21_spill] sm:$0xff] %v10334_v23  ;;  %v10339_v25 = vand.u32 4294901760, %v359_v21  ;;  %v10344_v29 = vand.u32 4294901760, %v10334_v23  ;;  %v12099_v55 = vand.u32 4294901760, %v10443_v53 }
  0x29   : > { %12183 = vst [vmem:[#allocation20_spill] sm:$0xff] %v10331_v22  ;;  %8792 = vmatmul.mubr.f32.gmra.mrb[2].mxu0 %v10318_v7  ;;  %v369_v26 = vsub.f32 %v10321_v16, %v10331_v22  ;;  %v10453_v58 = vpack.c.bf16 %v12101_v48, %v12102_v47 }
  0x2a   : > { %12185 = vst [vmem:[#allocation22_spill] sm:$0xff] %v10344_v29  ;;  %8794 = vmatprep.mubr.f32.mxu0 %v10326_v18  ;;  %9155 = vmatpush3.bf16.msra.mxu0 %v9152_v3  ;;  %v379_v31 = vsub.f32 %v10334_v23, %v10344_v29  ;;  %v10459_v60 = vpack.c.bf16 %v12099_v55, %v12100_v54 }
  0x2b   : > { %v10347_v30 = vand.u32 4294901760, %v369_v26  ;;  %9157 = vmatprep.subr.bf16.mxu0 %v9156_v24 }
  0x2c   : > { %v10352_v32 = vand.u32 4294901760, %v379_v31 }
  0x2d   : > { %8795 = vmatmul.mubr.f32.gmra.mrb[4].mxu0 %v10339_v25 }
  0x2e   : > { %8797 = vmatprep.mubr.f32.mxu0 %v10347_v30 }
  0x31   : > { %8798 = vmatmul.mubr.f32.gmra.mrb[6].mxu0 %v10352_v32 }
  0x32   : > { %8808 = vmatprep.mubr.f32.mxu0 %v10234_v27 }
  0x35   : > { %8809 = vmatmul.mubr.f32.vlgmr.msra.gmra.mrb[0].mxu0 %v10236_v28 }
  0x36   : > { %9159 = vmatpush3.bf16.msra.mxu0 %v9156_v24  ;;  %8811 = vmatprep.mubr.f32.mxu0 %v10240_v33 }
  0x37   : > { %9161 = vmatprep.subr.bf16.mxu0 %v9160_v37 }
  0x39   : > { %8812 = vmatmul.mubr.f32.gmra.mrb[2].mxu0 %v10242_v34 }
  0x3a   : > { %8814 = vmatprep.mubr.f32.mxu0 %v10262_v43  ;;  %9163 = vmatpush3.bf16.msra.mxu0 %v9160_v37 }
  0x3b   : > { %9165 = vmatprep.subr.bf16.mxu0 %v10197_v8 }
  0x3d   : > { %8815 = vmatmul.mubr.f32.gmra.mrb[4].mxu0 %v10288_v56 }
  0x3e   : > { %8817 = vmatprep.mubr.f32.mxu0 %v10310_v4 }
  0x41   : > { %8818 = vmatmul.mubr.f32.gmra.mrb[6].mxu0 %v10323_v17 }
  0x42   : > { %8828 = vmatprep.mubr.f32.mxu0 %v10246_v35 }
  0x45   : > { %8829 = vmatmul.mubr.f32.vlgmr.msra.gmra.mrb[0].mxu0 %v10249_v36 }
  0x46   : > { %9167 = vmatpush3.bf16.msra.mxu0 %v10197_v8  ;;  %8831 = vmatprep.mubr.f32.mxu0 %v10257_v41 }
  0x47   : > { %9169 = vmatprep.subr.bf16.mxu0 %v10205_v12 }
  0x49   : > { %8832 = vmatmul.mubr.f32.gmra.mrb[2].mxu0 %v10260_v42 }
  0x4a   : > { %8834 = vmatprep.mubr.f32.mxu0 %v10281_v51  ;;  %9171 = vmatpush3.bf16.msra.mxu0 %v10205_v12 }
  0x4b   : > { %9173 = vmatprep.subr.bf16.mxu0 %v9172_v38 }
  0x4d   : > { %8835 = vmatmul.mubr.f32.gmra.mrb[4].mxu0 %v10304_v0 }
  0x4e   : > { %8837 = vmatprep.mubr.f32.mxu0 %v10321_v16 }
  0x51   : > { %8838 = vmatmul.mubr.f32.gmra.mrb[6].mxu0 %v10334_v23 }
  0x52   : > { %8848 = vmatprep.mubr.f32.mxu0 %v10265_v44 }
  0x55   : > { %8849 = vmatmul.mubr.f32.vlgmr.msra.gmra.mrb[0].mxu0 %v10268_v45 }
  0x56   : > { %9175 = vmatpush3.bf16.msra.mxu0 %v9172_v38  ;;  %8851 = vmatprep.mubr.f32.mxu0 %v10275_v49 }
  0x57   : > { %9177 = vmatprep.subr.bf16.mxu0 %v9176_v9 }
  0x59   : > { %8852 = vmatmul.mubr.f32.gmra.mrb[2].mxu0 %v10278_v50 }
  0x5a   : > { %8854 = vmatprep.mubr.f32.mxu0 %v10295_v59  ;;  %9179 = vmatpush3.bf16.msra.mxu0 %v9176_v9 }
  0x5b   : > { %9181 = vmatprep.subr.bf16.mxu0 %v10197_v8 }
  0x5d   : > { %8855 = vmatmul.mubr.f32.gmra.mrb[4].mxu0 %v10314_v5 }
  0x5e   : > { %8857 = vmatprep.mubr.f32.mxu0 %v10331_v22 }
  0x61   : > { %8858 = vmatmul.mubr.f32.gmra.mrb[6].mxu0 %v10344_v29 }
  0x62   : > { %8868 = vmatprep.mubr.f32.mxu0 %v10234_v27 }
  0x65   : > { %8869 = vmatmul.mubr.f32.vlgmr.msra.gmra.mrb[0].mxu0 %v10236_v28 }
  0x66   : > { %9183 = vmatpush3.bf16.msra.mxu0 %v10197_v8  ;;  %8871 = vmatprep.mubr.f32.mxu0 %v10240_v33 }
  0x67   : > { %9185 = vmatprep.subr.bf16.mxu0 %v10205_v12 }
  0x69   : > { %8872 = vmatmul.mubr.f32.gmra.mrb[2].mxu0 %v10242_v34 }
  0x6a   : > { %8874 = vmatprep.mubr.f32.mxu0 %v10262_v43  ;;  %9187 = vmatpush3.bf16.msra.mxu0 %v10205_v12 }
  0x6b   : > { %9189 = vmatprep.subr.bf16.mxu0 %v10453_v58 }
  0x6d   : > { %8875 = vmatmul.mubr.f32.gmra.mrb[4].mxu0 %v10288_v56 }
  0x6e   : > { %8877 = vmatprep.mubr.f32.mxu0 %v10310_v4 }
  0x71   : > { %8878 = vmatmul.mubr.f32.gmra.mrb[6].mxu0 %v10323_v17 }
  0x72   : > { %8888 = vmatprep.mubr.f32.mxu0 %v10234_v27 }
  0x75   : > { %8889 = vmatmul.mubr.f32.vlgmr.msra.gmra.mrb[0].mxu0 %v10236_v28 }
  0x76   : > { %8891 = vmatprep.mubr.f32.mxu0 %v10240_v33  ;;  %9191 = vmatpush1.bf16.msra.mxu0 %v10459_v60 }
  0x79   : > { %8892 = vmatmul.mubr.f32.gmra.mrb[2].mxu0 %v10242_v34 }
  0x7a   : > { %8894 = vmatprep.mubr.f32.mxu0 %v10262_v43 }
  0x7d   : > { %8895 = vmatmul.mubr.f32.gmra.mrb[4].mxu0 %v10288_v56 }
  0x7e   : > { %8897 = vmatprep.mubr.f32.mxu0 %v10310_v4 }
  0x81   : > { %8898 = vmatmul.mubr.f32.gmra.mrb[6].mxu0 %v10323_v17 }
  0x82   : > { %1340 = vmatprep.mubr.f32.mxu0 %v12103_v57 }
 0x148   : > { %v8890_v8 = vpop.f32.mrb[0].mxu0 }
 0x149   : > { %v977_v10 = vpop.f32.mrb[1].mxu0 }
 0x14a   : > { %v1023_v11 = vmul.f32 %v977_v10, %v977_v10 }
 0x14c   : > { %v8893_v12 = vpop.f32.mrb[2].mxu0  ;;  %v1025_v13 = vsel %vm1024_vm1, %v1023_v11, 0.0 }
 0x14d   : > { %1026 = vadd.xlane.f32.xlu0 %v1025_v13  ;;  %v989_v14 = vpop.f32.mrb[3].mxu0 }
 0x150   : > { %v10415_v15 = vpop.f32.mrb[4].mxu0 }
 0x151   : > { %v10417_v19 = vpop.f32.mrb[5].mxu0 }
 0x154   : > { %v10419_v20 = vpop.f32.mrb[6].mxu0 }
 0x155   : > { %v10421_v39 = vpop.f32.mrb[7].mxu0 }
 0x1da   : > { %v1027_v61 = vpop.xlane.xlu0 %1026 }
 0x1db   : > { %v1028_v2 = vadd.f32 1e-12, %v1027_v61 }
 0x1dd   : > { %10056 = vrsqrt.f32 %v1028_v2 }
 0x1e7   : > { %v10057_v3 = vpop.eup %10056 }
 0x1e8   : > { %v10463_v6 = vmul.f32 %v10057_v3, %v977_v10 }
 0x1ea   : > { %v1031_v21 = vmul.f32 %v8890_v8, %v10463_v6  ;;  %v1249_v24 = vsel %vm1024_vm1, %v10463_v6, 0 }
 0x1eb   : > { %v10468_v26 = vand.u32 4294901760, %v1249_v24 }
 0x1ec   : > { %v1032_v31 = vsel %vm1024_vm1, %v1031_v21, 0.0  ;;  %v1044_v21 = vmul.f32 %v10463_v6, %v989_v14 }
 0x1ed   : > { %1033 = vadd.xlane.f32.xlu0 %v1032_v31  ;;  %v10472_v37 = vsub.f32 %v1249_v24, %v10468_v26  ;;  %v1063_v31 = vmul.f32 %v8893_v12, %v10463_v6 }
 0x1ee   : > { %v1045_v24 = vsel %vm1024_vm1, %v1044_v21, 0.0 }
 0x1ef   : > { %v10475_v38 = vand.u32 4294901760, %v10472_v37 }
 0x1f1   : > { %v1344_v9 = vsub.f32 %v10472_v37, %v10475_v38 }
 0x1f3   : > { %v10479_v10 = vand.u32 4294901760, %v1344_v9  ;;  %v1064_v9 = vsel %vm1024_vm1, %v1063_v31, 0.0 }
 0x1f5   : > { %1346 = vmatmul.mubr.f32.vlgmr.msra.gmra.mrb[8].mxu0 %v10479_v10 }
 0x1f6   : > { %1351 = vmatprep.mubr.f32.mxu0 %v12103_v57 }
 0x27a   : > { %v1034_v11 = vpop.xlane.xlu0 %1033 }
 0x27b   : > { %v1035_v13 = vmul.f32 %v1034_v11, %v10463_v6 }
 0x27d   : > { %v1036_v61 = vsub.f32 %v8890_v8, %v1035_v13 }
 0x27f   : > { %v1037_v2 = vmul.f32 %v1036_v61, %v1036_v61 }
 0x281   : > { %v1038_v3 = vsel %vm1024_vm1, %v1037_v2, 0.0 }
 0x282   : > { %1039 = vadd.xlane.f32.xlu1 %v1038_v3 }
 0x286   : > { %1046 = vadd.xlane.f32.xlu1 %v1045_v24 }
 0x28a   : > { %1065 = vadd.xlane.f32.xlu1 %v1064_v9 }
 0x30f   : > { %v1040_v55 = vpop.xlane.xlu1 %1039 }
 0x310   : > { %v1041_v54 = vadd.f32 1e-12, %v1040_v55 }
 0x312   : > { %10058 = vrsqrt.f32 %v1041_v54 }
 0x313   : > { %v1047_v48 = vpop.xlane.xlu1 %1046 }
 0x314   : > { %v1048_v8 = vmul.f32 %v1047_v48, %v10463_v6 }
 0x316   : > { %v1049_v3 = vsub.f32 %v989_v14, %v1048_v8 }
 0x317   : > { %v1066_v11 = vpop.xlane.xlu1 %1065 }
 0x318   : > { %v1067_v13 = vmul.f32 %v1066_v11, %v10463_v6  ;;  %v12186_v11 = vmov 0.0  }
 0x31a   : > { %v1068_v21 = vsub.f32 %v8893_v12, %v1067_v13 }
 0x31c   : > { %v10059_v2 = vpop.eup %10058 }
 0x31d   : > { %v10491_v47 = vmul.f32 %v10059_v2, %v1036_v61 }
 0x31f   : > { %v1050_v57 = vmul.f32 %v1049_v3, %v10491_v47  ;;  %v1069_v24 = vmul.f32 %v1068_v21, %v10491_v47  ;;  %v1252_v31 = vsel %vm1024_vm1, %v10491_v47, 0 }
 0x320   : > { %v10497_v55 = vand.u32 4294901760, %v1252_v31 }
 0x321   : > { %v1051_v54 = vsel %vm1024_vm1, %v1050_v57, 0.0  ;;  %v1070_v48 = vsel %vm1024_vm1, %v1069_v24, 0.0 }
 0x322   : > { %1052 = vadd.xlane.f32.xlu0 %v1051_v54  ;;  %1071 = vadd.xlane.f32.xlu1 %v1070_v48  ;;  %v10502_v61 = vsub.f32 %v1252_v31, %v10497_v55  ;;  %v1088_v31 = vmul.f32 %v10463_v6, %v10417_v19 }
 0x324   : > { %v10505_v12 = vand.u32 4294901760, %v10502_v61  ;;  %v1089_v54 = vsel %vm1024_vm1, %v1088_v31, 0.0 }
 0x326   : > { %v1355_v14 = vsub.f32 %v10502_v61, %v10505_v12 }
 0x328   : > { %v10509_v9 = vand.u32 4294901760, %v1355_v14 }
 0x32a   : > { %1357 = vmatmul.mubr.f32.gmra.mrb[10].mxu0 %v10509_v9 }
 0x32b   : > { %1362 = vmatprep.mubr.f32.mxu0 %v12186_v11 }
 0x3af   : > { %v1053_v57 = vpop.xlane.xlu0 %1052  ;;  %v1072_v5 = vpop.xlane.xlu1 %1071 }
 0x3b0   : > { %v1054_v8 = vmul.f32 %v1053_v57, %v10491_v47 }
 0x3b2   : > { %v1055_v13 = vsub.f32 %v1049_v3, %v1054_v8  ;;  %v1073_v8 = vmul.f32 %v1072_v5, %v10491_v47 }
 0x3b4   : > { %v1056_v2 = vmul.f32 %v1055_v13, %v1055_v13  ;;  %v1074_v59 = vsub.f32 %v1068_v21, %v1073_v8 }
 0x3b6   : > { %v1057_v24 = vsel %vm1024_vm1, %v1056_v2, 0.0 }
 0x3b7   : > { %1058 = vadd.xlane.f32.xlu0 %v1057_v24 }
 0x3bb   : > { %1090 = vadd.xlane.f32.xlu0 %v1089_v54 }
 0x444   : > { %v1059_v48 = vpop.xlane.xlu0 %1058 }
 0x445   : > { %v1060_v14 = vadd.f32 1e-12, %v1059_v48 }
 0x447   : > { %10060 = vrsqrt.f32 %v1060_v14 }
 0x448   : > { %v1091_v29 = vpop.xlane.xlu0 %1090 }
 0x449   : > { %v1092_v22 = vmul.f32 %v1091_v29, %v10463_v6 }
 0x44b   : > { %v1093_v57 = vsub.f32 %v10417_v19, %v1092_v22  ;;  %v1119_v19 = vmul.f32 %v10415_v15, %v10463_v6 }
 0x44d   : > { %v1094_v3 = vmul.f32 %v1093_v57, %v10491_v47 }
 0x44f   : > { %v1095_v2 = vsel %vm1024_vm1, %v1094_v3, 0.0 }
 0x450   : > { %1096 = vadd.xlane.f32.xlu0 %v1095_v2 }
 0x451   : > { %v10061_v24 = vpop.eup %10060 }
 0x452   : > { %v10523_v31 = vmul.f32 %v10061_v24, %v1055_v13  ;;  %v1120_v13 = vsel %vm1024_vm1, %v1119_v19, 0.0  ;;  %v1156_v19 = vmul.f32 %v10463_v6, %v10421_v39 }
 0x454   : > { %v1075_v54 = vmul.f32 %v1074_v59, %v10523_v31  ;;  %v1255_v48 = vsel %vm1024_vm1, %v10523_v31, 0  ;;  %v1157_v49 = vsel %vm1024_vm1, %v1156_v19, 0.0 }
 0x455   : > { %v10528_v29 = vand.u32 4294901760, %v1255_v48 }
 0x456   : > { %v1076_v22 = vsel %vm1024_vm1, %v1075_v54, 0.0 }
 0x457   : > { %1077 = vadd.xlane.f32.xlu1 %v1076_v22  ;;  %v10534_v5 = vsub.f32 %v1255_v48, %v10528_v29 }
 0x459   : > { %v10537_v21 = vand.u32 4294901760, %v10534_v5 }
 0x45b   : > { %1121 = vadd.xlane.f32.xlu1 %v1120_v13  ;;  %v1366_v14 = vsub.f32 %v10534_v5, %v10537_v21 }
 0x45d   : > { %v10542_v3 = vand.u32 4294901760, %v1366_v14 }
 0x45f   : > { %1368 = vmatmul.mubr.f32.gmra.mrb[12].mxu0 %v10542_v3 }
 0x460   : > { %1373 = vmatprep.mubr.f32.mxu0 %v12186_v11 }
 0x4dd   : > { %v1097_v8 = vpop.xlane.xlu0 %1096 }
 0x4de   : > { %v1098_v2 = vmul.f32 %v1097_v8, %v10491_v47 }
 0x4e0   : > { %v1099_v24 = vsub.f32 %v1093_v57, %v1098_v2 }
 0x4e2   : > { %v1100_v54 = vmul.f32 %v1099_v24, %v10523_v31 }
 0x4e4   : > { %v1078_v48 = vpop.xlane.xlu1 %1077  ;;  %v1101_v22 = vsel %vm1024_vm1, %v1100_v54, 0.0 }
 0x4e5   : > { %v1079_v13 = vmul.f32 %v1078_v48, %v10523_v31  ;;  %1102 = vadd.xlane.f32.xlu1 %v1101_v22  ;;  %v12187_v48 = vand.u32 4294901760, %v10426_v40  ;;  %v12188_v22 = vand.u32 4294901760, %v10431_v46 }
 0x4e7   : > { %v1080_v14 = vsub.f32 %v1074_v59, %v1079_v13  ;;  %v10561_v59 = vsub.f32 %v10426_v40, %v12187_v48 }
 0x4e8   : > { %v1122_v50 = vpop.xlane.xlu1 %1121 }
 0x4e9   : > { %v1123_v45 = vmul.f32 %v1122_v50, %v10463_v6  ;;  %1158 = vadd.xlane.f32.xlu1 %v1157_v49  ;;  %v1081_v8 = vmul.f32 %v1080_v14, %v1080_v14  ;;  %v10566_v49 = vsub.f32 %v10431_v46, %v12188_v22 }
 0x4eb   : > { %v1124_v57 = vsub.f32 %v10415_v15, %v1123_v45  ;;  %v1082_v2 = vsel %vm1024_vm1, %v1081_v8, 0.0  ;;  %v12189_v45 = vand.u32 4294901760, %v10438_v52  ;;  %v12190_v15 = vand.u32 4294901760, %v10443_v53 }
 0x4ec   : > { %1083 = vadd.xlane.f32.xlu0 %v1082_v2  ;;  %v12124_v40 = vand.u32 4294901760, %v10566_v49 }
 0x4ed   : > { %v1125_v54 = vmul.f32 %v1124_v57, %v10491_v47  ;;  %v10571_v50 = vsub.f32 %v10438_v52, %v12189_v45  ;;  %v10576_v19 = vsub.f32 %v10443_v53, %v12190_v15 }
 0x4ee   : > { %v1444_v52 = vsub.f32 %v10566_v49, %v12124_v40 }
 0x4ef   : > { %v1126_v44 = vsel %vm1024_vm1, %v1125_v54, 0.0  ;;  %v12123_v13 = vand.u32 4294901760, %v10571_v50  ;;  %v12126_v8 = vand.u32 4294901760, %v10576_v19 }
 0x4f0   : > { %1127 = vadd.xlane.f32.xlu0 %v1126_v44  ;;  %v12125_v44 = vand.u32 4294901760, %v10561_v59  ;;  %v1445_v48 = vand.u32 4294901760, %v1444_v52 }
 0x4f1   : > { %v1438_v53 = vsub.f32 %v10571_v50, %v12123_v13  ;;  %v1450_v2 = vsub.f32 %v10576_v19, %v12126_v8  ;;  %v1199_v8 = vmul.f32 %v10419_v20, %v10463_v6 }
 0x4f2   : > { %v1432_v46 = vsub.f32 %v10561_v59, %v12125_v44 }
 0x4f3   : > { %v1439_v22 = vand.u32 4294901760, %v1438_v53  ;;  %v1451_v45 = vand.u32 4294901760, %v1450_v2 }
 0x4f4   : > { %v1433_v54 = vand.u32 4294901760, %v1432_v46 }
 0x4f5   : > { %v10596_v23 = vpack.c.bf16 %v1451_v45, %v1439_v22 }
 0x4f6   : > { %v10594_v15 = vpack.c.bf16 %v1445_v48, %v1433_v54 }
 0x4f7   : > { %12192 = vst [vmem:[#allocation24_spill] sm:$0xff] %v10596_v23 }
 0x4f8   : > { %12191 = vst [vmem:[#allocation23_spill] sm:$0xff] %v10594_v15  ;;  %9428 = vmatprep.subr.bf16.mxu1 %v10594_v15  ;;  %9193 = vmatprep.subr.bf16.mxu0 %v10594_v15 }
 0x4f9   : > { %9429 = vmatpush1.bf16.msra.mxu1 %v10596_v23  ;;  %9195 = vmatpush1.bf16.msra.mxu0 %v10596_v23 }
 0x572   : > { %v1103_v40 = vpop.xlane.xlu1 %1102 }
 0x573   : > { %v1104_v48 = vmul.f32 %v1103_v40, %v10523_v31 }
 0x576   : > { %v1159_v53 = vpop.xlane.xlu1 %1158 }
 0x577   : > { %v1160_v22 = vmul.f32 %v1159_v53, %v10463_v6 }
 0x579   : > { %v1084_v13 = vpop.xlane.xlu0 %1083 }
 0x57a   : > { %v1085_v44 = vadd.f32 1e-12, %v1084_v13  ;;  %v1105_v13 = vsub.f32 %v1099_v24, %v1104_v48 }
 0x57c   : > { %10062 = vrsqrt.f32 %v1085_v44  ;;  %v1161_v44 = vsub.f32 %v10421_v39, %v1160_v22 }
 0x57d   : > { %v1128_v46 = vpop.xlane.xlu0 %1127 }
 0x57e   : > { %v1129_v52 = vmul.f32 %v1128_v46, %v10491_v47 }
 0x580   : > { %v1130_v2 = vsub.f32 %v1124_v57, %v1129_v52  ;;  %v1200_v57 = vsel %vm1024_vm1, %v1199_v8, 0.0 }
 0x582   : > { %v1131_v54 = vmul.f32 %v1130_v2, %v10523_v31 }
 0x584   : > { %v1132_v45 = vsel %vm1024_vm1, %v1131_v54, 0.0  ;;  %v1162_v54 = vmul.f32 %v1161_v44, %v10491_v47 }
 0x585   : > { %1133 = vadd.xlane.f32.xlu1 %v1132_v45 }
 0x586   : > { %v10063_v23 = vpop.eup %10062  ;;  %v1163_v24 = vsel %vm1024_vm1, %v1162_v54, 0.0 }
 0x587   : > { %v10610_v15 = vmul.f32 %v10063_v23, %v1080_v14 }
 0x589   : > { %1201 = vadd.xlane.f32.xlu1 %v1200_v57  ;;  %v1258_v40 = vsel %vm1024_vm1, %v10610_v15, 0  ;;  %v1106_v46 = vmul.f32 %v1105_v13, %v10610_v15 }
 0x58a   : > { %v10616_v52 = vand.u32 4294901760, %v1258_v40 }
 0x58b   : > { %v1107_v53 = vsel %vm1024_vm1, %v1106_v46, 0.0 }
 0x58c   : > { %1536 = vmatmul.mubr.f32.vlgmr.msra.gmra.mrb[0].mxu1 %v10616_v52  ;;  %1108 = vadd.xlane.f32.xlu0 %v1107_v53  ;;  %v10622_v23 = vsub.f32 %v1258_v40, %v10616_v52 }
 0x58d   : > { %1541 = vmatprep.mubr.f32.mxu1 %v12186_v11 }
 0x58e   : > { %v10626_v39 = vand.u32 4294901760, %v10622_v23 }
 0x590   : > { %1164 = vadd.xlane.f32.xlu0 %v1163_v24  ;;  %v1377_v14 = vsub.f32 %v10622_v23, %v10626_v39 }
 0x592   : > { %v10631_v8 = vand.u32 4294901760, %v1377_v14 }
 0x594   : > { %1379 = vmatmul.mubr.f32.gmra.mrb[14].mxu0 %v10631_v8 }
 0x595   : > { %1384 = vmatprep.mubr.f32.mxu0 %v12186_v11 }
 0x612   : > { %v1134_v48 = vpop.xlane.xlu1 %1133 }
 0x613   : > { %v1135_v22 = vmul.f32 %v1134_v48, %v10523_v31 }
 0x615   : > { %v1136_v45 = vsub.f32 %v1130_v2, %v1135_v22 }
 0x616   : > { %v1202_v57 = vpop.xlane.xlu1 %1201 }
 0x617   : > { %v1203_v40 = vmul.f32 %v1202_v57, %v10463_v6  ;;  %v1137_v46 = vmul.f32 %v1136_v45, %v10610_v15 }
 0x619   : > { %v1204_v53 = vsub.f32 %v10419_v20, %v1203_v40  ;;  %v1109_v54 = vpop.xlane.xlu0 %1108  ;;  %v1138_v24 = vsel %vm1024_vm1, %v1137_v46, 0.0 }
 0x61a   : > { %v1110_v14 = vmul.f32 %v1109_v54, %v10610_v15  ;;  %1139 = vadd.xlane.f32.xlu1 %v1138_v24 }
 0x61b   : > { %v1205_v16 = vmul.f32 %v1204_v53, %v10491_v47 }
 0x61c   : > { %v1111_v0 = vsub.f32 %v1105_v13, %v1110_v14 }
 0x61d   : > { %v1165_v51 = vpop.xlane.xlu0 %1164  ;;  %v1206_v48 = vsel %vm1024_vm1, %v1205_v16, 0.0 }
 0x61e   : > { %v1166_v2 = vmul.f32 %v1165_v51, %v10491_v47  ;;  %1207 = vadd.xlane.f32.xlu1 %v1206_v48  ;;  %v1112_v6 = vmul.f32 %v1111_v0, %v1111_v0 }
 0x620   : > { %v1167_v22 = vsub.f32 %v1161_v44, %v1166_v2  ;;  %v1113_v57 = vsel %vm1024_vm1, %v1112_v6, 0.0 }
 0x621   : > { %1114 = vadd.xlane.f32.xlu0 %v1113_v57 }
 0x622   : > { %v1168_v20 = vmul.f32 %v1167_v22, %v10523_v31 }
 0x624   : > { %v1169_v40 = vsel %vm1024_vm1, %v1168_v20, 0.0 }
 0x625   : > { %1170 = vadd.xlane.f32.xlu0 %v1169_v40 }
 0x667   : > { %v10647_v46 = vpop.f32.mrb[14].mxu0 }
 0x668   : > { %12193 = vst [vmem:[#allocation25_spill] sm:$0xff] %v10647_v46  ;;  %v10649_v54 = vpop.f32.mrb[15].mxu0 }
 0x669   : > { %12194 = vst [vmem:[#allocation26_spill] sm:$0xff] %v10649_v54 }
 0x6a7   : > { %v1140_v24 = vpop.xlane.xlu1 %1139 }
 0x6a8   : > { %v1141_v6 = vmul.f32 %v1140_v24, %v10610_v15 }
 0x6aa   : > { %v1142_v54 = vsub.f32 %v1136_v45, %v1141_v6 }
 0x6ab   : > { %v1208_v44 = vpop.xlane.xlu1 %1207 }
 0x6ac   : > { %v1209_v57 = vmul.f32 %v1208_v44, %v10491_v47 }
 0x6ae   : > { %v1115_v13 = vpop.xlane.xlu0 %1114  ;;  %v1210_v46 = vsub.f32 %v1204_v53, %v1209_v57 }
 0x6af   : > { %v1116_v16 = vadd.f32 1e-12, %v1115_v13 }
 0x6b0   : > { %v1211_v24 = vmul.f32 %v1210_v46, %v10523_v31 }
 0x6b1   : > { %10064 = vrsqrt.f32 %v1116_v16 }
 0x6b2   : > { %v1171_v51 = vpop.xlane.xlu0 %1170  ;;  %v1212_v45 = vsel %vm1024_vm1, %v1211_v24, 0.0 }
 0x6b3   : > { %v1172_v14 = vmul.f32 %v1171_v51, %v10523_v31 }
 0x6b5   : > { %v1173_v48 = vsub.f32 %v1167_v22, %v1172_v14 }
 0x6b7   : > { %v1174_v2 = vmul.f32 %v1173_v48, %v10610_v15 }
 0x6b9   : > { %v1175_v20 = vsel %vm1024_vm1, %v1174_v2, 0.0 }
 0x6ba   : > { %1176 = vadd.xlane.f32.xlu1 %v1175_v20 }
 0x6bb   : > { %v10065_v40 = vpop.eup %10064 }
 0x6bc   : > { %v10656_v42 = vmul.f32 %v10065_v40, %v1111_v0 }
 0x6be   : > { %v1261_v13 = vsel %vm1024_vm1, %v10656_v42, 0  ;;  %v1143_v16 = vmul.f32 %v1142_v54, %v10656_v42 }
 0x6bf   : > { %v10661_v22 = vand.u32 4294901760, %v1261_v13 }
 0x6c0   : > { %v1144_v51 = vsel %vm1024_vm1, %v1143_v16, 0.0 }
 0x6c1   : > { %1543 = vmatmul.mubr.f32.gmra.mrb[2].mxu1 %v10661_v22  ;;  %1145 = vadd.xlane.f32.xlu0 %v1144_v51  ;;  %v10667_v47 = vsub.f32 %v1261_v13, %v10661_v22 }
 0x6c2   : > { %1548 = vmatprep.mubr.f32.mxu1 %v12186_v11 }
 0x6c3   : > { %v10671_v0 = vand.u32 4294901760, %v10667_v47 }
 0x6c5   : > { %1213 = vadd.xlane.f32.xlu0 %v1212_v45  ;;  %v1388_v53 = vsub.f32 %v10667_v47, %v10671_v0 }
 0x6c7   : > { %v10676_v14 = vand.u32 4294901760, %v1388_v53 }
 0x6c9   : > { %1390 = vmatmul.mubr.f32.gmra.mrb[16].mxu0 %v10676_v14 }
 0x6ca   : > { %1395 = vmatprep.mubr.f32.mxu0 %v12186_v11 }
 0x747   : > { %v1177_v44 = vpop.xlane.xlu1 %1176 }
 0x748   : > { %v1178_v2 = vmul.f32 %v1177_v44, %v10610_v15 }
 0x74a   : > { %v1179_v6 = vsub.f32 %v1173_v48, %v1178_v2 }
 0x74c   : > { %v1180_v57 = vmul.f32 %v1179_v6, %v10656_v42 }
 0x74e   : > { %v1146_v20 = vpop.xlane.xlu0 %1145  ;;  %v1181_v40 = vsel %vm1024_vm1, %v1180_v57, 0.0 }
 0x74f   : > { %v1147_v13 = vmul.f32 %v1146_v20, %v10656_v42  ;;  %1182 = vadd.xlane.f32.xlu0 %v1181_v40 }
 0x751   : > { %v1148_v16 = vsub.f32 %v1142_v54, %v1147_v13 }
 0x752   : > { %v1214_v51 = vpop.xlane.xlu0 %1213 }
 0x753   : > { %v1215_v24 = vmul.f32 %v1214_v51, %v10523_v31  ;;  %v1149_v45 = vmul.f32 %v1148_v16, %v1148_v16 }
 0x755   : > { %v1216_v53 = vsub.f32 %v1210_v46, %v1215_v24  ;;  %v1150_v41 = vsel %vm1024_vm1, %v1149_v45, 0.0 }
 0x756   : > { %1151 = vadd.xlane.f32.xlu1 %v1150_v41 }
 0x757   : > { %v1217_v44 = vmul.f32 %v1216_v53, %v10610_v15 }
 0x759   : > { %v1218_v48 = vsel %vm1024_vm1, %v1217_v44, 0.0 }
 0x75a   : > { %1219 = vadd.xlane.f32.xlu1 %v1218_v48 }
 0x79c   : > { %v10688_v2 = vpop.f32.mrb[16].mxu0 }
 0x79d   : > { %12195 = vst [vmem:[#allocation27_spill] sm:$0xff] %v10688_v2  ;;  %v10690_v57 = vpop.f32.mrb[17].mxu0 }
 0x79e   : > { %12196 = vst [vmem:[#allocation28_spill] sm:$0xff] %v10690_v57 }
 0x7dc   : > { %v1183_v13 = vpop.xlane.xlu0 %1182 }
 0x7dd   : > { %v1184_v41 = vmul.f32 %v1183_v13, %v10656_v42 }
 0x7df   : > { %v1185_v44 = vsub.f32 %v1179_v6, %v1184_v41 }
 0x7e3   : > { %v1152_v20 = vpop.xlane.xlu1 %1151 }
 0x7e4   : > { %v1153_v40 = vadd.f32 1e-12, %v1152_v20 }
 0x7e6   : > { %10066 = vrsqrt.f32 %v1153_v40 }
 0x7e7   : > { %v1220_v54 = vpop.xlane.xlu1 %1219 }
 0x7e8   : > { %v1221_v31 = vmul.f32 %v1220_v54, %v10610_v15 }
 0x7ea   : > { %v1222_v46 = vsub.f32 %v1216_v53, %v1221_v31 }
 0x7ec   : > { %v1223_v51 = vmul.f32 %v1222_v46, %v10656_v42 }
 0x7ee   : > { %v1224_v24 = vsel %vm1024_vm1, %v1223_v51, 0.0 }
 0x7ef   : > { %1225 = vadd.xlane.f32.xlu1 %v1224_v24 }
 0x7f0   : > { %v10067_v45 = vpop.eup %10066 }
 0x7f1   : > { %v1155_v48 = vmul.f32 %v10067_v45, %v1148_v16 }
 0x7f3   : > { %v1264_v57 = vsel %vm1024_vm1, %v1155_v48, 0  ;;  %v1186_v2 = vmul.f32 %v1185_v44, %v1155_v48 }
 0x7f4   : > { %v10697_v20 = vand.u32 4294901760, %v1264_v57 }
 0x7f5   : > { %v1187_v40 = vsel %vm1024_vm1, %v1186_v2, 0.0 }
 0x7f6   : > { %1550 = vmatmul.mubr.f32.gmra.mrb[4].mxu1 %v10697_v20  ;;  %1188 = vadd.xlane.f32.xlu0 %v1187_v40  ;;  %v10702_v15 = vsub.f32 %v1264_v57, %v10697_v20 }
 0x7f7   : > { %1555 = vmatprep.mubr.f32.mxu1 %v12186_v11 }
 0x7f8   : > { %v10706_v53 = vand.u32 4294901760, %v10702_v15 }
 0x7fa   : > { %v1399_v6 = vsub.f32 %v10702_v15, %v10706_v53 }
 0x7fc   : > { %v10710_v16 = vand.u32 4294901760, %v1399_v6 }
 0x7fe   : > { %1401 = vmatmul.mubr.f32.gmra.mrb[18].mxu0 %v10710_v16 }
 0x7ff   : > { %1406 = vmatprep.mubr.f32.mxu0 %v12186_v11 }
 0x87c   : > { %v1226_v2 = vpop.xlane.xlu1 %1225 }
 0x87d   : > { %v1227_v54 = vmul.f32 %v1226_v2, %v10656_v42 }
 0x87f   : > { %v1228_v31 = vsub.f32 %v1222_v46, %v1227_v54 }
 0x881   : > { %v1229_v57 = vmul.f32 %v1228_v31, %v1155_v48 }
 0x883   : > { %v1189_v13 = vpop.xlane.xlu0 %1188  ;;  %v1230_v51 = vsel %vm1024_vm1, %v1229_v57, 0.0 }
 0x884   : > { %v1190_v41 = vmul.f32 %v1189_v13, %v1155_v48  ;;  %1231 = vadd.xlane.f32.xlu1 %v1230_v51 }
 0x886   : > { %v1191_v24 = vsub.f32 %v1185_v44, %v1190_v41 }
 0x888   : > { %v1192_v45 = vmul.f32 %v1191_v24, %v1191_v24 }
 0x88a   : > { %v1193_v40 = vsel %vm1024_vm1, %v1192_v45, 0.0 }
 0x88b   : > { %1194 = vadd.xlane.f32.xlu0 %v1193_v40 }
 0x8d1   : > { %v10717_v6 = vpop.f32.mrb[18].mxu0 }
 0x8d2   : > { %12197 = vst [vmem:[#allocation29_spill] sm:$0xff] %v10717_v6  ;;  %v10719_v36 = vpop.f32.mrb[19].mxu0 }
 0x8d3   : > { %12198 = vst [vmem:[#allocation30_spill] sm:$0xff] %v10719_v36 }
 0x911   : > { %v1232_v42 = vpop.xlane.xlu1 %1231 }
 0x912   : > { %v1233_v46 = vmul.f32 %v1232_v42, %v1155_v48 }
 0x914   : > { %v1234_v54 = vsub.f32 %v1228_v31, %v1233_v46  ;;  %v10742_v46 = vpack.c.bf16 %v10566_v49, %v10561_v59 }
 0x916   : > { %12199 = vst [vmem:[#allocation31_spill] sm:$0xff] %v10742_v46  ;;  %9197 = vmatprep.subr.bf16.mxu1 %v10742_v46 }
 0x918   : > { %v1195_v35 = vpop.xlane.xlu0 %1194 }
 0x919   : > { %v1196_v17 = vadd.f32 1e-12, %v1195_v35 }
 0x91b   : > { %10068 = vrsqrt.f32 %v1196_v17 }
 0x925   : > { %v10069_v2 = vpop.eup %10068 }
 0x926   : > { %v1198_v4 = vmul.f32 %v10069_v2, %v1191_v24  ;;  %v10746_v2 = vpack.c.bf16 %v10576_v19, %v10571_v50 }
 0x928   : > { %v1267_v57 = vsel %vm1024_vm1, %v1198_v4, 0  ;;  %v1235_v13 = vmul.f32 %v1234_v54, %v1198_v4  ;;  %12200 = vst [vmem:[#allocation32_spill] sm:$0xff] %v10746_v2  ;;  %9199 = vmatpush1.bf16.msra.mxu1 %v10746_v2 }
 0x929   : > { %v10722_v44 = vand.u32 4294901760, %v1267_v57  ;;  %9201 = vmatprep.subr.bf16.mxu1 %v10453_v58 }
 0x92a   : > { %v1236_v51 = vsel %vm1024_vm1, %v1235_v13, 0.0 }
 0x92b   : > { %1557 = vmatmul.mubr.f32.gmra.mrb[6].mxu1 %v10722_v44  ;;  %1237 = vadd.xlane.f32.xlu0 %v1236_v51  ;;  %v10727_v41 = vsub.f32 %v1267_v57, %v10722_v44 }
 0x92c   : > { %1562 = vmatprep.mubr.f32.mxu1 %v12186_v11 }
 0x92d   : > { %v10731_v35 = vand.u32 4294901760, %v10727_v41 }
 0x92f   : > { %v1410_v17 = vsub.f32 %v10727_v41, %v10731_v35 }
 0x931   : > { %v10735_v48 = vand.u32 4294901760, %v1410_v17 }
 0x933   : > { %1412 = vmatmul.mubr.f32.gmra.mrb[20].mxu0 %v10735_v48 }
 0x934   : > { %1417 = vmatprep.mubr.f32.mxu0 %v12186_v11 }
 0x9b8   : > { %v1238_v31 = vpop.xlane.xlu0 %1237 }
 0x9b9   : > { %v1239_v24 = vmul.f32 %v1238_v31, %v1198_v4  ;;  %v197_v4 = vld [vmem:[%s12097_s3 + $0x8] sm:$0xff] }
 0x9ba   : > { %v2106_v57 = vand.u32 4294901760, %v197_v4 }
 0x9bb   : > { %v1240_v45 = vsub.f32 %v1234_v54, %v1239_v24  ;;  %v199_v54 = vld [vmem:[%s12097_s3 + $0x18] sm:$0xff] }
 0x9bc   : > { %v2110_v13 = vand.u32 4294901760, %v199_v54  ;;  %v10764_v24 = vsub.f32 %v197_v4, %v2106_v57 }
 0x9bd   : > { %v1241_v40 = vmul.f32 %v1240_v45, %v1240_v45 }
 0x9be   : > { %v10757_v51 = vpack.c.bf16 %v2110_v13, %v2106_v57 }
 0x9bf   : > { %v1242_v42 = vsel %vm1024_vm1, %v1241_v40, 0.0  ;;  %v10766_v40 = vsub.f32 %v199_v54, %v2110_v13 }
 0x9c0   : > { %1243 = vadd.xlane.f32.xlu1 %v1242_v42  ;;  %9213 = vmatprep.subr.bf16.mxu0 %v10757_v51  ;;  %v12157_v42 = vand.u32 4294901760, %v10764_v24 }
 0x9c1   : > { %v12158_v2 = vand.u32 4294901760, %v10766_v40  ;;  %v10780_v4 = vpack.c.bf16 %v10766_v40, %v10764_v24 }
 0x9c2   : > { %v2266_v46 = vsub.f32 %v10764_v24, %v12157_v42 }
 0x9c3   : > { %v2278_v36 = vsub.f32 %v10766_v40, %v12158_v2  ;;  %12204 = vst [vmem:[#allocation36_spill] sm:$0xff] %v10780_v4 }
 0x9c4   : > { %v2267_v6 = vand.u32 4294901760, %v2266_v46 }
 0xa06   : > { %v10760_v17 = vpop.f32.mrb[20].mxu0 }
 0xa07   : > { %12201 = vst [vmem:[#allocation33_spill] sm:$0xff] %v10760_v17  ;;  %v10762_v31 = vpop.f32.mrb[21].mxu0  ;;  %v2279_v17 = vand.u32 4294901760, %v2278_v36  ;;  %v196_v36 = vld [vmem:[%s12097_s3] sm:$0xff] }
 0xa08   : > { %12202 = vst [vmem:[#allocation34_spill] sm:$0xff] %v10762_v31 }
 0xa09   : > { %v10776_v56 = vpack.c.bf16 %v2279_v17, %v2267_v6  ;;  %v198_v6 = vld [vmem:[%s12097_s3 + $0x10] sm:$0xff]  ;;  %v12205_v17 = vand.u32 4294901760, %v10561_v59 }
 0xa0b   : > { %12203 = vst [vmem:[#allocation35_spill] sm:$0xff] %v10776_v56 }
 0xa4d   : > { %v1244_v54 = vpop.xlane.xlu1 %1243 }
 0xa4e   : > { %v1245_v57 = vadd.f32 1e-12, %v1244_v54 }
 0xa50   : > { %10070 = vrsqrt.f32 %v1245_v57  ;;  %v2108_v57 = vand.u32 4294901760, %v196_v36 }
 0xa52   : > { %v10813_v59 = vsub.f32 %v196_v36, %v2108_v57 }
 0xa5a   : > { %v10071_v13 = vpop.eup %10070 }
 0xa5b   : > { %v1247_v31 = vmul.f32 %v10071_v13, %v1240_v45  ;;  %v2112_v13 = vand.u32 4294901760, %v198_v6 }
 0xa5d   : > { %v1270_v43 = vsel %vm1024_vm1, %v1247_v31, 0  ;;  %v12206_v31 = vand.u32 4294901760, %v10566_v49  ;;  %v10815_v49 = vsub.f32 %v198_v6, %v2112_v13 }
 0xa5e   : > { %v10783_v42 = vand.u32 4294901760, %v1270_v43 }
 0xa5f   : > { %v10803_v54 = vpack.c.bf16 %v12206_v31, %v12205_v17  ;;  %v10821_v17 = vpack.c.bf16 %v2112_v13, %v2108_v57  ;;  %v2271_v31 = vand.u32 4294901760, %v10813_v59 }
 0xa60   : > { %1564 = vmatmul.mubr.f32.gmra.mrb[8].mxu1 %v10783_v42  ;;  %v10787_v46 = vsub.f32 %v1270_v43, %v10783_v42 }
 0xa61   : > { %1642 = vmatprep.mubr.f32.mxu1 %v12186_v11  ;;  %v2272_v36 = vsub.f32 %v10813_v59, %v2271_v31 }
 0xa62   : > { %v10797_v45 = vand.u32 4294901760, %v10787_v46 }
 0xa63   : > { %v2273_v57 = vand.u32 4294901760, %v2272_v36  ;;  %v12209_v36 = vand.u32 4294901760, %v10576_v19 }
 0xa64   : > { %1645 = vmatmul.mubr.f32.vlgmr.msra.gmra.mrb[10].mxu1 %v10472_v37  ;;  %v1421_v43 = vsub.f32 %v10787_v46, %v10797_v45 }
 0xa65   : > { %9203 = vmatpush1.bf16.msra.mxu1 %v10459_v60  ;;  %1650 = vmatprep.mubr.f32.mxu1 %v12186_v11 }
 0xa66   : > { %v10810_v2 = vand.u32 4294901760, %v1421_v43  ;;  %9205 = vmatprep.subr.bf16.mxu1 %v10803_v54  ;;  %v12159_v43 = vand.u32 4294901760, %v10815_v49 }
 0xa68   : > { %1423 = vmatmul.mubr.f32.gmra.mrb[22].mxu0 %v10810_v2  ;;  %1653 = vmatmul.mubr.f32.gmra.mrb[12].mxu1 %v10502_v61  ;;  %v2284_v6 = vsub.f32 %v10815_v49, %v12159_v43 }
 0xa69   : > { %1513 = vmatprep.mubr.f32.mxu0 %v12186_v11  ;;  %1658 = vmatprep.mubr.f32.mxu1 %v12186_v11 }
 0xa6a   : > { %v2285_v13 = vand.u32 4294901760, %v2284_v6 }
 0xa6c   : > { %1515 = vmatmul.mubr.f32.vlgmr.msra.gmra.mrb[8].mxu0 %v10468_v26  ;;  %1661 = vmatmul.mubr.f32.gmra.mrb[14].mxu1 %v10534_v5  ;;  %v10845_v43 = vpack.c.bf16 %v2285_v13, %v2273_v57 }
 0xa6d   : > { %1520 = vmatprep.mubr.f32.mxu0 %v12186_v11  ;;  %1666 = vmatprep.mubr.f32.mxu1 %v12186_v11 }
 0xa6e   : > { %9215 = vmatpush1.bf16.msra.mxu0 %v10821_v17  ;;  %12207 = vst [vmem:[#allocation37_spill] sm:$0xff] %v10845_v43 }
 0xa6f   : > { %9217 = vmatprep.subr.bf16.mxu0 %v10776_v56 }
 0xa70   : > { %1522 = vmatmul.mubr.f32.gmra.mrb[10].mxu0 %v10497_v55  ;;  %1669 = vmatmul.mubr.f32.gmra.mrb[0].mxu1 %v10622_v23 }
 0xa71   : > { %1527 = vmatprep.mubr.f32.mxu0 %v12186_v11  ;;  %1674 = vmatprep.mubr.f32.mxu1 %v12186_v11 }
 0xa74   : > { %1529 = vmatmul.mubr.f32.gmra.mrb[12].mxu0 %v10528_v29  ;;  %1677 = vmatmul.mubr.f32.gmra.mrb[2].mxu1 %v10667_v47 }
 0xa75   : > { %1682 = vmatprep.mubr.f32.mxu1 %v12186_v11  ;;  %2174 = vmatprep.mubr.f32.mxu0 %v12186_v11 }
 0xa78   : > { %1685 = vmatmul.mubr.f32.gmra.mrb[4].mxu1 %v10702_v15  ;;  %2180 = vmatmul.mubr.f32.vlgmr.msra.gmra.mrb[24].mxu0 %v10479_v10  ;;  %v12208_v10 = vand.u32 4294901760, %v10571_v50 }
 0xa79   : > { %1690 = vmatprep.mubr.f32.mxu1 %v12186_v11  ;;  %2185 = vmatprep.mubr.f32.mxu0 %v12186_v11 }
 0xa7a   : > { %9219 = vmatpush1.bf16.msra.mxu0 %v10845_v43  ;;  %v10865_v6 = vpack.c.bf16 %v12209_v36, %v12208_v10  ;;  %v12210_v10 = vand.u32 4294901760, %v10764_v24  ;;  %v12211_v36 = vand.u32 4294901760, %v10766_v40  ;;  %v8549_v24 = vld [vmem:[%s12095_s1 + $0x38] sm:$0xff] }
 0xa7b   : > { %9221 = vmatprep.subr.bf16.mxu0 %v10780_v4  ;;  %v2987_v40 = vand.u32 4294901760, %v8549_v24 }
 0xa7c   : > { %1693 = vmatmul.mubr.f32.gmra.mrb[6].mxu1 %v10727_v41  ;;  %2191 = vmatmul.mubr.f32.gmra.mrb[26].mxu0 %v10509_v9  ;;  %v8546_v9 = vld [vmem:[%s12095_s1 + $0x20] sm:$0xff] }
 0xa7d   : > { %1698 = vmatprep.mubr.f32.mxu1 %v12186_v11  ;;  %2196 = vmatprep.mubr.f32.mxu0 %v12186_v11  ;;  %v2978_v50 = vand.u32 4294901760, %v8546_v9 }
 0xa80   : > { %1701 = vmatmul.mubr.f32.gmra.mrb[8].mxu1 %v10787_v46  ;;  %2202 = vmatmul.mubr.f32.gmra.mrb[28].mxu0 %v10542_v3  ;;  %v8547_v3 = vld [vmem:[%s12095_s1 + $0x28] sm:$0xff] }
 0xa81   : > { %1775 = vmatprep.mubr.f32.mxu1 %v12186_v11  ;;  %2207 = vmatprep.mubr.f32.mxu0 %v12186_v11  ;;  %v2981_v19 = vand.u32 4294901760, %v8547_v3 }
 0xa83   : > { %v10885_v57 = vsub.f32 %v8547_v3, %v2981_v19  ;;  %v8548_v3 = vld [vmem:[%s12095_s1 + $0x30] sm:$0xff] }
 0xa84   : > { %1779 = vmatmul.mubr.f32.vlgmr.msra.gmra.mrb[10].mxu1 %v10475_v38  ;;  %2213 = vmatmul.mubr.f32.gmra.mrb[30].mxu0 %v10631_v8  ;;  %v10883_v8 = vsub.f32 %v8546_v9, %v2978_v50  ;;  %v10953_v9 = vpack.c.bf16 %v12211_v36, %v12210_v10 }
 0xa85   : > { %9207 = vmatpush1.bf16.msra.mxu1 %v10865_v6  ;;  %1784 = vmatprep.mubr.f32.mxu1 %v12186_v11  ;;  %v3136_v13 = vand.u32 4294901760, %v10885_v57 }
 0xa86   : > { %2218 = vmatprep.mubr.f32.mxu0 %v12186_v11  ;;  %9209 = vmatprep.subr.bf16.mxu1 %v10453_v58 }
 0xa88   : > { %1788 = vmatmul.mubr.f32.gmra.mrb[12].mxu1 %v10505_v12  ;;  %2224 = vmatmul.mubr.f32.gmra.mrb[32].mxu0 %v10676_v14  ;;  %v3129_v14 = vand.u32 4294901760, %v10883_v8 }
 0xa89   : > { %1793 = vmatprep.mubr.f32.mxu1 %v12186_v11  ;;  %2229 = vmatprep.mubr.f32.mxu0 %v12186_v11 }
 0xa8c   : > { %1797 = vmatmul.mubr.f32.gmra.mrb[14].mxu1 %v10537_v21  ;;  %2235 = vmatmul.mubr.f32.gmra.mrb[34].mxu0 %v10710_v16  ;;  %v10901_v16 = vpack.c.bf16 %v3136_v13, %v3129_v14 }
 0xa8d   : > { %1802 = vmatprep.mubr.f32.mxu1 %v12186_v11  ;;  %2240 = vmatprep.mubr.f32.mxu0 %v12186_v11 }
 0xa90   : > { %1806 = vmatmul.mubr.f32.gmra.mrb[0].mxu1 %v10626_v39  ;;  %2246 = vmatmul.mubr.f32.gmra.mrb[36].mxu0 %v10735_v48  ;;  %v10909_v48 = vpack.c.bf16 %v10815_v49, %v10813_v59 }
 0xa91   : > { %1811 = vmatprep.mubr.f32.mxu1 %v12186_v11  ;;  %2251 = vmatprep.mubr.f32.mxu0 %v12186_v11 }
 0xa94   : > { %1815 = vmatmul.mubr.f32.gmra.mrb[2].mxu1 %v10671_v0  ;;  %2257 = vmatmul.mubr.f32.gmra.mrb[38].mxu0 %v10810_v2  ;;  %v10925_v2 = vpack.c.bf16 %v2981_v19, %v2978_v50  ;;  %v3130_v50 = vsub.f32 %v10883_v8, %v3129_v14  ;;  %v3137_v19 = vsub.f32 %v10885_v57, %v3136_v13  ;;  %v12212_v14 = vand.u32 4294901760, %v10815_v49 }
 0xa95   : > { %1820 = vmatprep.mubr.f32.mxu1 %v12186_v11  ;;  %2347 = vmatprep.mubr.f32.mxu0 %v12186_v11 }
 0xa96   : > { %v3131_v10 = vand.u32 4294901760, %v3130_v50  ;;  %v3138_v36 = vand.u32 4294901760, %v3137_v19  ;;  %v11016_v13 = vpack.c.bf16 %v12212_v14, %v2271_v31  ;;  %v12224_v50 = vld [vmem:[#allocation21_spill] sm:$0xff]  ;;  %v12225_v19 = vld [vmem:[#allocation8_spill] sm:$0xff]  ;;  %v12228_v14 = vld [vmem:[#allocation11_spill] sm:$0xff] }
 0xa98   : > { %1824 = vmatmul.mubr.f32.gmra.mrb[4].mxu1 %v10706_v53  ;;  %2349 = vmatmul.mubr.f32.vlgmr.msra.gmra.mrb[24].mxu0 %v10468_v26 }
 0xa99   : > { %1829 = vmatprep.mubr.f32.mxu1 %v12186_v11  ;;  %2354 = vmatprep.mubr.f32.mxu0 %v12186_v11 }
 0xa9a   : > { %9223 = vmatpush1.bf16.msra.mxu0 %v10909_v48 }
 0xa9b   : > { %9225 = vmatprep.subr.bf16.mxu0 %v10757_v51 }
 0xa9c   : > { %1833 = vmatmul.mubr.f32.gmra.mrb[6].mxu1 %v10731_v35  ;;  %2356 = vmatmul.mubr.f32.gmra.mrb[26].mxu0 %v10497_v55 }
 0xa9d   : > { %1838 = vmatprep.mubr.f32.mxu1 %v12186_v11  ;;  %2361 = vmatprep.mubr.f32.mxu0 %v12186_v11 }
 0xaa0   : > { %1842 = vmatmul.mubr.f32.gmra.mrb[8].mxu1 %v10797_v45  ;;  %2363 = vmatmul.mubr.f32.gmra.mrb[28].mxu0 %v10528_v29 }
 0xaa1   : > { %1924 = vmatprep.mubr.f32.mxu1 %v12186_v11  ;;  %2368 = vmatprep.mubr.f32.mxu0 %v12186_v11 }
 0xaa4   : > { %1926 = vmatmul.mubr.f32.vlgmr.msra.gmra.mrb[10].mxu1 %v10468_v26  ;;  %2370 = vmatmul.mubr.f32.gmra.mrb[30].mxu0 %v10616_v52 }
 0xaa5   : > { %9211 = vmatpush1.bf16.msra.mxu1 %v10459_v60  ;;  %1931 = vmatprep.mubr.f32.mxu1 %v12186_v11 }
 0xaa6   : > { %2375 = vmatprep.mubr.f32.mxu0 %v12186_v11  ;;  %9237 = vmatprep.subr.bf16.mxu1 %v10925_v2 }
 0xaa8   : > { %1933 = vmatmul.mubr.f32.gmra.mrb[12].mxu1 %v10497_v55  ;;  %2377 = vmatmul.mubr.f32.gmra.mrb[32].mxu0 %v10661_v22 }
 0xaa9   : > { %1938 = vmatprep.mubr.f32.mxu1 %v12186_v11  ;;  %2382 = vmatprep.mubr.f32.mxu0 %v12186_v11 }
 0xaac   : > { %1940 = vmatmul.mubr.f32.gmra.mrb[14].mxu1 %v10528_v29  ;;  %2384 = vmatmul.mubr.f32.gmra.mrb[34].mxu0 %v10697_v20 }
 0xaad   : > { %1945 = vmatprep.mubr.f32.mxu1 %v12186_v11  ;;  %2389 = vmatprep.mubr.f32.mxu0 %v12186_v11 }
 0xab0   : > { %1947 = vmatmul.mubr.f32.gmra.mrb[0].mxu1 %v10616_v52  ;;  %2391 = vmatmul.mubr.f32.gmra.mrb[36].mxu0 %v10722_v44 }
 0xab1   : > { %1952 = vmatprep.mubr.f32.mxu1 %v12186_v11  ;;  %2396 = vmatprep.mubr.f32.mxu0 %v12186_v11 }
 0xab4   : > { %1954 = vmatmul.mubr.f32.gmra.mrb[2].mxu1 %v10661_v22  ;;  %2398 = vmatmul.mubr.f32.gmra.mrb[38].mxu0 %v10783_v42 }
 0xab5   : > { %1959 = vmatprep.mubr.f32.mxu1 %v12186_v11  ;;  %2476 = vmatprep.mubr.f32.mxu0 %v12186_v11 }
 0xab8   : > { %1961 = vmatmul.mubr.f32.gmra.mrb[4].mxu1 %v10697_v20  ;;  %2479 = vmatmul.mubr.f32.vlgmr.msra.gmra.mrb[24].mxu0 %v10472_v37  ;;  %v2984_v37 = vand.u32 4294901760, %v8548_v3 }
 0xab9   : > { %1966 = vmatprep.mubr.f32.mxu1 %v12186_v11  ;;  %2484 = vmatprep.mubr.f32.mxu0 %v12186_v11 }
 0xaba   : > { %9227 = vmatpush1.bf16.msra.mxu0 %v10821_v17 }
 0xabb   : > { %9229 = vmatprep.subr.bf16.mxu0 %v10953_v9 }
 0xabc   : > { %1968 = vmatmul.mubr.f32.gmra.mrb[6].mxu1 %v10722_v44  ;;  %2487 = vmatmul.mubr.f32.gmra.mrb[26].mxu0 %v10502_v61  ;;  %v10981_v61 = vpack.c.bf16 %v2987_v40, %v2984_v37 }
 0xabd   : > { %1973 = vmatprep.mubr.f32.mxu1 %v12186_v11  ;;  %2492 = vmatprep.mubr.f32.mxu0 %v12186_v11 }
 0xac0   : > { %1975 = vmatmul.mubr.f32.gmra.mrb[8].mxu1 %v10783_v42  ;;  %2495 = vmatmul.mubr.f32.gmra.mrb[28].mxu0 %v10534_v5  ;;  %v9244_v5 = vpack.c.bf16 %v3138_v36, %v3131_v10  ;;  %v12226_v36 = vld [vmem:[#allocation9_spill] sm:$0xff] }
 0xac1   : > { %2049 = vmatprep.mubr.f32.mxu1 %v12186_v11  ;;  %2500 = vmatprep.mubr.f32.mxu0 %v12186_v11 }
 0xac4   : > { %2051 = vmatmul.mubr.f32.vlgmr.msra.gmra.mrb[10].mxu1 %v10468_v26  ;;  %2503 = vmatmul.mubr.f32.gmra.mrb[30].mxu0 %v10622_v23  ;;  %v11002_v23 = vsub.f32 %v8548_v3, %v2984_v37  ;;  %v12220_v3 = vld [vmem:[#allocation6_spill] sm:$0xff]  ;;  %v12222_v37 = vld [vmem:[#allocation15_spill] sm:$0xff] }
 0xac5   : > { %9239 = vmatpush3.bf16.msra.mxu1 %v10925_v2  ;;  %2056 = vmatprep.mubr.f32.mxu1 %v12186_v11 }
 0xac6   : > { %2508 = vmatprep.mubr.f32.mxu0 %v12186_v11  ;;  %9241 = vmatprep.subr.bf16.mxu1 %v10981_v61 }
 0xac8   : > { %2058 = vmatmul.mubr.f32.gmra.mrb[12].mxu1 %v10497_v55  ;;  %2511 = vmatmul.mubr.f32.gmra.mrb[32].mxu0 %v10667_v47  ;;  %v11004_v47 = vsub.f32 %v8549_v24, %v2987_v40  ;;  %v12221_v24 = vld [vmem:[#allocation12_spill] sm:$0xff]  ;;  %v12223_v40 = vld [vmem:[#allocation18_spill] sm:$0xff] }
 0xac9   : > { %2063 = vmatprep.mubr.f32.mxu1 %v12186_v11  ;;  %2516 = vmatprep.mubr.f32.mxu0 %v12186_v11 }
 0xaca   : > { %9243 = vmatpush3.bf16.msra.mxu1 %v10981_v61 }
 0xacb   : > { %9245 = vmatprep.subr.bf16.mxu1 %v9244_v5 }
 0xacc   : > { %2065 = vmatmul.mubr.f32.gmra.mrb[14].mxu1 %v10528_v29  ;;  %2519 = vmatmul.mubr.f32.gmra.mrb[34].mxu0 %v10702_v15  ;;  %v3143_v15 = vand.u32 4294901760, %v11002_v23 }
 0xacd   : > { %2070 = vmatprep.mubr.f32.mxu1 %v12186_v11  ;;  %2524 = vmatprep.mubr.f32.mxu0 %v12186_v11 }
 0xad0   : > { %2072 = vmatmul.mubr.f32.gmra.mrb[0].mxu1 %v10616_v52  ;;  %2527 = vmatmul.mubr.f32.gmra.mrb[36].mxu0 %v10727_v41  ;;  %v3150_v41 = vand.u32 4294901760, %v11004_v47 }
 0xad1   : > { %2077 = vmatprep.mubr.f32.mxu1 %v12186_v11  ;;  %2532 = vmatprep.mubr.f32.mxu0 %v12186_v11 }
 0xad2   : > { %v3151_v59 = vsub.f32 %v11004_v47, %v3150_v41  ;;  %v9272_v10 = vpack.c.bf16 %v3150_v41, %v3143_v15 }
 0xad4   : > { %2079 = vmatmul.mubr.f32.gmra.mrb[2].mxu1 %v10661_v22  ;;  %2535 = vmatmul.mubr.f32.gmra.mrb[38].mxu0 %v10787_v46  ;;  %v3144_v46 = vsub.f32 %v11002_v23, %v3143_v15  ;;  %v3152_v49 = vand.u32 4294901760, %v3151_v59 }
 0xad5   : > { %2084 = vmatprep.mubr.f32.mxu1 %v12186_v11  ;;  %2609 = vmatprep.mubr.f32.mxu0 %v12186_v11 }
 0xad8   : > { %2086 = vmatmul.mubr.f32.gmra.mrb[4].mxu1 %v10697_v20  ;;  %2613 = vmatmul.mubr.f32.vlgmr.msra.gmra.mrb[24].mxu0 %v10475_v38  ;;  %v3145_v38 = vand.u32 4294901760, %v3144_v46 }
 0xad9   : > { %2091 = vmatprep.mubr.f32.mxu1 %v12186_v11  ;;  %2618 = vmatprep.mubr.f32.mxu0 %v12186_v11 }
 0xada   : > { %9231 = vmatpush1.bf16.msra.mxu0 %v11016_v13  ;;  %v9248_v31 = vpack.c.bf16 %v3152_v49, %v3145_v38 }
 0xadb   : > { %9233 = vmatprep.subr.bf16.mxu0 %v10757_v51 }
 0xadc   : > { %2093 = vmatmul.mubr.f32.gmra.mrb[6].mxu1 %v10722_v44  ;;  %2622 = vmatmul.mubr.f32.gmra.mrb[26].mxu0 %v10505_v12  ;;  %v9252_v12 = vpack.c.bf16 %v10885_v57, %v10883_v8  ;;  %v12218_v8 = vld [vmem:[#allocation4_spill] sm:$0xff]  ;;  %v12219_v57 = vld [vmem:[#allocation5_spill] sm:$0xff] }
 0xadd   : > { %2098 = vmatprep.mubr.f32.mxu1 %v12186_v11  ;;  %2627 = vmatprep.mubr.f32.mxu0 %v12186_v11 }
 0xae0   : > { %2100 = vmatmul.mubr.f32.gmra.mrb[8].mxu1 %v10783_v42  ;;  %2631 = vmatmul.mubr.f32.gmra.mrb[28].mxu0 %v10537_v21  ;;  %v9256_v21 = vpack.c.bf16 %v11004_v47, %v11002_v23  ;;  %v12229_v23 = vld [vmem:[#allocation14_spill] sm:$0xff] }
 0xae1   : > { %2636 = vmatprep.mubr.f32.mxu0 %v12186_v11  ;;  %8908 = vmatprep.mubr.f32.mxu1 %v10299_v62  ;;  %v12232_v47 = vld [vmem:[#allocation22_spill] sm:$0xff] }
 0xae4   : > { %2640 = vmatmul.mubr.f32.gmra.mrb[30].mxu0 %v10626_v39  ;;  %8909 = vmatmul.mubr.f32.vlgmr.msra.gmra.mrb[16].mxu1 %v10301_v63  ;;  %v12213_v39 = vld [vmem:[#allocation7_spill] sm:$0xff] }
 0xae5   : > { %9247 = vmatpush3.bf16.msra.mxu1 %v9244_v5  ;;  %2645 = vmatprep.mubr.f32.mxu0 %v12186_v11  ;;  %v12227_v5 = vld [vmem:[#allocation10_spill] sm:$0xff] }
 0xae6   : > { %8911 = vmatprep.mubr.f32.mxu1 %v10306_v1  ;;  %9249 = vmatprep.subr.bf16.mxu1 %v9248_v31 }
 0xae8   : > { %2649 = vmatmul.mubr.f32.gmra.mrb[32].mxu0 %v10671_v0  ;;  %8912 = vmatmul.mubr.f32.gmra.mrb[18].mxu1 %v10318_v7  ;;  %v12214_v0 = vld [vmem:[#allocation13_spill] sm:$0xff] }
 0xae9   : > { %2654 = vmatprep.mubr.f32.mxu0 %v12186_v11  ;;  %8914 = vmatprep.mubr.f32.mxu1 %v10326_v18 }
 0xaea   : > { %9251 = vmatpush3.bf16.msra.mxu1 %v9248_v31 }
 0xaeb   : > { %9253 = vmatprep.subr.bf16.mxu1 %v9252_v12 }
 0xaec   : > { %2658 = vmatmul.mubr.f32.gmra.mrb[34].mxu0 %v10706_v53  ;;  %8915 = vmatmul.mubr.f32.gmra.mrb[20].mxu1 %v10339_v25  ;;  %v12215_v53 = vld [vmem:[#allocation16_spill] sm:$0xff] }
 0xaed   : > { %2663 = vmatprep.mubr.f32.mxu0 %v12186_v11  ;;  %8917 = vmatprep.mubr.f32.mxu1 %v10347_v30 }
 0xaf0   : > { %2667 = vmatmul.mubr.f32.gmra.mrb[36].mxu0 %v10731_v35  ;;  %8918 = vmatmul.mubr.f32.gmra.mrb[22].mxu1 %v10352_v32  ;;  %v12216_v35 = vld [vmem:[#allocation19_spill] sm:$0xff] }
 0xaf1   : > { %2672 = vmatprep.mubr.f32.mxu0 %v12186_v11  ;;  %8928 = vmatprep.mubr.f32.mxu1 %v10234_v27 }
 0xaf4   : > { %2676 = vmatmul.mubr.f32.gmra.mrb[38].mxu0 %v10797_v45  ;;  %8929 = vmatmul.mubr.f32.vlgmr.msra.gmra.mrb[16].mxu1 %v10236_v28  ;;  %v12217_v45 = vld [vmem:[#allocation3_spill] sm:$0xff] }
 0xaf5   : > { %9255 = vmatpush3.bf16.msra.mxu1 %v9252_v12  ;;  %2758 = vmatprep.mubr.f32.mxu0 %v12186_v11 }
 0xaf6   : > { %8931 = vmatprep.mubr.f32.mxu1 %v10240_v33  ;;  %9257 = vmatprep.subr.bf16.mxu1 %v9256_v21 }
 0xaf8   : > { %2760 = vmatmul.mubr.f32.vlgmr.msra.gmra.mrb[24].mxu0 %v10468_v26  ;;  %8932 = vmatmul.mubr.f32.gmra.mrb[18].mxu1 %v10242_v34 }
 0xaf9   : > { %2765 = vmatprep.mubr.f32.mxu0 %v12186_v11  ;;  %8934 = vmatprep.mubr.f32.mxu1 %v12213_v39 }
 0xafa   : > { %9259 = vmatpush3.bf16.msra.mxu1 %v9256_v21  ;;  %9235 = vmatpush1.bf16.msra.mxu0 %v10821_v17 }
 0xafb   : > { %9261 = vmatprep.subr.bf16.mxu1 %v10925_v2  ;;  %9309 = vmatprep.subr.bf16.mxu0 %v10757_v51 }
 0xafc   : > { %2767 = vmatmul.mubr.f32.gmra.mrb[26].mxu0 %v10497_v55  ;;  %8935 = vmatmul.mubr.f32.gmra.mrb[20].mxu1 %v12214_v0 }
 0xafd   : > { %2772 = vmatprep.mubr.f32.mxu0 %v12186_v11  ;;  %8937 = vmatprep.mubr.f32.mxu1 %v12215_v53 }
 0xb00   : > { %2774 = vmatmul.mubr.f32.gmra.mrb[28].mxu0 %v10528_v29  ;;  %8938 = vmatmul.mubr.f32.gmra.mrb[22].mxu1 %v12216_v35 }
 0xb01   : > { %2779 = vmatprep.mubr.f32.mxu0 %v12186_v11  ;;  %8948 = vmatprep.mubr.f32.mxu1 %v12217_v45 }
 0xb04   : > { %2781 = vmatmul.mubr.f32.gmra.mrb[30].mxu0 %v10616_v52  ;;  %8949 = vmatmul.mubr.f32.vlgmr.msra.gmra.mrb[16].mxu1 %v12218_v8 }
 0xb05   : > { %9263 = vmatpush3.bf16.msra.mxu1 %v10925_v2  ;;  %2786 = vmatprep.mubr.f32.mxu0 %v12186_v11 }
 0xb06   : > { %8951 = vmatprep.mubr.f32.mxu1 %v12219_v57  ;;  %9265 = vmatprep.subr.bf16.mxu1 %v10981_v61 }
 0xb08   : > { %2788 = vmatmul.mubr.f32.gmra.mrb[32].mxu0 %v10661_v22  ;;  %8952 = vmatmul.mubr.f32.gmra.mrb[18].mxu1 %v12220_v3 }
 0xb09   : > { %2793 = vmatprep.mubr.f32.mxu0 %v12186_v11  ;;  %8954 = vmatprep.mubr.f32.mxu1 %v12221_v24 }
 0xb0a   : > { %9267 = vmatpush3.bf16.msra.mxu1 %v10981_v61 }
 0xb0b   : > { %9269 = vmatprep.subr.bf16.mxu1 %v10901_v16 }
 0xb0c   : > { %2795 = vmatmul.mubr.f32.gmra.mrb[34].mxu0 %v10697_v20  ;;  %8955 = vmatmul.mubr.f32.gmra.mrb[20].mxu1 %v12222_v37 }
 0xb0d   : > { %2800 = vmatprep.mubr.f32.mxu0 %v12186_v11  ;;  %8957 = vmatprep.mubr.f32.mxu1 %v12223_v40 }
 0xb10   : > { %2802 = vmatmul.mubr.f32.gmra.mrb[36].mxu0 %v10722_v44  ;;  %8958 = vmatmul.mubr.f32.gmra.mrb[22].mxu1 %v12224_v50  ;;  %v12236_v50 = vld [vmem:[#allocation27_spill] sm:$0xff] }
 0xb11   : > { %2807 = vmatprep.mubr.f32.mxu0 %v12186_v11  ;;  %8968 = vmatprep.mubr.f32.mxu1 %v12225_v19 }
 0xb14   : > { %2809 = vmatmul.mubr.f32.gmra.mrb[38].mxu0 %v10783_v42  ;;  %8969 = vmatmul.mubr.f32.vlgmr.msra.gmra.mrb[16].mxu1 %v12226_v36 }
 0xb15   : > { %9271 = vmatpush3.bf16.msra.mxu1 %v10901_v16  ;;  %2883 = vmatprep.mubr.f32.mxu0 %v12186_v11  ;;  %v12230_v16 = vld [vmem:[#allocation17_spill] sm:$0xff] }
 0xb16   : > { %8971 = vmatprep.mubr.f32.mxu1 %v12227_v5  ;;  %9273 = vmatprep.subr.bf16.mxu1 %v9272_v10  ;;  %v12235_v5 = vld [vmem:[#allocation26_spill] sm:$0xff] }
 0xb18   : > { %2885 = vmatmul.mubr.f32.vlgmr.msra.gmra.mrb[24].mxu0 %v10468_v26  ;;  %8972 = vmatmul.mubr.f32.gmra.mrb[18].mxu1 %v12228_v14  ;;  %v12231_v26 = vld [vmem:[#allocation20_spill] sm:$0xff] }
 0xb19   : > { %2890 = vmatprep.mubr.f32.mxu0 %v12186_v11  ;;  %8974 = vmatprep.mubr.f32.mxu1 %v12229_v23 }
 0xb1a   : > { %9275 = vmatpush3.bf16.msra.mxu1 %v9272_v10  ;;  %9311 = vmatpush1.bf16.msra.mxu0 %v10821_v17 }
 0xb1b   : > { %9277 = vmatprep.subr.bf16.mxu1 %v10925_v2  ;;  %9313 = vmatprep.subr.bf16.mxu0 %v10776_v56 }
 0xb1c   : > { %2892 = vmatmul.mubr.f32.gmra.mrb[26].mxu0 %v10497_v55  ;;  %8975 = vmatmul.mubr.f32.gmra.mrb[20].mxu1 %v12230_v16  ;;  %v12233_v55 = vld [vmem:[#allocation23_spill] sm:$0xff]  ;;  %v12234_v16 = vld [vmem:[#allocation25_spill] sm:$0xff] }
 0xb1d   : > { %2897 = vmatprep.mubr.f32.mxu0 %v12186_v11  ;;  %8977 = vmatprep.mubr.f32.mxu1 %v12231_v26 }
 0xb20   : > { %2899 = vmatmul.mubr.f32.gmra.mrb[28].mxu0 %v10528_v29  ;;  %8978 = vmatmul.mubr.f32.gmra.mrb[22].mxu1 %v12232_v47 }
 0xb21   : > { %2904 = vmatprep.mubr.f32.mxu0 %v12186_v11  ;;  %8988 = vmatprep.mubr.f32.mxu1 %v10234_v27 }
 0xb24   : > { %2906 = vmatmul.mubr.f32.gmra.mrb[30].mxu0 %v10616_v52  ;;  %8989 = vmatmul.mubr.f32.vlgmr.msra.gmra.mrb[16].mxu1 %v10236_v28 }
 0xb25   : > { %9279 = vmatpush3.bf16.msra.mxu1 %v10925_v2  ;;  %2911 = vmatprep.mubr.f32.mxu0 %v12186_v11 }
 0xb26   : > { %8991 = vmatprep.mubr.f32.mxu1 %v10240_v33  ;;  %9281 = vmatprep.subr.bf16.mxu1 %v10981_v61 }
 0xb28   : > { %2913 = vmatmul.mubr.f32.gmra.mrb[32].mxu0 %v10661_v22  ;;  %8992 = vmatmul.mubr.f32.gmra.mrb[18].mxu1 %v10242_v34 }
 0xb29   : > { %2918 = vmatprep.mubr.f32.mxu0 %v12186_v11  ;;  %8994 = vmatprep.mubr.f32.mxu1 %v12213_v39 }
 0xb2a   : > { %9283 = vmatpush3.bf16.msra.mxu1 %v10981_v61 }
 0xb2b   : > { %9285 = vmatprep.subr.bf16.mxu1 %v10453_v58 }
 0xb2c   : > { %2920 = vmatmul.mubr.f32.gmra.mrb[34].mxu0 %v10697_v20  ;;  %8995 = vmatmul.mubr.f32.gmra.mrb[20].mxu1 %v12214_v0 }
 0xb2d   : > { %2925 = vmatprep.mubr.f32.mxu0 %v12186_v11  ;;  %8997 = vmatprep.mubr.f32.mxu1 %v12215_v53 }
 0xb30   : > { %2927 = vmatmul.mubr.f32.gmra.mrb[36].mxu0 %v10722_v44  ;;  %8998 = vmatmul.mubr.f32.gmra.mrb[22].mxu1 %v12216_v35 }
 0xb31   : > { %2932 = vmatprep.mubr.f32.mxu0 %v12186_v11  ;;  %9008 = vmatprep.mubr.f32.mxu1 %v10234_v27 }
 0xb34   : > { %2934 = vmatmul.mubr.f32.gmra.mrb[38].mxu0 %v10783_v42  ;;  %9009 = vmatmul.mubr.f32.vlgmr.msra.gmra.mrb[16].mxu1 %v10236_v28 }
 0xb35   : > { %9011 = vmatprep.mubr.f32.mxu1 %v10240_v33  ;;  %9287 = vmatpush1.bf16.msra.mxu1 %v10459_v60 }
 0xb36   : > { %4913 = vmatprep.mubr.f32.mxu0 %v12186_v11  ;;  %9289 = vmatprep.subr.bf16.mxu1 %v12233_v55 }
 0xb38   : > { %9012 = vmatmul.mubr.f32.gmra.mrb[18].mxu1 %v10242_v34 }
 0xb39   : > { %9014 = vmatprep.mubr.f32.mxu1 %v12213_v39 }
 0xb3b   : > { %v1424_v29 = vpop.f32.mrb[22].mxu0 }
 0xb3c   : > { %v1426_v52 = vpop.f32.mrb[23].mxu0  ;;  %9015 = vmatmul.mubr.f32.gmra.mrb[20].mxu1 %v12214_v0 }
 0xb3d   : > { %9017 = vmatprep.mubr.f32.mxu1 %v12215_v53 }
 0xb3f   : > { %v1516_v22 = vpop.f32.mrb[8].mxu0 }
 0xb40   : > { %v1518_v20 = vpop.f32.mrb[9].mxu0  ;;  %9018 = vmatmul.mubr.f32.gmra.mrb[22].mxu1 %v12216_v35 }
 0xb41   : > { %4079 = vmatprep.mubr.f32.mxu1 %v12186_v11 }
 0xb43   : > { %v1523_v44 = vpop.f32.mrb[10].mxu0 }
 0xb44   : > { %v1525_v42 = vpop.f32.mrb[11].mxu0 }
 0xb47   : > { %v1530_v2 = vpop.f32.mrb[12].mxu0 }
 0xb48   : > { %v1532_v61 = vpop.f32.mrb[13].mxu0 }
 0xb97   : > { %v2052_v15 = vpop.f32.mrb[10].mxu1 }
 0xb98   : > { %v9430_v41 = vadd.f32 %v2052_v15, %v1516_v22  ;;  %v2054_v46 = vpop.f32.mrb[11].mxu1  ;;  %v12237_v15 = vld [vmem:[#allocation28_spill] sm:$0xff] }
 0xb99   : > { %v9431_v59 = vadd.f32 %v2054_v46, %v1518_v20 }
 0xb9b   : > { %v2059_v38 = vpop.f32.mrb[12].mxu1 }
 0xb9c   : > { %v9432_v49 = vadd.f32 %v2059_v38, %v1523_v44  ;;  %v2061_v31 = vpop.f32.mrb[13].mxu1  ;;  %v12238_v44 = vld [vmem:[#allocation29_spill] sm:$0xff] }
 0xb9d   : > { %v9433_v12 = vadd.f32 %v2061_v31, %v1525_v42  ;;  %v12239_v31 = vld [vmem:[#allocation30_spill] sm:$0xff] }
 0xb9f   : > { %v2066_v21 = vpop.f32.mrb[14].mxu1 }
 0xba0   : > { %v9434_v10 = vadd.f32 %v2066_v21, %v1530_v2  ;;  %v2068_v56 = vpop.f32.mrb[15].mxu1 }
 0xba1   : > { %v9435_v47 = vadd.f32 %v2068_v56, %v1532_v61  ;;  %v12240_v56 = vld [vmem:[#allocation33_spill] sm:$0xff] }
 0xba3   : > { %v2073_v26 = vpop.f32.mrb[0].mxu1 }
 0xba4   : > { %v9436_v23 = vadd.f32 %v2073_v26, %v12234_v16  ;;  %v2075_v14 = vpop.f32.mrb[1].mxu1  ;;  %v12241_v16 = vld [vmem:[#allocation34_spill] sm:$0xff] }
 0xba5   : > { %v9437_v36 = vadd.f32 %v2075_v14, %v12235_v5 }
 0xba7   : > { %v2080_v19 = vpop.f32.mrb[2].mxu1 }
 0xba8   : > { %v9438_v40 = vadd.f32 %v2080_v19, %v12236_v50  ;;  %v2082_v22 = vpop.f32.mrb[3].mxu1 }
 0xba9   : > { %v9439_v20 = vadd.f32 %v2082_v22, %v12237_v15 }
 0xbab   : > { %v2087_v46 = vpop.f32.mrb[4].mxu1 }
 0xbac   : > { %v9440_v38 = vadd.f32 %v2087_v46, %v12238_v44  ;;  %v2089_v42 = vpop.f32.mrb[5].mxu1 }
 0xbad   : > { %v9441_v2 = vadd.f32 %v2089_v42, %v12239_v31 }
 0xbaf   : > { %v2094_v21 = vpop.f32.mrb[6].mxu1 }
 0xbb0   : > { %v9442_v61 = vadd.f32 %v2094_v21, %v12240_v56  ;;  %v2096_v37 = vpop.f32.mrb[7].mxu1 }
 0xbb1   : > { %v9443_v26 = vadd.f32 %v2096_v37, %v12241_v16 }
 0xbb3   : > { %v2101_v24 = vpop.f32.mrb[8].mxu1 }
 0xbb4   : > { %v9444_v5 = vadd.f32 %v2101_v24, %v1424_v29  ;;  %v2103_v14 = vpop.f32.mrb[9].mxu1 }
 0xbb5   : > { %v9445_v3 = vadd.f32 %v2103_v14, %v1426_v52 }
 0xbeb   : > { %v2886_v50 = vpop.f32.mrb[24].mxu0 }
 0xbec   : > { %v2940_v19 = vmul.f32 %v9430_v41, %v2886_v50  ;;  %v2888_v57 = vpop.f32.mrb[25].mxu0 }
 0xbed   : > { %v2941_v22 = vmul.f32 %v9431_v59, %v2888_v57 }
 0xbef   : > { %v2893_v15 = vpop.f32.mrb[26].mxu0 }
 0xbf0   : > { %v2942_v8 = vmul.f32 %v9432_v49, %v2893_v15  ;;  %v2895_v46 = vpop.f32.mrb[27].mxu0 }
 0xbf1   : > { %v2943_v44 = vmul.f32 %v9433_v12, %v2895_v46 }
 0xbf2   : > { %v2956_v45 = vadd.f32 %v2942_v8, %v2940_v19 }
 0xbf3   : > { %v2957_v42 = vadd.f32 %v2943_v44, %v2941_v22  ;;  %v2900_v31 = vpop.f32.mrb[28].mxu0 }
 0xbf4   : > { %v2944_v35 = vmul.f32 %v9434_v10, %v2900_v31  ;;  %v2902_v21 = vpop.f32.mrb[29].mxu0 }
 0xbf5   : > { %v2945_v56 = vmul.f32 %v9435_v47, %v2902_v21 }
 0xbf6   : > { %v2958_v53 = vadd.f32 %v2956_v45, %v2944_v35 }
 0xbf7   : > { %v2959_v37 = vadd.f32 %v2957_v42, %v2945_v56  ;;  %v2907_v16 = vpop.f32.mrb[30].mxu0 }
 0xbf8   : > { %v2946_v24 = vmul.f32 %v9436_v23, %v2907_v16  ;;  %v2909_v29 = vpop.f32.mrb[31].mxu0 }
 0xbf9   : > { %v2947_v52 = vmul.f32 %v9437_v36, %v2909_v29 }
 0xbfa   : > { %v2960_v41 = vadd.f32 %v2958_v53, %v2946_v24 }
 0xbfb   : > { %v2961_v14 = vadd.f32 %v2959_v37, %v2947_v52  ;;  %v2914_v57 = vpop.f32.mrb[32].mxu0 }
 0xbfc   : > { %v2948_v59 = vmul.f32 %v9438_v40, %v2914_v57  ;;  %v2916_v49 = vpop.f32.mrb[33].mxu0 }
 0xbfd   : > { %v2949_v50 = vmul.f32 %v9439_v20, %v2916_v49 }
 0xbfe   : > { %v2962_v12 = vadd.f32 %v2960_v41, %v2948_v59 }
 0xbff   : > { %v2963_v8 = vadd.f32 %v2961_v14, %v2949_v50  ;;  %v2921_v19 = vpop.f32.mrb[34].mxu0 }
 0xc00   : > { %v2950_v22 = vmul.f32 %v9440_v38, %v2921_v19  ;;  %v2923_v10 = vpop.f32.mrb[35].mxu0 }
 0xc01   : > { %v2951_v15 = vmul.f32 %v9441_v2, %v2923_v10 }
 0xc02   : > { %v2964_v47 = vadd.f32 %v2962_v12, %v2950_v22 }
 0xc03   : > { %v2965_v35 = vadd.f32 %v2963_v8, %v2951_v15  ;;  %v2928_v45 = vpop.f32.mrb[36].mxu0 }
 0xc04   : > { %v2952_v23 = vmul.f32 %v9442_v61, %v2928_v45  ;;  %v2930_v46 = vpop.f32.mrb[37].mxu0 }
 0xc05   : > { %v2953_v44 = vmul.f32 %v9443_v26, %v2930_v46  ;;  %v12243_v46 = vld [vmem:[#allocation31_spill] sm:$0xff] }
 0xc06   : > { %v2966_v53 = vadd.f32 %v2964_v47, %v2952_v23  ;;  %v12242_v23 = vld [vmem:[#allocation24_spill] sm:$0xff] }
 0xc07   : > { %v2967_v36 = vadd.f32 %v2965_v35, %v2953_v44  ;;  %v2935_v42 = vpop.f32.mrb[38].mxu0  ;;  %v9010_v40 = vpop.f32.mrb[16].mxu1 }
 0xc08   : > { %v2954_v31 = vmul.f32 %v9444_v5, %v2935_v42  ;;  %v2937_v20 = vpop.f32.mrb[39].mxu0  ;;  %v3717_v21 = vpop.f32.mrb[17].mxu1 }
 0xc09   : > { %v2955_v56 = vmul.f32 %v9445_v3, %v2937_v20  ;;  %v3763_v37 = vmul.f32 %v3717_v21, %v3717_v21 }
 0xc0a   : > { %v2968_v38 = vadd.f32 %v2966_v53, %v2954_v31 }
 0xc0b   : > { %v2969_v16 = vadd.f32 %v2967_v36, %v2955_v56  ;;  %v9013_v2 = vpop.f32.mrb[18].mxu1  ;;  %v3764_v24 = vsel %vm1024_vm1, %v3763_v37, 0.0 }
 0xc0c   : > { %2970 = vst [vmem:[%s11163_s15] sm:$0xff] %v2968_v38  ;;  %3765 = vadd.xlane.f32.xlu0 %v3764_v24  ;;  %v3729_v61 = vpop.f32.mrb[19].mxu1 }
 0xc0d   : > { %2971 = vst [vmem:[%s11163_s15 + $0x8] sm:$0xff] %v2969_v16 }
 0xc0f   : > { %v11167_v26 = vpop.f32.mrb[20].mxu1 }
 0xc10   : > { %v11169_v5 = vpop.f32.mrb[21].mxu1 }
 0xc13   : > { %v11171_v29 = vpop.f32.mrb[22].mxu1 }
 0xc14   : > { %v11173_v3 = vpop.f32.mrb[23].mxu1 }
 0xc99   : > { %v3766_v52 = vpop.xlane.xlu0 %3765 }
 0xc9a   : > { %v3767_v41 = vadd.f32 1e-12, %v3766_v52 }
 0xc9c   : > { %10072 = vrsqrt.f32 %v3767_v41 }
 0xca6   : > { %v10073_v14 = vpop.eup %10072 }
 0xca7   : > { %v11175_v57 = vmul.f32 %v10073_v14, %v3717_v21 }
 0xca9   : > { %v3770_v59 = vmul.f32 %v9010_v40, %v11175_v57  ;;  %v3988_v49 = vsel %vm1024_vm1, %v11175_v57, 0  ;;  %v3783_v8 = vmul.f32 %v11175_v57, %v3729_v61  ;;  %v3802_v15 = vmul.f32 %v9013_v2, %v11175_v57 }
 0xcaa   : > { %v11180_v50 = vand.u32 4294901760, %v3988_v49 }
 0xcab   : > { %v3771_v12 = vsel %vm1024_vm1, %v3770_v59, 0.0  ;;  %v3784_v10 = vsel %vm1024_vm1, %v3783_v8, 0.0  ;;  %v3803_v45 = vsel %vm1024_vm1, %v3802_v15, 0.0 }
 0xcac   : > { %3772 = vadd.xlane.f32.xlu1 %v3771_v12  ;;  %v11185_v19 = vsub.f32 %v3988_v49, %v11180_v50 }
 0xcae   : > { %v11188_v22 = vand.u32 4294901760, %v11185_v19 }
 0xcb0   : > { %3785 = vadd.xlane.f32.xlu1 %v3784_v10  ;;  %v4083_v47 = vsub.f32 %v11185_v19, %v11188_v22 }
 0xcb2   : > { %v4084_v35 = vand.u32 4294901760, %v4083_v47 }
 0xcb4   : > { %4085 = vmatmul.mubr.f32.vlgmr.msra.gmra.mrb[24].mxu1 %v4084_v35  ;;  %3804 = vadd.xlane.f32.xlu1 %v3803_v45 }
 0xcb5   : > { %4919 = vmatmul.mubr.f32.vlgmr.msra.gmra.mrb[40].mxu0 %v4084_v35  ;;  %4090 = vmatprep.mubr.f32.mxu1 %v12186_v11 }
 0xcb6   : > { %4924 = vmatprep.mubr.f32.mxu0 %v12186_v11  ;;  %9291 = vmatpush1.bf16.msra.mxu1 %v12242_v23 }
 0xcb7   : > { %9315 = vmatpush1.bf16.msra.mxu0 %v10845_v43  ;;  %9293 = vmatprep.subr.bf16.mxu1 %v12243_v46 }
 0xcb8   : > { %9317 = vmatprep.subr.bf16.mxu0 %v10780_v4 }
 0xd39   : > { %v3773_v44 = vpop.xlane.xlu1 %3772 }
 0xd3a   : > { %v3774_v53 = vmul.f32 %v3773_v44, %v11175_v57 }
 0xd3c   : > { %v3775_v36 = vsub.f32 %v9010_v40, %v3774_v53 }
 0xd3d   : > { %v3786_v21 = vpop.xlane.xlu1 %3785 }
 0xd3e   : > { %v3776_v42 = vmul.f32 %v3775_v36, %v3775_v36  ;;  %v3787_v38 = vmul.f32 %v3786_v21, %v11175_v57 }
 0xd40   : > { %v3777_v31 = vsel %vm1024_vm1, %v3776_v42, 0.0  ;;  %v3788_v52 = vsub.f32 %v3729_v61, %v3787_v38  ;;  %v3827_v42 = vmul.f32 %v11175_v57, %v11169_v5 }
 0xd41   : > { %3778 = vadd.xlane.f32.xlu0 %v3777_v31  ;;  %v3805_v37 = vpop.xlane.xlu1 %3804 }
 0xd42   : > { %v3806_v16 = vmul.f32 %v3805_v37, %v11175_v57  ;;  %v3828_v31 = vsel %vm1024_vm1, %v3827_v42, 0.0 }
 0xd44   : > { %v3807_v41 = vsub.f32 %v9013_v2, %v3806_v16 }
 0xdce   : > { %v3779_v20 = vpop.xlane.xlu0 %3778 }
 0xdcf   : > { %v3780_v56 = vadd.f32 1e-12, %v3779_v20 }
 0xdd1   : > { %10074 = vrsqrt.f32 %v3780_v56 }
 0xddb   : > { %v10075_v24 = vpop.eup %10074 }
 0xddc   : > { %v11205_v14 = vmul.f32 %v10075_v24, %v3775_v36 }
 0xdde   : > { %v3789_v40 = vmul.f32 %v3788_v52, %v11205_v14  ;;  %v3808_v59 = vmul.f32 %v3807_v41, %v11205_v14  ;;  %v3991_v49 = vsel %vm1024_vm1, %v11205_v14, 0 }
 0xddf   : > { %v11211_v12 = vand.u32 4294901760, %v3991_v49 }
 0xde0   : > { %v3790_v8 = vsel %vm1024_vm1, %v3789_v40, 0.0  ;;  %v3809_v10 = vsel %vm1024_vm1, %v3808_v59, 0.0 }
 0xde1   : > { %3791 = vadd.xlane.f32.xlu0 %v3790_v8  ;;  %3810 = vadd.xlane.f32.xlu1 %v3809_v10  ;;  %v11216_v61 = vsub.f32 %v3991_v49, %v11211_v12 }
 0xde3   : > { %v11219_v2 = vand.u32 4294901760, %v11216_v61 }
 0xde5   : > { %v4094_v15 = vsub.f32 %v11216_v61, %v11219_v2 }
 0xde7   : > { %v4095_v47 = vand.u32 4294901760, %v4094_v15 }
 0xde9   : > { %4096 = vmatmul.mubr.f32.gmra.mrb[26].mxu1 %v4095_v47  ;;  %4930 = vmatmul.mubr.f32.gmra.mrb[42].mxu0 %v4095_v47 }
 0xdea   : > { %4101 = vmatprep.mubr.f32.mxu1 %v12186_v11  ;;  %4935 = vmatprep.mubr.f32.mxu0 %v12186_v11 }
 0xe6e   : > { %v3792_v35 = vpop.xlane.xlu0 %3791  ;;  %v3811_v38 = vpop.xlane.xlu1 %3810 }
 0xe6f   : > { %v3793_v45 = vmul.f32 %v3792_v35, %v11205_v14  ;;  %v3858_v35 = vmul.f32 %v11167_v26, %v11175_v57 }
 0xe71   : > { %v3794_v44 = vsub.f32 %v3788_v52, %v3793_v45  ;;  %v3812_v52 = vmul.f32 %v3811_v38, %v11205_v14  ;;  %v3895_v38 = vmul.f32 %v11175_v57, %v11173_v3 }
 0xe73   : > { %v3795_v53 = vmul.f32 %v3794_v44, %v3794_v44  ;;  %v3813_v49 = vsub.f32 %v3807_v41, %v3812_v52 }
 0xe75   : > { %v3796_v36 = vsel %vm1024_vm1, %v3795_v53, 0.0 }
 0xe76   : > { %3797 = vadd.xlane.f32.xlu0 %v3796_v36 }
 0xe7a   : > { %3829 = vadd.xlane.f32.xlu0 %v3828_v31 }
 0xf03   : > { %v3798_v20 = vpop.xlane.xlu0 %3797 }
 0xf04   : > { %v3799_v21 = vadd.f32 1e-12, %v3798_v20 }
 0xf06   : > { %10076 = vrsqrt.f32 %v3799_v21 }
 0xf07   : > { %v3830_v56 = vpop.xlane.xlu0 %3829 }
 0xf08   : > { %v3831_v37 = vmul.f32 %v3830_v56, %v11175_v57 }
 0xf0a   : > { %v3832_v16 = vsub.f32 %v11169_v5, %v3831_v37 }
 0xf0c   : > { %v3833_v24 = vmul.f32 %v3832_v16, %v11205_v14 }
 0xf0e   : > { %v3834_v40 = vsel %vm1024_vm1, %v3833_v24, 0.0 }
 0xf0f   : > { %3835 = vadd.xlane.f32.xlu0 %v3834_v40 }
 0xf10   : > { %v10077_v59 = vpop.eup %10076 }
 0xf11   : > { %v11235_v8 = vmul.f32 %v10077_v59, %v3794_v44  ;;  %v3859_v44 = vsel %vm1024_vm1, %v3858_v35, 0.0  ;;  %v3896_v59 = vsel %vm1024_vm1, %v3895_v38, 0.0 }
 0xf13   : > { %v3814_v10 = vmul.f32 %v3813_v49, %v11235_v8  ;;  %v3994_v15 = vsel %vm1024_vm1, %v11235_v8, 0 }
 0xf14   : > { %v11240_v47 = vand.u32 4294901760, %v3994_v15 }
 0xf15   : > { %v3815_v5 = vsel %vm1024_vm1, %v3814_v10, 0.0 }
 0xf16   : > { %3816 = vadd.xlane.f32.xlu1 %v3815_v5  ;;  %v11246_v45 = vsub.f32 %v3994_v15, %v11240_v47 }
 0xf18   : > { %v11249_v41 = vand.u32 4294901760, %v11246_v45 }
 0xf1a   : > { %3860 = vadd.xlane.f32.xlu1 %v3859_v44  ;;  %v4105_v53 = vsub.f32 %v11246_v45, %v11249_v41 }
 0xf1c   : > { %v4106_v36 = vand.u32 4294901760, %v4105_v53 }
 0xf1e   : > { %4107 = vmatmul.mubr.f32.gmra.mrb[28].mxu1 %v4106_v36  ;;  %4941 = vmatmul.mubr.f32.gmra.mrb[44].mxu0 %v4106_v36 }
 0xf1f   : > { %4112 = vmatprep.mubr.f32.mxu1 %v12186_v11  ;;  %4946 = vmatprep.mubr.f32.mxu0 %v12186_v11 }
 0xf9c   : > { %v3836_v42 = vpop.xlane.xlu0 %3835 }
 0xf9d   : > { %v3837_v31 = vmul.f32 %v3836_v42, %v11205_v14 }
 0xf9f   : > { %v3838_v20 = vsub.f32 %v3832_v16, %v3837_v31 }
 0xfa1   : > { %v3839_v21 = vmul.f32 %v3838_v20, %v11235_v8 }
 0xfa3   : > { %v3817_v56 = vpop.xlane.xlu1 %3816  ;;  %v3840_v37 = vsel %vm1024_vm1, %v3839_v21, 0.0 }
 0xfa4   : > { %v3818_v24 = vmul.f32 %v3817_v56, %v11235_v8  ;;  %3841 = vadd.xlane.f32.xlu1 %v3840_v37 }
 0xfa6   : > { %v3819_v52 = vsub.f32 %v3813_v49, %v3818_v24 }
 0xfa7   : > { %v3861_v40 = vpop.xlane.xlu1 %3860 }
 0xfa8   : > { %v3862_v10 = vmul.f32 %v3861_v40, %v11175_v57  ;;  %3897 = vadd.xlane.f32.xlu1 %v3896_v59  ;;  %v3820_v15 = vmul.f32 %v3819_v52, %v3819_v52  ;;  %v3938_v40 = vmul.f32 %v11171_v29, %v11175_v57 }
 0xfaa   : > { %v3863_v16 = vsub.f32 %v11167_v26, %v3862_v10  ;;  %v3821_v5 = vsel %vm1024_vm1, %v3820_v15, 0.0 }
 0xfab   : > { %3822 = vadd.xlane.f32.xlu0 %v3821_v5 }
 0xfac   : > { %v3864_v35 = vmul.f32 %v3863_v16, %v11205_v14 }
 0xfae   : > { %v3865_v44 = vsel %vm1024_vm1, %v3864_v35, 0.0 }
 0xfaf   : > { %3866 = vadd.xlane.f32.xlu0 %v3865_v44 }
0x1031   : > { %v3842_v36 = vpop.xlane.xlu1 %3841 }
0x1032   : > { %v3843_v26 = vmul.f32 %v3842_v36, %v11235_v8 }
0x1034   : > { %v3844_v10 = vsub.f32 %v3838_v20, %v3843_v26 }
0x1035   : > { %v3898_v21 = vpop.xlane.xlu1 %3897 }
0x1036   : > { %v3899_v38 = vmul.f32 %v3898_v21, %v11175_v57 }
0x1038   : > { %v3823_v53 = vpop.xlane.xlu0 %3822  ;;  %v3900_v15 = vsub.f32 %v11173_v3, %v3899_v38 }
0x1039   : > { %v3824_v49 = vadd.f32 1e-12, %v3823_v53 }
0x103b   : > { %10078 = vrsqrt.f32 %v3824_v49  ;;  %v3901_v49 = vmul.f32 %v3900_v15, %v11205_v14 }
0x103c   : > { %v3867_v42 = vpop.xlane.xlu0 %3866 }
0x103d   : > { %v3868_v31 = vmul.f32 %v3867_v42, %v11205_v14 }
0x103f   : > { %v3869_v56 = vsub.f32 %v3863_v16, %v3868_v31  ;;  %v3939_v16 = vsel %vm1024_vm1, %v3938_v40, 0.0 }
0x1041   : > { %v3870_v37 = vmul.f32 %v3869_v56, %v11235_v8 }
0x1043   : > { %v3871_v24 = vsel %vm1024_vm1, %v3870_v37, 0.0 }
0x1044   : > { %3872 = vadd.xlane.f32.xlu1 %v3871_v24 }
0x1045   : > { %v10079_v59 = vpop.eup %10078 }
0x1046   : > { %v11276_v5 = vmul.f32 %v10079_v59, %v3819_v52  ;;  %v3902_v52 = vsel %vm1024_vm1, %v3901_v49, 0.0 }
0x1048   : > { %3940 = vadd.xlane.f32.xlu1 %v3939_v16  ;;  %v3845_v35 = vmul.f32 %v3844_v10, %v11276_v5  ;;  %v3997_v44 = vsel %vm1024_vm1, %v11276_v5, 0 }
0x1049   : > { %v11282_v53 = vand.u32 4294901760, %v3997_v44 }
0x104a   : > { %v3846_v36 = vsel %vm1024_vm1, %v3845_v35, 0.0 }
0x104b   : > { %3847 = vadd.xlane.f32.xlu0 %v3846_v36  ;;  %v11287_v20 = vsub.f32 %v3997_v44, %v11282_v53 }
0x104d   : > { %v11290_v3 = vand.u32 4294901760, %v11287_v20 }
0x104f   : > { %3903 = vadd.xlane.f32.xlu0 %v3902_v52  ;;  %v4116_v42 = vsub.f32 %v11287_v20, %v11290_v3 }
0x1051   : > { %v4117_v31 = vand.u32 4294901760, %v4116_v42 }
0x1053   : > { %4118 = vmatmul.mubr.f32.gmra.mrb[30].mxu1 %v4117_v31  ;;  %4952 = vmatmul.mubr.f32.gmra.mrb[46].mxu0 %v4117_v31 }
0x1054   : > { %4123 = vmatprep.mubr.f32.mxu1 %v12186_v11  ;;  %4957 = vmatprep.mubr.f32.mxu0 %v12186_v11 }
0x10d1   : > { %v3873_v21 = vpop.xlane.xlu1 %3872 }
0x10d2   : > { %v3874_v37 = vmul.f32 %v3873_v21, %v11235_v8 }
0x10d4   : > { %v3875_v26 = vsub.f32 %v3869_v56, %v3874_v37 }
0x10d5   : > { %v3941_v38 = vpop.xlane.xlu1 %3940 }
0x10d6   : > { %v3942_v24 = vmul.f32 %v3941_v38, %v11175_v57  ;;  %v3876_v40 = vmul.f32 %v3875_v26, %v11276_v5 }
0x10d8   : > { %v3943_v59 = vsub.f32 %v11171_v29, %v3942_v24  ;;  %v3848_v16 = vpop.xlane.xlu0 %3847  ;;  %v3877_v35 = vsel %vm1024_vm1, %v3876_v40, 0.0 }
0x10d9   : > { %v3849_v44 = vmul.f32 %v3848_v16, %v11276_v5  ;;  %3878 = vadd.xlane.f32.xlu1 %v3877_v35 }
0x10da   : > { %v3944_v36 = vmul.f32 %v3943_v59, %v11205_v14 }
0x10db   : > { %v3850_v49 = vsub.f32 %v3844_v10, %v3849_v44 }
0x10dc   : > { %v3904_v52 = vpop.xlane.xlu0 %3903  ;;  %v3945_v42 = vsel %vm1024_vm1, %v3944_v36, 0.0 }
0x10dd   : > { %v3905_v56 = vmul.f32 %v3904_v52, %v11205_v14  ;;  %3946 = vadd.xlane.f32.xlu1 %v3945_v42  ;;  %v3851_v57 = vmul.f32 %v3850_v49, %v3850_v49 }
0x10df   : > { %v3906_v31 = vsub.f32 %v3900_v15, %v3905_v56  ;;  %v3852_v21 = vsel %vm1024_vm1, %v3851_v57, 0.0 }
0x10e0   : > { %3853 = vadd.xlane.f32.xlu0 %v3852_v21 }
0x10e1   : > { %v3907_v29 = vmul.f32 %v3906_v31, %v11235_v8 }
0x10e3   : > { %v3908_v37 = vsel %vm1024_vm1, %v3907_v29, 0.0 }
0x10e4   : > { %3909 = vadd.xlane.f32.xlu0 %v3908_v37 }
0x1166   : > { %v3879_v24 = vpop.xlane.xlu1 %3878 }
0x1167   : > { %v3880_v15 = vmul.f32 %v3879_v24, %v11276_v5 }
0x1169   : > { %v3881_v57 = vsub.f32 %v3875_v26, %v3880_v15 }
0x116a   : > { %v3947_v35 = vpop.xlane.xlu1 %3946 }
0x116b   : > { %v3948_v52 = vmul.f32 %v3947_v35, %v11205_v14 }
0x116d   : > { %v3854_v38 = vpop.xlane.xlu0 %3853  ;;  %v3949_v21 = vsub.f32 %v3943_v59, %v3948_v52 }
0x116e   : > { %v3855_v40 = vadd.f32 1e-12, %v3854_v38 }
0x116f   : > { %v3950_v24 = vmul.f32 %v3949_v21, %v11235_v8 }
0x1170   : > { %10080 = vrsqrt.f32 %v3855_v40 }
0x1171   : > { %v3910_v10 = vpop.xlane.xlu0 %3909  ;;  %v3951_v59 = vsel %vm1024_vm1, %v3950_v24, 0.0 }
0x1172   : > { %v3911_v16 = vmul.f32 %v3910_v10, %v11235_v8 }
0x1174   : > { %v3912_v44 = vsub.f32 %v3906_v31, %v3911_v16 }
0x1176   : > { %v3913_v36 = vmul.f32 %v3912_v44, %v11276_v5 }
0x1178   : > { %v3914_v42 = vsel %vm1024_vm1, %v3913_v36, 0.0 }
0x1179   : > { %3915 = vadd.xlane.f32.xlu1 %v3914_v42 }
0x117a   : > { %v10081_v56 = vpop.eup %10080 }
0x117b   : > { %v11314_v29 = vmul.f32 %v10081_v56, %v3850_v49 }
0x117d   : > { %v3882_v37 = vmul.f32 %v3881_v57, %v11314_v29  ;;  %v4000_v38 = vsel %vm1024_vm1, %v11314_v29, 0 }
0x117e   : > { %v11319_v31 = vand.u32 4294901760, %v4000_v38 }
0x117f   : > { %v3883_v40 = vsel %vm1024_vm1, %v3882_v37, 0.0 }
0x1180   : > { %3884 = vadd.xlane.f32.xlu0 %v3883_v40  ;;  %v11324_v14 = vsub.f32 %v4000_v38, %v11319_v31 }
0x1182   : > { %v11327_v26 = vand.u32 4294901760, %v11324_v14 }
0x1184   : > { %3952 = vadd.xlane.f32.xlu0 %v3951_v59  ;;  %v4127_v49 = vsub.f32 %v11324_v14, %v11327_v26 }
0x1186   : > { %v4128_v10 = vand.u32 4294901760, %v4127_v49 }
0x1188   : > { %4129 = vmatmul.mubr.f32.gmra.mrb[32].mxu1 %v4128_v10  ;;  %4963 = vmatmul.mubr.f32.gmra.mrb[48].mxu0 %v4128_v10 }
0x1189   : > { %4134 = vmatprep.mubr.f32.mxu1 %v12186_v11  ;;  %4968 = vmatprep.mubr.f32.mxu0 %v12186_v11 }
0x1206   : > { %v3916_v16 = vpop.xlane.xlu1 %3915 }
0x1207   : > { %v3917_v35 = vmul.f32 %v3916_v16, %v11276_v5 }
0x1209   : > { %v3918_v36 = vsub.f32 %v3912_v44, %v3917_v35 }
0x120b   : > { %v3919_v15 = vmul.f32 %v3918_v36, %v11314_v29 }
0x120d   : > { %v3885_v52 = vpop.xlane.xlu0 %3884  ;;  %v3920_v42 = vsel %vm1024_vm1, %v3919_v15, 0.0 }
0x120e   : > { %v3886_v56 = vmul.f32 %v3885_v52, %v11314_v29  ;;  %3921 = vadd.xlane.f32.xlu0 %v3920_v42 }
0x1210   : > { %v3887_v37 = vsub.f32 %v3881_v57, %v3886_v56 }
0x1211   : > { %v3953_v38 = vpop.xlane.xlu0 %3952 }
0x1212   : > { %v3954_v40 = vmul.f32 %v3953_v38, %v11235_v8  ;;  %v3888_v24 = vmul.f32 %v3887_v37, %v3887_v37 }
0x1214   : > { %v3955_v59 = vsub.f32 %v3949_v21, %v3954_v40  ;;  %v3889_v49 = vsel %vm1024_vm1, %v3888_v24, 0.0 }
0x1215   : > { %3890 = vadd.xlane.f32.xlu1 %v3889_v49 }
0x1216   : > { %v3956_v10 = vmul.f32 %v3955_v59, %v11276_v5 }
0x1218   : > { %v3957_v44 = vsel %vm1024_vm1, %v3956_v10, 0.0 }
0x1219   : > { %3958 = vadd.xlane.f32.xlu1 %v3957_v44 }
0x129b   : > { %v3922_v57 = vpop.xlane.xlu0 %3921 }
0x129c   : > { %v3923_v21 = vmul.f32 %v3922_v57, %v11314_v29 }
0x129e   : > { %v3924_v40 = vsub.f32 %v3918_v36, %v3923_v21 }
0x12a2   : > { %v3891_v16 = vpop.xlane.xlu1 %3890 }
0x12a3   : > { %v3892_v35 = vadd.f32 1e-12, %v3891_v16 }
0x12a5   : > { %10082 = vrsqrt.f32 %v3892_v35 }
0x12a6   : > { %v3959_v15 = vpop.xlane.xlu1 %3958 }
0x12a7   : > { %v3960_v52 = vmul.f32 %v3959_v15, %v11276_v5 }
0x12a9   : > { %v3961_v42 = vsub.f32 %v3955_v59, %v3960_v52 }
0x12ab   : > { %v3962_v8 = vmul.f32 %v3961_v42, %v11314_v29 }
0x12ad   : > { %v3963_v56 = vsel %vm1024_vm1, %v3962_v8, 0.0 }
0x12ae   : > { %3964 = vadd.xlane.f32.xlu1 %v3963_v56 }
0x12af   : > { %v10083_v38 = vpop.eup %10082 }
0x12b0   : > { %v3894_v24 = vmul.f32 %v10083_v38, %v3887_v37 }
0x12b2   : > { %v3925_v49 = vmul.f32 %v3924_v40, %v3894_v24  ;;  %v4003_v10 = vsel %vm1024_vm1, %v3894_v24, 0 }
0x12b3   : > { %v11347_v44 = vand.u32 4294901760, %v4003_v10 }
0x12b4   : > { %v3926_v16 = vsel %vm1024_vm1, %v3925_v49, 0.0 }
0x12b5   : > { %3927 = vadd.xlane.f32.xlu0 %v3926_v16  ;;  %v11351_v5 = vsub.f32 %v4003_v10, %v11347_v44 }
0x12b7   : > { %v11354_v59 = vand.u32 4294901760, %v11351_v5 }
0x12b9   : > { %v4138_v35 = vsub.f32 %v11351_v5, %v11354_v59 }
0x12bb   : > { %v4139_v15 = vand.u32 4294901760, %v4138_v35 }
0x12bd   : > { %4140 = vmatmul.mubr.f32.gmra.mrb[34].mxu1 %v4139_v15  ;;  %4974 = vmatmul.mubr.f32.gmra.mrb[50].mxu0 %v4139_v15 }
0x12be   : > { %4145 = vmatprep.mubr.f32.mxu1 %v12186_v11  ;;  %4979 = vmatprep.mubr.f32.mxu0 %v12186_v11 }
0x133b   : > { %v3965_v36 = vpop.xlane.xlu1 %3964 }
0x133c   : > { %v3966_v37 = vmul.f32 %v3965_v36, %v11314_v29 }
0x133e   : > { %v3967_v52 = vsub.f32 %v3961_v42, %v3966_v37 }
0x1340   : > { %v3968_v57 = vmul.f32 %v3967_v52, %v3894_v24 }
0x1342   : > { %v3928_v8 = vpop.xlane.xlu0 %3927  ;;  %v3969_v21 = vsel %vm1024_vm1, %v3968_v57, 0.0 }
0x1343   : > { %v3929_v56 = vmul.f32 %v3928_v8, %v3894_v24  ;;  %3970 = vadd.xlane.f32.xlu1 %v3969_v21 }
0x1345   : > { %v3930_v38 = vsub.f32 %v3924_v40, %v3929_v56 }
0x1347   : > { %v3931_v49 = vmul.f32 %v3930_v38, %v3930_v38 }
0x1349   : > { %v3932_v10 = vsel %vm1024_vm1, %v3931_v49, 0.0 }
0x134a   : > { %3933 = vadd.xlane.f32.xlu0 %v3932_v10 }
0x13d0   : > { %v3971_v15 = vpop.xlane.xlu1 %3970 }
0x13d1   : > { %v3972_v4 = vmul.f32 %v3971_v15, %v3894_v24 }
0x13d3   : > { %v3973_v43 = vsub.f32 %v3967_v52, %v3972_v4 }
0x13d7   : > { %v3934_v16 = vpop.xlane.xlu0 %3933 }
0x13d8   : > { %v3935_v35 = vadd.f32 1e-12, %v3934_v16 }
0x13da   : > { %10084 = vrsqrt.f32 %v3935_v35 }
0x13e4   : > { %v10085_v46 = vpop.eup %10084 }
0x13e5   : > { %v3937_v29 = vmul.f32 %v10085_v46, %v3930_v38 }
0x13e7   : > { %v3974_v42 = vmul.f32 %v3973_v43, %v3937_v29  ;;  %v4006_v36 = vsel %vm1024_vm1, %v3937_v29, 0 }
0x13e8   : > { %v11364_v37 = vand.u32 4294901760, %v4006_v36 }
0x13e9   : > { %v3975_v57 = vsel %vm1024_vm1, %v3974_v42, 0.0 }
0x13ea   : > { %3976 = vadd.xlane.f32.xlu0 %v3975_v57  ;;  %v11368_v40 = vsub.f32 %v4006_v36, %v11364_v37 }
0x13ec   : > { %v11371_v8 = vand.u32 4294901760, %v11368_v40 }
0x13ee   : > { %v4149_v24 = vsub.f32 %v11368_v40, %v11371_v8 }
0x13f0   : > { %v4150_v21 = vand.u32 4294901760, %v4149_v24  ;;  %v12244_v24 = vld [vmem:[#allocation32_spill] sm:$0xff] }
0x13f2   : > { %4151 = vmatmul.mubr.f32.gmra.mrb[36].mxu1 %v4150_v21  ;;  %4985 = vmatmul.mubr.f32.gmra.mrb[52].mxu0 %v4150_v21 }
0x13f3   : > { %4156 = vmatprep.mubr.f32.mxu1 %v12186_v11  ;;  %4990 = vmatprep.mubr.f32.mxu0 %v12186_v11 }
0x1477   : > { %v3977_v4 = vpop.xlane.xlu0 %3976 }
0x1478   : > { %v3978_v46 = vmul.f32 %v3977_v4, %v3937_v29 }
0x147a   : > { %v3979_v52 = vsub.f32 %v3973_v43, %v3978_v46 }
0x147c   : > { %v3980_v56 = vmul.f32 %v3979_v52, %v3979_v52 }
0x147e   : > { %v3981_v38 = vsel %vm1024_vm1, %v3980_v56, 0.0 }
0x147f   : > { %3982 = vadd.xlane.f32.xlu1 %v3981_v38 }
0x150c   : > { %v3983_v49 = vpop.xlane.xlu1 %3982 }
0x150d   : > { %v3984_v10 = vadd.f32 1e-12, %v3983_v49 }
0x150f   : > { %10086 = vrsqrt.f32 %v3984_v10 }
0x1519   : > { %v10087_v16 = vpop.eup %10086 }
0x151a   : > { %v3986_v35 = vmul.f32 %v10087_v16, %v3979_v52  ;;  %v12252_v16 = vld [vmem:[#allocation15_spill] sm:$0xff] }
0x151c   : > { %v4009_v15 = vsel %vm1024_vm1, %v3986_v35, 0  ;;  %v12253_v35 = vld [vmem:[#allocation18_spill] sm:$0xff] }
0x151d   : > { %v11379_v42 = vand.u32 4294901760, %v4009_v15 }
0x151f   : > { %v11382_v36 = vsub.f32 %v4009_v15, %v11379_v42  ;;  %v12254_v15 = vld [vmem:[#allocation21_spill] sm:$0xff] }
0x1521   : > { %v11385_v57 = vand.u32 4294901760, %v11382_v36 }
0x1523   : > { %v4160_v43 = vsub.f32 %v11382_v36, %v11385_v57 }
0x1525   : > { %v4161_v29 = vand.u32 4294901760, %v4160_v43  ;;  %v12257_v43 = vld [vmem:[#allocation10_spill] sm:$0xff] }
0x1527   : > { %4162 = vmatmul.mubr.f32.gmra.mrb[38].mxu1 %v4161_v29  ;;  %4996 = vmatmul.mubr.f32.gmra.mrb[54].mxu0 %v4161_v29  ;;  %v12258_v29 = vld [vmem:[#allocation11_spill] sm:$0xff] }
0x1528   : > { %4252 = vmatprep.mubr.f32.mxu1 %v12186_v11  ;;  %5086 = vmatprep.mubr.f32.mxu0 %v12186_v11 }
0x152b   : > { %4254 = vmatmul.mubr.f32.vlgmr.msra.gmra.mrb[24].mxu1 %v11180_v50  ;;  %5088 = vmatmul.mubr.f32.vlgmr.msra.gmra.mrb[40].mxu0 %v11180_v50 }
0x152c   : > { %9295 = vmatpush1.bf16.msra.mxu1 %v12244_v24  ;;  %4259 = vmatprep.mubr.f32.mxu1 %v12186_v11 }
0x152d   : > { %5093 = vmatprep.mubr.f32.mxu0 %v12186_v11  ;;  %9319 = vmatpush1.bf16.msra.mxu0 %v10909_v48 }
0x152e   : > { %9297 = vmatprep.subr.bf16.mxu1 %v10453_v58  ;;  %9321 = vmatprep.subr.bf16.mxu0 %v10757_v51 }
0x152f   : > { %4261 = vmatmul.mubr.f32.gmra.mrb[26].mxu1 %v11211_v12  ;;  %5095 = vmatmul.mubr.f32.gmra.mrb[42].mxu0 %v11211_v12 }
0x1530   : > { %4266 = vmatprep.mubr.f32.mxu1 %v12186_v11  ;;  %5100 = vmatprep.mubr.f32.mxu0 %v12186_v11 }
0x1533   : > { %4268 = vmatmul.mubr.f32.gmra.mrb[28].mxu1 %v11240_v47  ;;  %5102 = vmatmul.mubr.f32.gmra.mrb[44].mxu0 %v11240_v47 }
0x1534   : > { %4273 = vmatprep.mubr.f32.mxu1 %v12186_v11  ;;  %5107 = vmatprep.mubr.f32.mxu0 %v12186_v11 }
0x1537   : > { %4275 = vmatmul.mubr.f32.gmra.mrb[30].mxu1 %v11282_v53  ;;  %5109 = vmatmul.mubr.f32.gmra.mrb[46].mxu0 %v11282_v53 }
0x1538   : > { %4280 = vmatprep.mubr.f32.mxu1 %v12186_v11  ;;  %5114 = vmatprep.mubr.f32.mxu0 %v12186_v11 }
0x153b   : > { %4282 = vmatmul.mubr.f32.gmra.mrb[32].mxu1 %v11319_v31  ;;  %5116 = vmatmul.mubr.f32.gmra.mrb[48].mxu0 %v11319_v31 }
0x153c   : > { %4287 = vmatprep.mubr.f32.mxu1 %v12186_v11  ;;  %5121 = vmatprep.mubr.f32.mxu0 %v12186_v11 }
0x153f   : > { %4289 = vmatmul.mubr.f32.gmra.mrb[34].mxu1 %v11347_v44  ;;  %5123 = vmatmul.mubr.f32.gmra.mrb[50].mxu0 %v11347_v44 }
0x1540   : > { %4294 = vmatprep.mubr.f32.mxu1 %v12186_v11  ;;  %5128 = vmatprep.mubr.f32.mxu0 %v12186_v11 }
0x1543   : > { %4296 = vmatmul.mubr.f32.gmra.mrb[36].mxu1 %v11364_v37  ;;  %5130 = vmatmul.mubr.f32.gmra.mrb[52].mxu0 %v11364_v37 }
0x1544   : > { %4301 = vmatprep.mubr.f32.mxu1 %v12186_v11  ;;  %5135 = vmatprep.mubr.f32.mxu0 %v12186_v11 }
0x1547   : > { %4303 = vmatmul.mubr.f32.gmra.mrb[38].mxu1 %v11379_v42  ;;  %5137 = vmatmul.mubr.f32.gmra.mrb[54].mxu0 %v11379_v42 }
0x1548   : > { %4381 = vmatprep.mubr.f32.mxu1 %v12186_v11  ;;  %5215 = vmatprep.mubr.f32.mxu0 %v12186_v11 }
0x154b   : > { %4384 = vmatmul.mubr.f32.vlgmr.msra.gmra.mrb[24].mxu1 %v11185_v19  ;;  %5218 = vmatmul.mubr.f32.vlgmr.msra.gmra.mrb[40].mxu0 %v11185_v19  ;;  %v8552_v19 = vld [vmem:[%s12095_s1 + $0x40] sm:$0xff] }
0x154c   : > { %9299 = vmatpush1.bf16.msra.mxu1 %v10459_v60  ;;  %4389 = vmatprep.mubr.f32.mxu1 %v12186_v11 }
0x154d   : > { %5223 = vmatprep.mubr.f32.mxu0 %v12186_v11  ;;  %9323 = vmatpush1.bf16.msra.mxu0 %v10821_v17 }
0x154e   : > { %9301 = vmatprep.subr.bf16.mxu1 %v10803_v54  ;;  %9325 = vmatprep.subr.bf16.mxu0 %v10953_v9 }
0x154f   : > { %4392 = vmatmul.mubr.f32.gmra.mrb[26].mxu1 %v11216_v61  ;;  %5226 = vmatmul.mubr.f32.gmra.mrb[42].mxu0 %v11216_v61  ;;  %v8553_v61 = vld [vmem:[%s12095_s1 + $0x48] sm:$0xff] }
0x1550   : > { %4397 = vmatprep.mubr.f32.mxu1 %v12186_v11  ;;  %5231 = vmatprep.mubr.f32.mxu0 %v12186_v11 }
0x1553   : > { %4400 = vmatmul.mubr.f32.gmra.mrb[28].mxu1 %v11246_v45  ;;  %5234 = vmatmul.mubr.f32.gmra.mrb[44].mxu0 %v11246_v45  ;;  %v5721_v45 = vand.u32 4294901760, %v8553_v61 }
0x1554   : > { %4405 = vmatprep.mubr.f32.mxu1 %v12186_v11  ;;  %5239 = vmatprep.mubr.f32.mxu0 %v12186_v11 }
0x1557   : > { %4408 = vmatmul.mubr.f32.gmra.mrb[30].mxu1 %v11287_v20  ;;  %5242 = vmatmul.mubr.f32.gmra.mrb[46].mxu0 %v11287_v20 }
0x1558   : > { %4413 = vmatprep.mubr.f32.mxu1 %v12186_v11  ;;  %5247 = vmatprep.mubr.f32.mxu0 %v12186_v11 }
0x155b   : > { %4416 = vmatmul.mubr.f32.gmra.mrb[32].mxu1 %v11324_v14  ;;  %5250 = vmatmul.mubr.f32.gmra.mrb[48].mxu0 %v11324_v14  ;;  %v11483_v14 = vsub.f32 %v8553_v61, %v5721_v45  ;;  %v12260_v61 = vld [vmem:[#allocation17_spill] sm:$0xff] }
0x155c   : > { %4421 = vmatprep.mubr.f32.mxu1 %v12186_v11  ;;  %5255 = vmatprep.mubr.f32.mxu0 %v12186_v11 }
0x155f   : > { %4424 = vmatmul.mubr.f32.gmra.mrb[34].mxu1 %v11351_v5  ;;  %5258 = vmatmul.mubr.f32.gmra.mrb[50].mxu0 %v11351_v5  ;;  %v5876_v5 = vand.u32 4294901760, %v11483_v14 }
0x1560   : > { %4429 = vmatprep.mubr.f32.mxu1 %v12186_v11  ;;  %5263 = vmatprep.mubr.f32.mxu0 %v12186_v11 }
0x1561   : > { %v5877_v4 = vsub.f32 %v11483_v14, %v5876_v5 }
0x1563   : > { %4432 = vmatmul.mubr.f32.gmra.mrb[36].mxu1 %v11368_v40  ;;  %5266 = vmatmul.mubr.f32.gmra.mrb[52].mxu0 %v11368_v40  ;;  %v5878_v56 = vand.u32 4294901760, %v5877_v4 }
0x1564   : > { %4437 = vmatprep.mubr.f32.mxu1 %v12186_v11  ;;  %5271 = vmatprep.mubr.f32.mxu0 %v12186_v11 }
0x1567   : > { %4440 = vmatmul.mubr.f32.gmra.mrb[38].mxu1 %v11382_v36  ;;  %5274 = vmatmul.mubr.f32.gmra.mrb[54].mxu0 %v11382_v36 }
0x1568   : > { %4514 = vmatprep.mubr.f32.mxu1 %v12186_v11  ;;  %5348 = vmatprep.mubr.f32.mxu0 %v12186_v11 }
0x156b   : > { %4518 = vmatmul.mubr.f32.vlgmr.msra.gmra.mrb[24].mxu1 %v11188_v22  ;;  %5352 = vmatmul.mubr.f32.vlgmr.msra.gmra.mrb[40].mxu0 %v11188_v22  ;;  %v5718_v22 = vand.u32 4294901760, %v8552_v19 }
0x156c   : > { %9303 = vmatpush1.bf16.msra.mxu1 %v10865_v6  ;;  %4523 = vmatprep.mubr.f32.mxu1 %v12186_v11 }
0x156d   : > { %5357 = vmatprep.mubr.f32.mxu0 %v12186_v11  ;;  %9327 = vmatpush1.bf16.msra.mxu0 %v11016_v13  ;;  %v11481_v20 = vsub.f32 %v8552_v19, %v5718_v22  ;;  %v12259_v19 = vld [vmem:[#allocation14_spill] sm:$0xff] }
0x156e   : > { %9305 = vmatprep.subr.bf16.mxu1 %v10453_v58  ;;  %9329 = vmatprep.subr.bf16.mxu0 %v10757_v51 }
0x156f   : > { %4527 = vmatmul.mubr.f32.gmra.mrb[26].mxu1 %v11219_v2  ;;  %5361 = vmatmul.mubr.f32.gmra.mrb[42].mxu0 %v11219_v2  ;;  %v5869_v2 = vand.u32 4294901760, %v11481_v20 }
0x1570   : > { %4532 = vmatprep.mubr.f32.mxu1 %v12186_v11  ;;  %5366 = vmatprep.mubr.f32.mxu0 %v12186_v11 }
0x1571   : > { %v11495_v40 = vpack.c.bf16 %v5876_v5, %v5869_v2  ;;  %v5870_v21 = vsub.f32 %v11481_v20, %v5869_v2 }
0x1573   : > { %4536 = vmatmul.mubr.f32.gmra.mrb[28].mxu1 %v11249_v41  ;;  %5370 = vmatmul.mubr.f32.gmra.mrb[44].mxu0 %v11249_v41  ;;  %v11513_v41 = vpack.c.bf16 %v5721_v45, %v5718_v22  ;;  %v5871_v52 = vand.u32 4294901760, %v5870_v21  ;;  %v12261_v22 = vld [vmem:[#allocation20_spill] sm:$0xff]  ;;  %v12262_v45 = vld [vmem:[#allocation22_spill] sm:$0xff] }
0x1574   : > { %4541 = vmatprep.mubr.f32.mxu1 %v12186_v11  ;;  %5375 = vmatprep.mubr.f32.mxu0 %v12186_v11 }
0x1575   : > { %v9340_v38 = vpack.c.bf16 %v5878_v56, %v5871_v52 }
0x1577   : > { %4545 = vmatmul.mubr.f32.gmra.mrb[30].mxu1 %v11290_v3  ;;  %5379 = vmatmul.mubr.f32.gmra.mrb[46].mxu0 %v11290_v3  ;;  %v8554_v3 = vld [vmem:[%s12095_s1 + $0x50] sm:$0xff] }
0x1578   : > { %4550 = vmatprep.mubr.f32.mxu1 %v12186_v11  ;;  %5384 = vmatprep.mubr.f32.mxu0 %v12186_v11 }
0x157b   : > { %4554 = vmatmul.mubr.f32.gmra.mrb[32].mxu1 %v11327_v26  ;;  %5388 = vmatmul.mubr.f32.gmra.mrb[48].mxu0 %v11327_v26  ;;  %v8555_v26 = vld [vmem:[%s12095_s1 + $0x58] sm:$0xff] }
0x157c   : > { %4559 = vmatprep.mubr.f32.mxu1 %v12186_v11  ;;  %5393 = vmatprep.mubr.f32.mxu0 %v12186_v11 }
0x157f   : > { %4563 = vmatmul.mubr.f32.gmra.mrb[34].mxu1 %v11354_v59  ;;  %5397 = vmatmul.mubr.f32.gmra.mrb[50].mxu0 %v11354_v59  ;;  %v5724_v59 = vand.u32 4294901760, %v8554_v3 }
0x1580   : > { %4568 = vmatprep.mubr.f32.mxu1 %v12186_v11  ;;  %5402 = vmatprep.mubr.f32.mxu0 %v12186_v11 }
0x1583   : > { %4572 = vmatmul.mubr.f32.gmra.mrb[36].mxu1 %v11371_v8  ;;  %5406 = vmatmul.mubr.f32.gmra.mrb[52].mxu0 %v11371_v8  ;;  %v5727_v8 = vand.u32 4294901760, %v8555_v26 }
0x1584   : > { %4577 = vmatprep.mubr.f32.mxu1 %v12186_v11  ;;  %5411 = vmatprep.mubr.f32.mxu0 %v12186_v11 }
0x1585   : > { %v11559_v46 = vpack.c.bf16 %v5727_v8, %v5724_v59 }
0x1587   : > { %4581 = vmatmul.mubr.f32.gmra.mrb[38].mxu1 %v11385_v57  ;;  %5415 = vmatmul.mubr.f32.gmra.mrb[54].mxu0 %v11385_v57  ;;  %v12256_v57 = vld [vmem:[#allocation9_spill] sm:$0xff] }
0x1588   : > { %4663 = vmatprep.mubr.f32.mxu1 %v12186_v11  ;;  %5497 = vmatprep.mubr.f32.mxu0 %v12186_v11 }
0x158b   : > { %4665 = vmatmul.mubr.f32.vlgmr.msra.gmra.mrb[24].mxu1 %v11180_v50  ;;  %5499 = vmatmul.mubr.f32.vlgmr.msra.gmra.mrb[40].mxu0 %v11180_v50 }
0x158c   : > { %9307 = vmatpush1.bf16.msra.mxu1 %v10459_v60  ;;  %4670 = vmatprep.mubr.f32.mxu1 %v12186_v11 }
0x158d   : > { %5504 = vmatprep.mubr.f32.mxu0 %v12186_v11  ;;  %9331 = vmatpush1.bf16.msra.mxu0 %v10821_v17 }
0x158e   : > { %9333 = vmatprep.subr.bf16.mxu1 %v11513_v41  ;;  %9381 = vmatprep.subr.bf16.mxu0 %v10453_v58 }
0x158f   : > { %4672 = vmatmul.mubr.f32.gmra.mrb[26].mxu1 %v11211_v12  ;;  %5506 = vmatmul.mubr.f32.gmra.mrb[42].mxu0 %v11211_v12 }
0x1590   : > { %4677 = vmatprep.mubr.f32.mxu1 %v12186_v11  ;;  %5511 = vmatprep.mubr.f32.mxu0 %v12186_v11 }
0x1593   : > { %4679 = vmatmul.mubr.f32.gmra.mrb[28].mxu1 %v11240_v47  ;;  %5513 = vmatmul.mubr.f32.gmra.mrb[44].mxu0 %v11240_v47 }
0x1594   : > { %4684 = vmatprep.mubr.f32.mxu1 %v12186_v11  ;;  %5518 = vmatprep.mubr.f32.mxu0 %v12186_v11 }
0x1597   : > { %4686 = vmatmul.mubr.f32.gmra.mrb[30].mxu1 %v11282_v53  ;;  %5520 = vmatmul.mubr.f32.gmra.mrb[46].mxu0 %v11282_v53 }
0x1598   : > { %4691 = vmatprep.mubr.f32.mxu1 %v12186_v11  ;;  %5525 = vmatprep.mubr.f32.mxu0 %v12186_v11 }
0x159b   : > { %4693 = vmatmul.mubr.f32.gmra.mrb[32].mxu1 %v11319_v31  ;;  %5527 = vmatmul.mubr.f32.gmra.mrb[48].mxu0 %v11319_v31 }
0x159c   : > { %4698 = vmatprep.mubr.f32.mxu1 %v12186_v11  ;;  %5532 = vmatprep.mubr.f32.mxu0 %v12186_v11 }
0x159f   : > { %4700 = vmatmul.mubr.f32.gmra.mrb[34].mxu1 %v11347_v44  ;;  %5534 = vmatmul.mubr.f32.gmra.mrb[50].mxu0 %v11347_v44 }
0x15a0   : > { %4705 = vmatprep.mubr.f32.mxu1 %v12186_v11  ;;  %5539 = vmatprep.mubr.f32.mxu0 %v12186_v11 }
0x15a3   : > { %4707 = vmatmul.mubr.f32.gmra.mrb[36].mxu1 %v11364_v37  ;;  %5541 = vmatmul.mubr.f32.gmra.mrb[52].mxu0 %v11364_v37 }
0x15a4   : > { %4712 = vmatprep.mubr.f32.mxu1 %v12186_v11  ;;  %5546 = vmatprep.mubr.f32.mxu0 %v12186_v11 }
0x15a7   : > { %4714 = vmatmul.mubr.f32.gmra.mrb[38].mxu1 %v11379_v42  ;;  %5548 = vmatmul.mubr.f32.gmra.mrb[54].mxu0 %v11379_v42 }
0x15a8   : > { %4788 = vmatprep.mubr.f32.mxu1 %v12186_v11  ;;  %5622 = vmatprep.mubr.f32.mxu0 %v12186_v11 }
0x15ab   : > { %4790 = vmatmul.mubr.f32.vlgmr.msra.gmra.mrb[24].mxu1 %v11180_v50  ;;  %5624 = vmatmul.mubr.f32.vlgmr.msra.gmra.mrb[40].mxu0 %v11180_v50  ;;  %v11582_v50 = vsub.f32 %v8554_v3, %v5724_v59 }
0x15ac   : > { %9335 = vmatpush3.bf16.msra.mxu1 %v11513_v41  ;;  %4795 = vmatprep.mubr.f32.mxu1 %v12186_v11 }
0x15ad   : > { %5629 = vmatprep.mubr.f32.mxu0 %v12186_v11  ;;  %9337 = vmatprep.subr.bf16.mxu1 %v11559_v46 }
0x15ae   : > { %9383 = vmatpush1.bf16.msra.mxu0 %v10459_v60 }
0x15af   : > { %4797 = vmatmul.mubr.f32.gmra.mrb[26].mxu1 %v11211_v12  ;;  %5631 = vmatmul.mubr.f32.gmra.mrb[42].mxu0 %v11211_v12  ;;  %v5883_v12 = vand.u32 4294901760, %v11582_v50 }
0x15b0   : > { %4802 = vmatprep.mubr.f32.mxu1 %v12186_v11  ;;  %5636 = vmatprep.mubr.f32.mxu0 %v12186_v11 }
0x15b1   : > { %9339 = vmatpush3.bf16.msra.mxu1 %v11559_v46  ;;  %9385 = vmatprep.subr.bf16.mxu0 %v12233_v55  ;;  %v11584_v55 = vsub.f32 %v8555_v26, %v5727_v8 }
0x15b2   : > { %9341 = vmatprep.subr.bf16.mxu1 %v9340_v38 }
0x15b3   : > { %4804 = vmatmul.mubr.f32.gmra.mrb[28].mxu1 %v11240_v47  ;;  %5638 = vmatmul.mubr.f32.gmra.mrb[44].mxu0 %v11240_v47  ;;  %v5890_v47 = vand.u32 4294901760, %v11584_v55 }
0x15b4   : > { %4809 = vmatprep.mubr.f32.mxu1 %v12186_v11  ;;  %5643 = vmatprep.mubr.f32.mxu0 %v12186_v11 }
0x15b5   : > { %v9368_v36 = vpack.c.bf16 %v5890_v47, %v5883_v12 }
0x15b7   : > { %4811 = vmatmul.mubr.f32.gmra.mrb[30].mxu1 %v11282_v53  ;;  %5645 = vmatmul.mubr.f32.gmra.mrb[46].mxu0 %v11282_v53  ;;  %v5884_v53 = vsub.f32 %v11582_v50, %v5883_v12 }
0x15b8   : > { %4816 = vmatprep.mubr.f32.mxu1 %v12186_v11  ;;  %5650 = vmatprep.mubr.f32.mxu0 %v12186_v11 }
0x15b9   : > { %v5885_v49 = vand.u32 4294901760, %v5884_v53 }
0x15bb   : > { %4818 = vmatmul.mubr.f32.gmra.mrb[32].mxu1 %v11319_v31  ;;  %5652 = vmatmul.mubr.f32.gmra.mrb[48].mxu0 %v11319_v31  ;;  %v5891_v31 = vsub.f32 %v11584_v55, %v5890_v47 }
0x15bc   : > { %4823 = vmatprep.mubr.f32.mxu1 %v12186_v11  ;;  %5657 = vmatprep.mubr.f32.mxu0 %v12186_v11 }
0x15bd   : > { %v5892_v10 = vand.u32 4294901760, %v5891_v31 }
0x15bf   : > { %4825 = vmatmul.mubr.f32.gmra.mrb[34].mxu1 %v11347_v44  ;;  %5659 = vmatmul.mubr.f32.gmra.mrb[50].mxu0 %v11347_v44  ;;  %v9344_v44 = vpack.c.bf16 %v5892_v10, %v5885_v49 }
0x15c0   : > { %4830 = vmatprep.mubr.f32.mxu1 %v12186_v11  ;;  %5664 = vmatprep.mubr.f32.mxu0 %v12186_v11 }
0x15c3   : > { %4832 = vmatmul.mubr.f32.gmra.mrb[36].mxu1 %v11364_v37  ;;  %5666 = vmatmul.mubr.f32.gmra.mrb[52].mxu0 %v11364_v37  ;;  %v9348_v37 = vpack.c.bf16 %v11483_v14, %v11481_v20  ;;  %v12263_v20 = vld [vmem:[#allocation35_spill] sm:$0xff] }
0x15c4   : > { %4837 = vmatprep.mubr.f32.mxu1 %v12186_v11  ;;  %5671 = vmatprep.mubr.f32.mxu0 %v12186_v11 }
0x15c7   : > { %4839 = vmatmul.mubr.f32.gmra.mrb[38].mxu1 %v11379_v42  ;;  %5673 = vmatmul.mubr.f32.gmra.mrb[54].mxu0 %v11379_v42  ;;  %v12255_v42 = vld [vmem:[#allocation8_spill] sm:$0xff] }
0x15c8   : > { %9028 = vmatprep.mubr.f32.mxu1 %v10299_v62  ;;  %6819 = vmatprep.mubr.f32.mxu0 %v12186_v11  ;;  %v9352_v62 = vpack.c.bf16 %v11584_v55, %v11582_v50 }
0x15cb   : > { %9029 = vmatmul.mubr.f32.vlgmr.msra.gmra.mrb[40].mxu1 %v10301_v63  ;;  %v12245_v63 = vld [vmem:[#allocation16_spill] sm:$0xff] }
0x15cc   : > { %9343 = vmatpush3.bf16.msra.mxu1 %v9340_v38  ;;  %9031 = vmatprep.mubr.f32.mxu1 %v10306_v1  ;;  %v12246_v1 = vld [vmem:[#allocation19_spill] sm:$0xff] }
0x15cd   : > { %9345 = vmatprep.subr.bf16.mxu1 %v9344_v44 }
0x15cf   : > { %9032 = vmatmul.mubr.f32.gmra.mrb[42].mxu1 %v10318_v7  ;;  %v12247_v7 = vld [vmem:[#allocation3_spill] sm:$0xff] }
0x15d0   : > { %9034 = vmatprep.mubr.f32.mxu1 %v10326_v18  ;;  %9347 = vmatpush3.bf16.msra.mxu1 %v9344_v44  ;;  %v12248_v18 = vld [vmem:[#allocation4_spill] sm:$0xff] }
0x15d1   : > { %9349 = vmatprep.subr.bf16.mxu1 %v9348_v37 }
0x15d3   : > { %9035 = vmatmul.mubr.f32.gmra.mrb[44].mxu1 %v10339_v25  ;;  %v12249_v25 = vld [vmem:[#allocation5_spill] sm:$0xff] }
0x15d4   : > { %9037 = vmatprep.mubr.f32.mxu1 %v10347_v30  ;;  %v12250_v30 = vld [vmem:[#allocation6_spill] sm:$0xff] }
0x15d7   : > { %9038 = vmatmul.mubr.f32.gmra.mrb[46].mxu1 %v10352_v32  ;;  %v12251_v32 = vld [vmem:[#allocation12_spill] sm:$0xff] }
0x15d8   : > { %9048 = vmatprep.mubr.f32.mxu1 %v10234_v27 }
0x15db   : > { %9049 = vmatmul.mubr.f32.vlgmr.msra.gmra.mrb[40].mxu1 %v10236_v28 }
0x15dc   : > { %9351 = vmatpush3.bf16.msra.mxu1 %v9348_v37  ;;  %9051 = vmatprep.mubr.f32.mxu1 %v10240_v33 }
0x15dd   : > { %9353 = vmatprep.subr.bf16.mxu1 %v9352_v62 }
0x15df   : > { %9052 = vmatmul.mubr.f32.gmra.mrb[42].mxu1 %v10242_v34 }
0x15e0   : > { %9054 = vmatprep.mubr.f32.mxu1 %v12213_v39  ;;  %9355 = vmatpush3.bf16.msra.mxu1 %v9352_v62 }
0x15e1   : > { %9357 = vmatprep.subr.bf16.mxu1 %v11513_v41 }
0x15e3   : > { %9055 = vmatmul.mubr.f32.gmra.mrb[44].mxu1 %v12214_v0 }
0x15e4   : > { %9057 = vmatprep.mubr.f32.mxu1 %v12245_v63 }
0x15e7   : > { %9058 = vmatmul.mubr.f32.gmra.mrb[46].mxu1 %v12246_v1 }
0x15e8   : > { %9068 = vmatprep.mubr.f32.mxu1 %v12247_v7 }
0x15eb   : > { %9069 = vmatmul.mubr.f32.vlgmr.msra.gmra.mrb[40].mxu1 %v12248_v18 }
0x15ec   : > { %9359 = vmatpush3.bf16.msra.mxu1 %v11513_v41  ;;  %9071 = vmatprep.mubr.f32.mxu1 %v12249_v25 }
0x15ed   : > { %9361 = vmatprep.subr.bf16.mxu1 %v11559_v46 }
0x15ef   : > { %9072 = vmatmul.mubr.f32.gmra.mrb[42].mxu1 %v12250_v30 }
0x15f0   : > { %9074 = vmatprep.mubr.f32.mxu1 %v12251_v32  ;;  %9363 = vmatpush3.bf16.msra.mxu1 %v11559_v46 }
0x15f1   : > { %9365 = vmatprep.subr.bf16.mxu1 %v11495_v40 }
0x15f3   : > { %9075 = vmatmul.mubr.f32.gmra.mrb[44].mxu1 %v12252_v16 }
0x15f4   : > { %9077 = vmatprep.mubr.f32.mxu1 %v12253_v35 }
0x15f7   : > { %9078 = vmatmul.mubr.f32.gmra.mrb[46].mxu1 %v12254_v15 }
0x15f8   : > { %9088 = vmatprep.mubr.f32.mxu1 %v12255_v42 }
0x15fb   : > { %9089 = vmatmul.mubr.f32.vlgmr.msra.gmra.mrb[40].mxu1 %v12256_v57 }
0x15fc   : > { %9367 = vmatpush3.bf16.msra.mxu1 %v11495_v40  ;;  %9091 = vmatprep.mubr.f32.mxu1 %v12257_v43 }
0x15fd   : > { %9369 = vmatprep.subr.bf16.mxu1 %v9368_v36 }
0x15ff   : > { %9092 = vmatmul.mubr.f32.gmra.mrb[42].mxu1 %v12258_v29 }
0x1600   : > { %9094 = vmatprep.mubr.f32.mxu1 %v12259_v19  ;;  %9371 = vmatpush3.bf16.msra.mxu1 %v9368_v36 }
0x1601   : > { %9373 = vmatprep.subr.bf16.mxu1 %v11513_v41 }
0x1603   : > { %9095 = vmatmul.mubr.f32.gmra.mrb[44].mxu1 %v12260_v61 }
0x1604   : > { %9097 = vmatprep.mubr.f32.mxu1 %v12261_v22 }
0x1607   : > { %9098 = vmatmul.mubr.f32.gmra.mrb[46].mxu1 %v12262_v45 }
0x1608   : > { %9108 = vmatprep.mubr.f32.mxu1 %v10234_v27 }
0x160b   : > { %9109 = vmatmul.mubr.f32.vlgmr.msra.gmra.mrb[40].mxu1 %v10236_v28 }
0x160c   : > { %9375 = vmatpush3.bf16.msra.mxu1 %v11513_v41  ;;  %9111 = vmatprep.mubr.f32.mxu1 %v10240_v33 }
0x160d   : > { %9377 = vmatprep.subr.bf16.mxu1 %v11559_v46 }
0x160f   : > { %9112 = vmatmul.mubr.f32.gmra.mrb[42].mxu1 %v10242_v34 }
0x1610   : > { %9114 = vmatprep.mubr.f32.mxu1 %v12213_v39  ;;  %9379 = vmatpush3.bf16.msra.mxu1 %v11559_v46 }
0x1611   : > { %9405 = vmatprep.subr.bf16.mxu1 %v10757_v51 }
0x1613   : > { %9115 = vmatmul.mubr.f32.gmra.mrb[44].mxu1 %v12214_v0 }
0x1614   : > { %9117 = vmatprep.mubr.f32.mxu1 %v12245_v63 }
0x1617   : > { %9118 = vmatmul.mubr.f32.gmra.mrb[46].mxu1 %v12246_v1 }
0x1618   : > { %9128 = vmatprep.mubr.f32.mxu1 %v10234_v27 }
0x161b   : > { %9129 = vmatmul.mubr.f32.vlgmr.msra.gmra.mrb[40].mxu1 %v10236_v28 }
0x161c   : > { %9131 = vmatprep.mubr.f32.mxu1 %v10240_v33  ;;  %9407 = vmatpush1.bf16.msra.mxu1 %v10821_v17 }
0x161d   : > { %9409 = vmatprep.subr.bf16.mxu1 %v12263_v20 }
0x161f   : > { %9132 = vmatmul.mubr.f32.gmra.mrb[42].mxu1 %v10242_v34 }
0x1620   : > { %9134 = vmatprep.mubr.f32.mxu1 %v12213_v39 }
0x1623   : > { %9135 = vmatmul.mubr.f32.gmra.mrb[44].mxu1 %v12214_v0 }
0x1624   : > { %9137 = vmatprep.mubr.f32.mxu1 %v12245_v63 }
0x1627   : > { %9138 = vmatmul.mubr.f32.gmra.mrb[46].mxu1 %v12246_v1 }
0x1628   : > { %7653 = vmatprep.mubr.f32.mxu1 %v12186_v11 }
0x167e   : > { %v4791_v27 = vpop.f32.mrb[24].mxu1  ;;  %v5625_v28 = vpop.f32.mrb[40].mxu0 }
0x167f   : > { %v5679_v14 = vmul.f32 %v5625_v28, %v4791_v27  ;;  %v4793_v33 = vpop.f32.mrb[25].mxu1  ;;  %v5627_v2 = vpop.f32.mrb[41].mxu0 }
0x1680   : > { %v5680_v5 = vmul.f32 %v5627_v2, %v4793_v33 }
0x1682   : > { %v4798_v40 = vpop.f32.mrb[26].mxu1  ;;  %v5632_v41 = vpop.f32.mrb[42].mxu0 }
0x1683   : > { %v5681_v3 = vmul.f32 %v5632_v41, %v4798_v40  ;;  %v4800_v34 = vpop.f32.mrb[27].mxu1  ;;  %v5634_v26 = vpop.f32.mrb[43].mxu0 }
0x1684   : > { %v5682_v39 = vmul.f32 %v5634_v26, %v4800_v34 }
0x1685   : > { %v5695_v59 = vadd.f32 %v5681_v3, %v5679_v14 }
0x1686   : > { %v5696_v0 = vadd.f32 %v5682_v39, %v5680_v5  ;;  %v4805_v8 = vpop.f32.mrb[28].mxu1  ;;  %v5639_v21 = vpop.f32.mrb[44].mxu0 }
0x1687   : > { %v5683_v4 = vmul.f32 %v5639_v21, %v4805_v8  ;;  %v4807_v46 = vpop.f32.mrb[29].mxu1  ;;  %v5641_v52 = vpop.f32.mrb[45].mxu0 }
0x1688   : > { %v5684_v56 = vmul.f32 %v5641_v52, %v4807_v46 }
0x1689   : > { %v5697_v38 = vadd.f32 %v5695_v59, %v5683_v4 }
0x168a   : > { %v5698_v50 = vadd.f32 %v5696_v0, %v5684_v56  ;;  %v4812_v55 = vpop.f32.mrb[30].mxu1  ;;  %v5646_v12 = vpop.f32.mrb[46].mxu0 }
0x168b   : > { %v5685_v47 = vmul.f32 %v5646_v12, %v4812_v55  ;;  %v4814_v53 = vpop.f32.mrb[31].mxu1  ;;  %v5648_v31 = vpop.f32.mrb[47].mxu0 }
0x168c   : > { %v5686_v49 = vmul.f32 %v5648_v31, %v4814_v53 }
0x168d   : > { %v5699_v10 = vadd.f32 %v5697_v38, %v5685_v47 }
0x168e   : > { %v5700_v44 = vadd.f32 %v5698_v50, %v5686_v49  ;;  %v4819_v37 = vpop.f32.mrb[32].mxu1  ;;  %v5653_v62 = vpop.f32.mrb[48].mxu0 }
0x168f   : > { %v5687_v63 = vmul.f32 %v5653_v62, %v4819_v37  ;;  %v4821_v1 = vpop.f32.mrb[33].mxu1  ;;  %v5655_v7 = vpop.f32.mrb[49].mxu0 }
0x1690   : > { %v5688_v18 = vmul.f32 %v5655_v7, %v4821_v1 }
0x1691   : > { %v5701_v25 = vadd.f32 %v5699_v10, %v5687_v63 }
0x1692   : > { %v5702_v30 = vadd.f32 %v5700_v44, %v5688_v18  ;;  %v4826_v32 = vpop.f32.mrb[34].mxu1  ;;  %v5660_v16 = vpop.f32.mrb[50].mxu0 }
0x1693   : > { %v5689_v35 = vmul.f32 %v5660_v16, %v4826_v32  ;;  %v4828_v15 = vpop.f32.mrb[35].mxu1  ;;  %v5662_v42 = vpop.f32.mrb[51].mxu0  ;;  %v12266_v32 = vld [vmem:[#allocation36_spill] sm:$0xff] }
0x1694   : > { %v5690_v36 = vmul.f32 %v5662_v42, %v4828_v15 }
0x1695   : > { %v5703_v57 = vadd.f32 %v5701_v25, %v5689_v35  ;;  %v12264_v25 = vld [vmem:[#allocation37_spill] sm:$0xff] }
0x1696   : > { %v5704_v43 = vadd.f32 %v5702_v30, %v5690_v36  ;;  %v4833_v29 = vpop.f32.mrb[36].mxu1  ;;  %v5667_v19 = vpop.f32.mrb[52].mxu0  ;;  %v12265_v30 = vld [vmem:[#allocation31_spill] sm:$0xff] }
0x1697   : > { %v5691_v61 = vmul.f32 %v5667_v19, %v4833_v29  ;;  %v4835_v22 = vpop.f32.mrb[37].mxu1  ;;  %v5669_v45 = vpop.f32.mrb[53].mxu0 }
0x1698   : > { %v5692_v20 = vmul.f32 %v5669_v45, %v4835_v22 }
0x1699   : > { %v5705_v27 = vadd.f32 %v5703_v57, %v5691_v61 }
0x169a   : > { %v5706_v28 = vadd.f32 %v5704_v43, %v5692_v20  ;;  %v4840_v14 = vpop.f32.mrb[38].mxu1  ;;  %v5674_v33 = vpop.f32.mrb[54].mxu0 }
0x169b   : > { %v5693_v2 = vmul.f32 %v5674_v33, %v4840_v14  ;;  %v4842_v5 = vpop.f32.mrb[39].mxu1  ;;  %v5676_v40 = vpop.f32.mrb[55].mxu0 }
0x169c   : > { %v5694_v41 = vmul.f32 %v5676_v40, %v4842_v5 }
0x169d   : > { %v5707_v3 = vadd.f32 %v5705_v27, %v5693_v2 }
0x169e   : > { %v5708_v34 = vadd.f32 %v5706_v28, %v5694_v41 }
0x169f   : > { %8550 = vst [vmem:[%s11163_s15 + $0x10] sm:$0xff] %v5707_v3 }
0x16a0   : > { %8551 = vst [vmem:[%s11163_s15 + $0x18] sm:$0xff] %v5708_v34 }
0x16ee   : > { %v9130_v26 = vpop.f32.mrb[40].mxu1 }
0x16ef   : > { %v6457_v39 = vpop.f32.mrb[41].mxu1 }
0x16f0   : > { %v6503_v59 = vmul.f32 %v6457_v39, %v6457_v39 }
0x16f2   : > { %v9133_v0 = vpop.f32.mrb[42].mxu1  ;;  %v6504_v8 = vsel %vm1024_vm1, %v6503_v59, 0.0 }
0x16f3   : > { %6505 = vadd.xlane.f32.xlu0 %v6504_v8  ;;  %v6469_v21 = vpop.f32.mrb[43].mxu1 }
0x16f6   : > { %v11674_v4 = vpop.f32.mrb[44].mxu1 }
0x16f7   : > { %v11676_v46 = vpop.f32.mrb[45].mxu1 }
0x16fa   : > { %v11678_v52 = vpop.f32.mrb[46].mxu1 }
0x16fb   : > { %v11680_v56 = vpop.f32.mrb[47].mxu1 }
0x1780   : > { %v6506_v38 = vpop.xlane.xlu0 %6505 }
0x1781   : > { %v6507_v50 = vadd.f32 1e-12, %v6506_v38 }
0x1783   : > { %10088 = vrsqrt.f32 %v6507_v50 }
0x178d   : > { %v10089_v55 = vpop.eup %10088 }
0x178e   : > { %v11682_v12 = vmul.f32 %v10089_v55, %v6457_v39 }
0x1790   : > { %v6510_v47 = vmul.f32 %v9130_v26, %v11682_v12  ;;  %v6728_v53 = vsel %vm1024_vm1, %v11682_v12, 0  ;;  %v6523_v10 = vmul.f32 %v11682_v12, %v6469_v21  ;;  %v6542_v63 = vmul.f32 %v9133_v0, %v11682_v12 }
0x1791   : > { %v11687_v31 = vand.u32 4294901760, %v6728_v53  ;;  %v6567_v38 = vmul.f32 %v11682_v12, %v11676_v46 }
0x1792   : > { %v6511_v49 = vsel %vm1024_vm1, %v6510_v47, 0.0  ;;  %v6524_v62 = vsel %vm1024_vm1, %v6523_v10, 0.0  ;;  %v6543_v18 = vsel %vm1024_vm1, %v6542_v63, 0.0 }
0x1793   : > { %6512 = vadd.xlane.f32.xlu1 %v6511_v49  ;;  %v11692_v44 = vsub.f32 %v6728_v53, %v11687_v31  ;;  %v6568_v50 = vsel %vm1024_vm1, %v6567_v38, 0.0 }
0x1795   : > { %v11695_v37 = vand.u32 4294901760, %v11692_v44 }
0x1797   : > { %6525 = vadd.xlane.f32.xlu1 %v6524_v62  ;;  %v6823_v1 = vsub.f32 %v11692_v44, %v11695_v37 }
0x1799   : > { %v6824_v7 = vand.u32 4294901760, %v6823_v1 }
0x179b   : > { %7659 = vmatmul.mubr.f32.vlgmr.msra.gmra.mrb[48].mxu1 %v6824_v7  ;;  %6544 = vadd.xlane.f32.xlu1 %v6543_v18 }
0x179c   : > { %6825 = vmatmul.mubr.f32.vlgmr.msra.gmra.mrb[56].mxu0 %v6824_v7  ;;  %7664 = vmatprep.mubr.f32.mxu1 %v12186_v11 }
0x179d   : > { %6830 = vmatprep.mubr.f32.mxu0 %v12186_v11  ;;  %9387 = vmatpush1.bf16.msra.mxu0 %v12242_v23 }
0x179e   : > { %9411 = vmatpush1.bf16.msra.mxu1 %v12264_v25  ;;  %9389 = vmatprep.subr.bf16.mxu0 %v12265_v30 }
0x179f   : > { %9413 = vmatprep.subr.bf16.mxu1 %v12266_v32 }
0x1820   : > { %v6513_v16 = vpop.xlane.xlu1 %6512 }
0x1821   : > { %v6514_v35 = vmul.f32 %v6513_v16, %v11682_v12 }
0x1823   : > { %v6515_v15 = vsub.f32 %v9130_v26, %v6514_v35 }
0x1824   : > { %v6526_v43 = vpop.xlane.xlu1 %6525 }
0x1825   : > { %v6516_v42 = vmul.f32 %v6515_v15, %v6515_v15  ;;  %v6527_v23 = vmul.f32 %v6526_v43, %v11682_v12 }
0x1827   : > { %v6517_v36 = vsel %vm1024_vm1, %v6516_v42, 0.0  ;;  %v6528_v45 = vsub.f32 %v6469_v21, %v6527_v23 }
0x1828   : > { %6518 = vadd.xlane.f32.xlu0 %v6517_v36  ;;  %v6545_v19 = vpop.xlane.xlu1 %6544 }
0x1829   : > { %v6546_v61 = vmul.f32 %v6545_v19, %v11682_v12 }
0x182b   : > { %v6547_v20 = vsub.f32 %v9133_v0, %v6546_v61 }
0x18b5   : > { %v6519_v57 = vpop.xlane.xlu0 %6518 }
0x18b6   : > { %v6520_v29 = vadd.f32 1e-12, %v6519_v57 }
0x18b8   : > { %10090 = vrsqrt.f32 %v6520_v29 }
0x18c2   : > { %v10091_v22 = vpop.eup %10090 }
0x18c3   : > { %v11712_v27 = vmul.f32 %v10091_v22, %v6515_v15  ;;  %v6598_v15 = vmul.f32 %v11674_v4, %v11682_v12 }
0x18c5   : > { %v6529_v28 = vmul.f32 %v6528_v45, %v11712_v27  ;;  %v6548_v14 = vmul.f32 %v6547_v20, %v11712_v27  ;;  %v6731_v33 = vsel %vm1024_vm1, %v11712_v27, 0  ;;  %v6599_v57 = vsel %vm1024_vm1, %v6598_v15, 0.0 }
0x18c6   : > { %v11718_v2 = vand.u32 4294901760, %v6731_v33 }
0x18c7   : > { %v6530_v5 = vsel %vm1024_vm1, %v6529_v28, 0.0  ;;  %v6549_v40 = vsel %vm1024_vm1, %v6548_v14, 0.0  ;;  %v6635_v28 = vmul.f32 %v11682_v12, %v11680_v56 }
0x18c8   : > { %6531 = vadd.xlane.f32.xlu0 %v6530_v5  ;;  %6550 = vadd.xlane.f32.xlu1 %v6549_v40  ;;  %v11723_v41 = vsub.f32 %v6731_v33, %v11718_v2 }
0x18c9   : > { %v6636_v40 = vsel %vm1024_vm1, %v6635_v28, 0.0 }
0x18ca   : > { %v11726_v3 = vand.u32 4294901760, %v11723_v41 }
0x18cc   : > { %v6834_v34 = vsub.f32 %v11723_v41, %v11726_v3 }
0x18ce   : > { %v6835_v26 = vand.u32 4294901760, %v6834_v34 }
0x18d0   : > { %6836 = vmatmul.mubr.f32.gmra.mrb[58].mxu0 %v6835_v26  ;;  %7670 = vmatmul.mubr.f32.gmra.mrb[50].mxu1 %v6835_v26 }
0x18d1   : > { %6841 = vmatprep.mubr.f32.mxu0 %v12186_v11  ;;  %7675 = vmatprep.mubr.f32.mxu1 %v12186_v11 }
0x1955   : > { %v6532_v39 = vpop.xlane.xlu0 %6531  ;;  %v6551_v10 = vpop.xlane.xlu1 %6550 }
0x1956   : > { %v6533_v59 = vmul.f32 %v6532_v39, %v11712_v27  ;;  %v6552_v1 = vmul.f32 %v6551_v10, %v11712_v27 }
0x1958   : > { %v6534_v0 = vsub.f32 %v6528_v45, %v6533_v59  ;;  %v6553_v25 = vsub.f32 %v6547_v20, %v6552_v1  ;;  %v6678_v1 = vmul.f32 %v11678_v52, %v11682_v12 }
0x195a   : > { %v6535_v8 = vmul.f32 %v6534_v0, %v6534_v0 }
0x195c   : > { %v6536_v21 = vsel %vm1024_vm1, %v6535_v8, 0.0 }
0x195d   : > { %6537 = vadd.xlane.f32.xlu0 %v6536_v21 }
0x1961   : > { %6569 = vadd.xlane.f32.xlu0 %v6568_v50 }
0x19ea   : > { %v6538_v55 = vpop.xlane.xlu0 %6537 }
0x19eb   : > { %v6539_v47 = vadd.f32 1e-12, %v6538_v55 }
0x19ed   : > { %10092 = vrsqrt.f32 %v6539_v47 }
0x19ee   : > { %v6570_v53 = vpop.xlane.xlu0 %6569 }
0x19ef   : > { %v6571_v49 = vmul.f32 %v6570_v53, %v11682_v12 }
0x19f1   : > { %v6572_v62 = vsub.f32 %v11676_v46, %v6571_v49 }
0x19f3   : > { %v6573_v63 = vmul.f32 %v6572_v62, %v11712_v27 }
0x19f5   : > { %v6574_v7 = vsel %vm1024_vm1, %v6573_v63, 0.0 }
0x19f6   : > { %6575 = vadd.xlane.f32.xlu0 %v6574_v7 }
0x19f7   : > { %v10093_v18 = vpop.eup %10092 }
0x19f8   : > { %v11742_v30 = vmul.f32 %v10093_v18, %v6534_v0 }
0x19fa   : > { %v6554_v32 = vmul.f32 %v6553_v25, %v11742_v30  ;;  %v6734_v16 = vsel %vm1024_vm1, %v11742_v30, 0 }
0x19fb   : > { %v11747_v35 = vand.u32 4294901760, %v6734_v16 }
0x19fc   : > { %v6555_v46 = vsel %vm1024_vm1, %v6554_v32, 0.0 }
0x19fd   : > { %6556 = vadd.xlane.f32.xlu1 %v6555_v46  ;;  %v11753_v42 = vsub.f32 %v6734_v16, %v11747_v35  ;;  %v6679_v16 = vsel %vm1024_vm1, %v6678_v1, 0.0 }
0x19ff   : > { %v11756_v36 = vand.u32 4294901760, %v11753_v42 }
0x1a01   : > { %6600 = vadd.xlane.f32.xlu1 %v6599_v57  ;;  %v6845_v43 = vsub.f32 %v11753_v42, %v11756_v36 }
0x1a03   : > { %v6846_v29 = vand.u32 4294901760, %v6845_v43 }
0x1a05   : > { %6847 = vmatmul.mubr.f32.gmra.mrb[60].mxu0 %v6846_v29  ;;  %7681 = vmatmul.mubr.f32.gmra.mrb[52].mxu1 %v6846_v29 }
0x1a06   : > { %6852 = vmatprep.mubr.f32.mxu0 %v12186_v11  ;;  %7686 = vmatprep.mubr.f32.mxu1 %v12186_v11 }
0x1a83   : > { %v6576_v19 = vpop.xlane.xlu0 %6575 }
0x1a84   : > { %v6577_v23 = vmul.f32 %v6576_v19, %v11712_v27 }
0x1a86   : > { %v6578_v61 = vsub.f32 %v6572_v62, %v6577_v23 }
0x1a88   : > { %v6579_v22 = vmul.f32 %v6578_v61, %v11742_v30 }
0x1a8a   : > { %v6557_v45 = vpop.xlane.xlu1 %6556  ;;  %v6580_v20 = vsel %vm1024_vm1, %v6579_v22, 0.0 }
0x1a8b   : > { %v6558_v14 = vmul.f32 %v6557_v45, %v11742_v30  ;;  %6581 = vadd.xlane.f32.xlu1 %v6580_v20 }
0x1a8d   : > { %v6559_v33 = vsub.f32 %v6553_v25, %v6558_v14 }
0x1a8e   : > { %v6601_v5 = vpop.xlane.xlu1 %6600 }
0x1a8f   : > { %v6602_v34 = vmul.f32 %v6601_v5, %v11682_v12  ;;  %6637 = vadd.xlane.f32.xlu1 %v6636_v40  ;;  %v6560_v26 = vmul.f32 %v6559_v33, %v6559_v33 }
0x1a91   : > { %v6603_v39 = vsub.f32 %v11674_v4, %v6602_v34  ;;  %v6561_v59 = vsel %vm1024_vm1, %v6560_v26, 0.0 }
0x1a92   : > { %6562 = vadd.xlane.f32.xlu0 %v6561_v59 }
0x1a93   : > { %v6604_v0 = vmul.f32 %v6603_v39, %v11712_v27 }
0x1a95   : > { %v6605_v8 = vsel %vm1024_vm1, %v6604_v0, 0.0 }
0x1a96   : > { %6606 = vadd.xlane.f32.xlu0 %v6605_v8 }
0x1b18   : > { %v6582_v38 = vpop.xlane.xlu1 %6581 }
0x1b19   : > { %v6583_v4 = vmul.f32 %v6582_v38, %v11742_v30 }
0x1b1b   : > { %v6584_v18 = vsub.f32 %v6578_v61, %v6583_v4 }
0x1b1c   : > { %v6638_v53 = vpop.xlane.xlu1 %6637 }
0x1b1d   : > { %v6639_v62 = vmul.f32 %v6638_v53, %v11682_v12 }
0x1b1f   : > { %v6563_v21 = vpop.xlane.xlu0 %6562  ;;  %v6640_v25 = vsub.f32 %v11680_v56, %v6639_v62 }
0x1b20   : > { %v6564_v50 = vadd.f32 1e-12, %v6563_v21 }
0x1b21   : > { %v6641_v29 = vmul.f32 %v6640_v25, %v11712_v27 }
0x1b22   : > { %10094 = vrsqrt.f32 %v6564_v50 }
0x1b23   : > { %v6607_v55 = vpop.xlane.xlu0 %6606  ;;  %v6642_v23 = vsel %vm1024_vm1, %v6641_v29, 0.0 }
0x1b24   : > { %v6608_v47 = vmul.f32 %v6607_v55, %v11712_v27 }
0x1b26   : > { %v6609_v49 = vsub.f32 %v6603_v39, %v6608_v47 }
0x1b28   : > { %v6610_v10 = vmul.f32 %v6609_v49, %v11742_v30 }
0x1b2a   : > { %v6611_v63 = vsel %vm1024_vm1, %v6610_v10, 0.0 }
0x1b2b   : > { %6612 = vadd.xlane.f32.xlu1 %v6611_v63 }
0x1b2c   : > { %v10095_v7 = vpop.eup %10094 }
0x1b2d   : > { %v11783_v32 = vmul.f32 %v10095_v7, %v6559_v33 }
0x1b2f   : > { %6680 = vadd.xlane.f32.xlu1 %v6679_v16  ;;  %v6585_v46 = vmul.f32 %v6584_v18, %v11783_v32  ;;  %v6737_v15 = vsel %vm1024_vm1, %v11783_v32, 0 }
0x1b30   : > { %v11789_v57 = vand.u32 4294901760, %v6737_v15 }
0x1b31   : > { %v6586_v43 = vsel %vm1024_vm1, %v6585_v46, 0.0 }
0x1b32   : > { %6587 = vadd.xlane.f32.xlu0 %v6586_v43  ;;  %v11794_v19 = vsub.f32 %v6737_v15, %v11789_v57 }
0x1b34   : > { %v11797_v56 = vand.u32 4294901760, %v11794_v19 }
0x1b36   : > { %6643 = vadd.xlane.f32.xlu0 %v6642_v23  ;;  %v6856_v61 = vsub.f32 %v11794_v19, %v11797_v56 }
0x1b38   : > { %v6857_v22 = vand.u32 4294901760, %v6856_v61 }
0x1b3a   : > { %6858 = vmatmul.mubr.f32.gmra.mrb[62].mxu0 %v6857_v22  ;;  %7692 = vmatmul.mubr.f32.gmra.mrb[54].mxu1 %v6857_v22 }
0x1b3b   : > { %6863 = vmatprep.mubr.f32.mxu0 %v12186_v11  ;;  %7697 = vmatprep.mubr.f32.mxu1 %v12186_v11 }
0x1bb8   : > { %v6613_v45 = vpop.xlane.xlu1 %6612 }
0x1bb9   : > { %v6614_v20 = vmul.f32 %v6613_v45, %v11742_v30 }
0x1bbb   : > { %v6615_v28 = vsub.f32 %v6609_v49, %v6614_v20 }
0x1bbc   : > { %v6681_v14 = vpop.xlane.xlu1 %6680 }
0x1bbd   : > { %v6682_v33 = vmul.f32 %v6681_v14, %v11682_v12  ;;  %v6616_v5 = vmul.f32 %v6615_v28, %v11783_v32 }
0x1bbf   : > { %v6683_v40 = vsub.f32 %v11678_v52, %v6682_v33  ;;  %v6588_v34 = vpop.xlane.xlu0 %6587  ;;  %v6617_v26 = vsel %vm1024_vm1, %v6616_v5, 0.0 }
0x1bc0   : > { %v6589_v39 = vmul.f32 %v6588_v34, %v11783_v32  ;;  %6618 = vadd.xlane.f32.xlu1 %v6617_v26 }
0x1bc1   : > { %v6684_v59 = vmul.f32 %v6683_v40, %v11712_v27 }
0x1bc2   : > { %v6590_v0 = vsub.f32 %v6584_v18, %v6589_v39 }
0x1bc3   : > { %v6644_v8 = vpop.xlane.xlu0 %6643  ;;  %v6685_v21 = vsel %vm1024_vm1, %v6684_v59, 0.0 }
0x1bc4   : > { %v6645_v38 = vmul.f32 %v6644_v8, %v11712_v27  ;;  %6686 = vadd.xlane.f32.xlu1 %v6685_v21  ;;  %v6591_v12 = vmul.f32 %v6590_v0, %v6590_v0 }
0x1bc6   : > { %v6646_v50 = vsub.f32 %v6640_v25, %v6645_v38  ;;  %v6592_v55 = vsel %vm1024_vm1, %v6591_v12, 0.0 }
0x1bc7   : > { %6593 = vadd.xlane.f32.xlu0 %v6592_v55 }
0x1bc8   : > { %v6647_v52 = vmul.f32 %v6646_v50, %v11742_v30 }
0x1bca   : > { %v6648_v47 = vsel %vm1024_vm1, %v6647_v52, 0.0 }
0x1bcb   : > { %6649 = vadd.xlane.f32.xlu0 %v6648_v47 }
0x1c4d   : > { %v6619_v49 = vpop.xlane.xlu1 %6618 }
0x1c4e   : > { %v6620_v18 = vmul.f32 %v6619_v49, %v11783_v32 }
0x1c50   : > { %v6621_v15 = vsub.f32 %v6615_v28, %v6620_v18 }
0x1c51   : > { %v6687_v63 = vpop.xlane.xlu1 %6686 }
0x1c52   : > { %v6688_v25 = vmul.f32 %v6687_v63, %v11712_v27 }
0x1c54   : > { %v6594_v53 = vpop.xlane.xlu0 %6593  ;;  %v6689_v43 = vsub.f32 %v6683_v40, %v6688_v25 }
0x1c55   : > { %v6595_v10 = vadd.f32 1e-12, %v6594_v53 }
0x1c56   : > { %v6690_v20 = vmul.f32 %v6689_v43, %v11742_v30 }
0x1c57   : > { %10096 = vrsqrt.f32 %v6595_v10 }
0x1c58   : > { %v6650_v4 = vpop.xlane.xlu0 %6649  ;;  %v6691_v14 = vsel %vm1024_vm1, %v6690_v20, 0.0 }
0x1c59   : > { %v6651_v62 = vmul.f32 %v6650_v4, %v11742_v30 }
0x1c5b   : > { %v6652_v1 = vsub.f32 %v6646_v50, %v6651_v62 }
0x1c5d   : > { %v6653_v7 = vmul.f32 %v6652_v1, %v11783_v32 }
0x1c5f   : > { %v6654_v16 = vsel %vm1024_vm1, %v6653_v7, 0.0 }
0x1c60   : > { %6655 = vadd.xlane.f32.xlu1 %v6654_v16 }
0x1c61   : > { %v10097_v46 = vpop.eup %10096 }
0x1c62   : > { %v11821_v29 = vmul.f32 %v10097_v46, %v6590_v0 }
0x1c64   : > { %v6622_v23 = vmul.f32 %v6621_v15, %v11821_v29  ;;  %v6740_v61 = vsel %vm1024_vm1, %v11821_v29, 0 }
0x1c65   : > { %v11826_v22 = vand.u32 4294901760, %v6740_v61 }
0x1c66   : > { %v6623_v45 = vsel %vm1024_vm1, %v6622_v23, 0.0 }
0x1c67   : > { %6624 = vadd.xlane.f32.xlu0 %v6623_v45  ;;  %v11831_v27 = vsub.f32 %v6740_v61, %v11826_v22 }
0x1c69   : > { %v11834_v28 = vand.u32 4294901760, %v11831_v27 }
0x1c6b   : > { %6692 = vadd.xlane.f32.xlu0 %v6691_v14  ;;  %v6867_v33 = vsub.f32 %v11831_v27, %v11834_v28 }
0x1c6d   : > { %v6868_v5 = vand.u32 4294901760, %v6867_v33 }
0x1c6f   : > { %6869 = vmatmul.mubr.f32.gmra.mrb[64].mxu0 %v6868_v5  ;;  %7703 = vmatmul.mubr.f32.gmra.mrb[56].mxu1 %v6868_v5 }
0x1c70   : > { %6874 = vmatprep.mubr.f32.mxu0 %v12186_v11  ;;  %7708 = vmatprep.mubr.f32.mxu1 %v12186_v11 }
0x1ced   : > { %v6656_v40 = vpop.xlane.xlu1 %6655 }
0x1cee   : > { %v6657_v34 = vmul.f32 %v6656_v40, %v11783_v32 }
0x1cf0   : > { %v6658_v26 = vsub.f32 %v6652_v1, %v6657_v34 }
0x1cf2   : > { %v6659_v39 = vmul.f32 %v6658_v26, %v11821_v29 }
0x1cf4   : > { %v6625_v59 = vpop.xlane.xlu0 %6624  ;;  %v6660_v0 = vsel %vm1024_vm1, %v6659_v39, 0.0 }
0x1cf5   : > { %v6626_v8 = vmul.f32 %v6625_v59, %v11821_v29  ;;  %6661 = vadd.xlane.f32.xlu0 %v6660_v0 }
0x1cf7   : > { %v6627_v21 = vsub.f32 %v6621_v15, %v6626_v8 }
0x1cf8   : > { %v6693_v38 = vpop.xlane.xlu0 %6692 }
0x1cf9   : > { %v6694_v12 = vmul.f32 %v6693_v38, %v11742_v30  ;;  %v6628_v50 = vmul.f32 %v6627_v21, %v6627_v21 }
0x1cfb   : > { %v6695_v55 = vsub.f32 %v6689_v43, %v6694_v12  ;;  %v6629_v52 = vsel %vm1024_vm1, %v6628_v50, 0.0 }
0x1cfc   : > { %6630 = vadd.xlane.f32.xlu1 %v6629_v52 }
0x1cfd   : > { %v6696_v47 = vmul.f32 %v6695_v55, %v11783_v32 }
0x1cff   : > { %v6697_v53 = vsel %vm1024_vm1, %v6696_v47, 0.0 }
0x1d00   : > { %6698 = vadd.xlane.f32.xlu1 %v6697_v53 }
0x1d82   : > { %v6662_v63 = vpop.xlane.xlu0 %6661 }
0x1d83   : > { %v6663_v7 = vmul.f32 %v6662_v63, %v11821_v29 }
0x1d85   : > { %v6664_v16 = vsub.f32 %v6658_v26, %v6663_v7 }
0x1d89   : > { %v6631_v49 = vpop.xlane.xlu1 %6630 }
0x1d8a   : > { %v6632_v10 = vadd.f32 1e-12, %v6631_v49 }
0x1d8c   : > { %10098 = vrsqrt.f32 %v6632_v10 }
0x1d8d   : > { %v6699_v4 = vpop.xlane.xlu1 %6698 }
0x1d8e   : > { %v6700_v62 = vmul.f32 %v6699_v4, %v11783_v32 }
0x1d90   : > { %v6701_v1 = vsub.f32 %v6695_v55, %v6700_v62 }
0x1d92   : > { %v6702_v30 = vmul.f32 %v6701_v1, %v11821_v29 }
0x1d94   : > { %v6703_v18 = vsel %vm1024_vm1, %v6702_v30, 0.0 }
0x1d95   : > { %6704 = vadd.xlane.f32.xlu1 %v6703_v18 }
0x1d96   : > { %v10099_v25 = vpop.eup %10098 }
0x1d97   : > { %v6634_v46 = vmul.f32 %v10099_v25, %v6627_v21 }
0x1d99   : > { %v6665_v15 = vmul.f32 %v6664_v16, %v6634_v46  ;;  %v6743_v43 = vsel %vm1024_vm1, %v6634_v46, 0 }
0x1d9a   : > { %v11854_v23 = vand.u32 4294901760, %v6743_v43 }
0x1d9b   : > { %v6666_v61 = vsel %vm1024_vm1, %v6665_v15, 0.0 }
0x1d9c   : > { %6667 = vadd.xlane.f32.xlu0 %v6666_v61  ;;  %v11858_v32 = vsub.f32 %v6743_v43, %v11854_v23 }
0x1d9e   : > { %v11861_v45 = vand.u32 4294901760, %v11858_v32 }
0x1da0   : > { %v6878_v20 = vsub.f32 %v11858_v32, %v11861_v45 }
0x1da2   : > { %v6879_v14 = vand.u32 4294901760, %v6878_v20 }
0x1da4   : > { %6880 = vmatmul.mubr.f32.gmra.mrb[66].mxu0 %v6879_v14  ;;  %7714 = vmatmul.mubr.f32.gmra.mrb[58].mxu1 %v6879_v14 }
0x1da5   : > { %6885 = vmatprep.mubr.f32.mxu0 %v12186_v11  ;;  %7719 = vmatprep.mubr.f32.mxu1 %v12186_v11 }
0x1e22   : > { %v6705_v33 = vpop.xlane.xlu1 %6704 }
0x1e23   : > { %v6706_v5 = vmul.f32 %v6705_v33, %v11821_v29 }
0x1e25   : > { %v6707_v40 = vsub.f32 %v6701_v1, %v6706_v5 }
0x1e27   : > { %v6708_v34 = vmul.f32 %v6707_v40, %v6634_v46 }
0x1e29   : > { %v6668_v26 = vpop.xlane.xlu0 %6667  ;;  %v6709_v39 = vsel %vm1024_vm1, %v6708_v34, 0.0 }
0x1e2a   : > { %v6669_v59 = vmul.f32 %v6668_v26, %v6634_v46  ;;  %6710 = vadd.xlane.f32.xlu1 %v6709_v39 }
0x1e2c   : > { %v6670_v0 = vsub.f32 %v6664_v16, %v6669_v59 }
0x1e2e   : > { %v6671_v8 = vmul.f32 %v6670_v0, %v6670_v0 }
0x1e30   : > { %v6672_v21 = vsel %vm1024_vm1, %v6671_v8, 0.0 }
0x1e31   : > { %6673 = vadd.xlane.f32.xlu0 %v6672_v21 }
0x1eb7   : > { %v6711_v50 = vpop.xlane.xlu1 %6710 }
0x1eb8   : > { %v6712_v55 = vmul.f32 %v6711_v50, %v6634_v46 }
0x1eba   : > { %v6713_v47 = vsub.f32 %v6707_v40, %v6712_v55 }
0x1ebe   : > { %v6674_v38 = vpop.xlane.xlu0 %6673 }
0x1ebf   : > { %v6675_v12 = vadd.f32 1e-12, %v6674_v38 }
0x1ec1   : > { %10100 = vrsqrt.f32 %v6675_v12 }
0x1ecb   : > { %v10101_v52 = vpop.eup %10100 }
0x1ecc   : > { %v6677_v29 = vmul.f32 %v10101_v52, %v6670_v0 }
0x1ece   : > { %v6714_v53 = vmul.f32 %v6713_v47, %v6677_v29  ;;  %v6746_v49 = vsel %vm1024_vm1, %v6677_v29, 0 }
0x1ecf   : > { %v11871_v10 = vand.u32 4294901760, %v6746_v49 }
0x1ed0   : > { %v6715_v4 = vsel %vm1024_vm1, %v6714_v53, 0.0 }
0x1ed1   : > { %6716 = vadd.xlane.f32.xlu0 %v6715_v4  ;;  %v11875_v62 = vsub.f32 %v6746_v49, %v11871_v10 }
0x1ed3   : > { %v11878_v63 = vand.u32 4294901760, %v11875_v62 }
0x1ed5   : > { %v6889_v1 = vsub.f32 %v11875_v62, %v11878_v63 }
0x1ed7   : > { %v6890_v30 = vand.u32 4294901760, %v6889_v1 }
0x1ed9   : > { %6891 = vmatmul.mubr.f32.gmra.mrb[68].mxu0 %v6890_v30  ;;  %7725 = vmatmul.mubr.f32.gmra.mrb[60].mxu1 %v6890_v30 }
0x1eda   : > { %6896 = vmatprep.mubr.f32.mxu0 %v12186_v11  ;;  %7730 = vmatprep.mubr.f32.mxu1 %v12186_v11 }
0x1f5e   : > { %v6717_v7 = vpop.xlane.xlu0 %6716 }
0x1f5f   : > { %v6718_v18 = vmul.f32 %v6717_v7, %v6677_v29 }
0x1f61   : > { %v6719_v25 = vsub.f32 %v6713_v47, %v6718_v18 }
0x1f63   : > { %v6720_v16 = vmul.f32 %v6719_v25, %v6719_v25 }
0x1f65   : > { %v6721_v46 = vsel %vm1024_vm1, %v6720_v16, 0.0 }
0x1f66   : > { %6722 = vadd.xlane.f32.xlu1 %v6721_v46 }
0x1ff3   : > { %v6723_v15 = vpop.xlane.xlu1 %6722 }
0x1ff4   : > { %v6724_v43 = vadd.f32 1e-12, %v6723_v15 }
0x1ff6   : > { %10102 = vrsqrt.f32 %v6724_v43 }
0x2000   : > { %v10103_v61 = vpop.eup %10102 }
0x2001   : > { %v6726_v20 = vmul.f32 %v10103_v61, %v6719_v25 }
0x2003   : > { %v6749_v14 = vsel %vm1024_vm1, %v6726_v20, 0 }
0x2004   : > { %v11886_v33 = vand.u32 4294901760, %v6749_v14 }
0x2006   : > { %v11889_v5 = vsub.f32 %v6749_v14, %v11886_v33 }
0x2008   : > { %v11892_v40 = vand.u32 4294901760, %v11889_v5 }
0x200a   : > { %v6900_v34 = vsub.f32 %v11889_v5, %v11892_v40 }
0x200c   : > { %v6901_v26 = vand.u32 4294901760, %v6900_v34  ;;  %v8474_v34 = vld [vmem:[%s11163_s15] sm:$0xff] (%p10179_p4) }
0x200d   : > { %8475 = vst [vmem:[%s8461_s8] sm:$0xff] (%p10179_p4), %v8474_v34 }
0x200e   : > { %6902 = vmatmul.mubr.f32.gmra.mrb[70].mxu0 %v6901_v26  ;;  %7736 = vmatmul.mubr.f32.gmra.mrb[62].mxu1 %v6901_v26  ;;  %v8476_v26 = vld [vmem:[%s11163_s15 + $0x8] sm:$0xff] (%p10179_p4) }
0x200f   : > { %6992 = vmatprep.mubr.f32.mxu0 %v12186_v11  ;;  %7826 = vmatprep.mubr.f32.mxu1 %v12186_v11  ;;  %8477 = vst [vmem:[%s8461_s8 + $0x8] sm:$0xff] (%p10179_p4), %v8476_v26 }
0x2012   : > { %6994 = vmatmul.mubr.f32.vlgmr.msra.gmra.mrb[56].mxu0 %v11687_v31  ;;  %7828 = vmatmul.mubr.f32.vlgmr.msra.gmra.mrb[48].mxu1 %v11687_v31 }
0x2013   : > { %9391 = vmatpush1.bf16.msra.mxu0 %v12244_v24  ;;  %9415 = vmatpush1.bf16.msra.mxu1 %v10909_v48 }
0x2014   : > { %6999 = vmatprep.mubr.f32.mxu0 %v12186_v11  ;;  %7833 = vmatprep.mubr.f32.mxu1 %v12186_v11 }
0x2015   : > { %9393 = vmatprep.subr.bf16.mxu0 %v10453_v58  ;;  %9417 = vmatprep.subr.bf16.mxu1 %v10757_v51 }
0x2016   : > { %7001 = vmatmul.mubr.f32.gmra.mrb[58].mxu0 %v11718_v2  ;;  %7835 = vmatmul.mubr.f32.gmra.mrb[50].mxu1 %v11718_v2 }
0x2017   : > { %7006 = vmatprep.mubr.f32.mxu0 %v12186_v11  ;;  %7840 = vmatprep.mubr.f32.mxu1 %v12186_v11 }
0x201a   : > { %7008 = vmatmul.mubr.f32.gmra.mrb[60].mxu0 %v11747_v35  ;;  %7842 = vmatmul.mubr.f32.gmra.mrb[52].mxu1 %v11747_v35 }
0x201b   : > { %7013 = vmatprep.mubr.f32.mxu0 %v12186_v11  ;;  %7847 = vmatprep.mubr.f32.mxu1 %v12186_v11 }
0x201e   : > { %7015 = vmatmul.mubr.f32.gmra.mrb[62].mxu0 %v11789_v57  ;;  %7849 = vmatmul.mubr.f32.gmra.mrb[54].mxu1 %v11789_v57 }
0x201f   : > { %7020 = vmatprep.mubr.f32.mxu0 %v12186_v11  ;;  %7854 = vmatprep.mubr.f32.mxu1 %v12186_v11 }
0x2022   : > { %7022 = vmatmul.mubr.f32.gmra.mrb[64].mxu0 %v11826_v22  ;;  %7856 = vmatmul.mubr.f32.gmra.mrb[56].mxu1 %v11826_v22 }
0x2023   : > { %7027 = vmatprep.mubr.f32.mxu0 %v12186_v11  ;;  %7861 = vmatprep.mubr.f32.mxu1 %v12186_v11 }
0x2026   : > { %7029 = vmatmul.mubr.f32.gmra.mrb[66].mxu0 %v11854_v23  ;;  %7863 = vmatmul.mubr.f32.gmra.mrb[58].mxu1 %v11854_v23 }
0x2027   : > { %7034 = vmatprep.mubr.f32.mxu0 %v12186_v11  ;;  %7868 = vmatprep.mubr.f32.mxu1 %v12186_v11 }
0x202a   : > { %7036 = vmatmul.mubr.f32.gmra.mrb[68].mxu0 %v11871_v10  ;;  %7870 = vmatmul.mubr.f32.gmra.mrb[60].mxu1 %v11871_v10 }
0x202b   : > { %7041 = vmatprep.mubr.f32.mxu0 %v12186_v11  ;;  %7875 = vmatprep.mubr.f32.mxu1 %v12186_v11 }
0x202e   : > { %7043 = vmatmul.mubr.f32.gmra.mrb[70].mxu0 %v11886_v33  ;;  %7877 = vmatmul.mubr.f32.gmra.mrb[62].mxu1 %v11886_v33 }
0x202f   : > { %7121 = vmatprep.mubr.f32.mxu0 %v12186_v11  ;;  %7955 = vmatprep.mubr.f32.mxu1 %v12186_v11 }
0x2032   : > { %7124 = vmatmul.mubr.f32.vlgmr.msra.gmra.mrb[56].mxu0 %v11692_v44  ;;  %7958 = vmatmul.mubr.f32.vlgmr.msra.gmra.mrb[48].mxu1 %v11692_v44 }
0x2033   : > { %9395 = vmatpush1.bf16.msra.mxu0 %v10459_v60  ;;  %9419 = vmatpush1.bf16.msra.mxu1 %v10821_v17 }
0x2034   : > { %7129 = vmatprep.mubr.f32.mxu0 %v12186_v11  ;;  %7963 = vmatprep.mubr.f32.mxu1 %v12186_v11 }
0x2035   : > { %9397 = vmatprep.subr.bf16.mxu0 %v10803_v54  ;;  %9421 = vmatprep.subr.bf16.mxu1 %v10953_v9 }
0x2036   : > { %7132 = vmatmul.mubr.f32.gmra.mrb[58].mxu0 %v11723_v41  ;;  %7966 = vmatmul.mubr.f32.gmra.mrb[50].mxu1 %v11723_v41 }
0x2037   : > { %7137 = vmatprep.mubr.f32.mxu0 %v12186_v11  ;;  %7971 = vmatprep.mubr.f32.mxu1 %v12186_v11 }
0x203a   : > { %7140 = vmatmul.mubr.f32.gmra.mrb[60].mxu0 %v11753_v42  ;;  %7974 = vmatmul.mubr.f32.gmra.mrb[52].mxu1 %v11753_v42 }
0x203b   : > { %7145 = vmatprep.mubr.f32.mxu0 %v12186_v11  ;;  %7979 = vmatprep.mubr.f32.mxu1 %v12186_v11 }
0x203e   : > { %7148 = vmatmul.mubr.f32.gmra.mrb[62].mxu0 %v11794_v19  ;;  %7982 = vmatmul.mubr.f32.gmra.mrb[54].mxu1 %v11794_v19 }
0x203f   : > { %7153 = vmatprep.mubr.f32.mxu0 %v12186_v11  ;;  %7987 = vmatprep.mubr.f32.mxu1 %v12186_v11 }
0x2042   : > { %7156 = vmatmul.mubr.f32.gmra.mrb[64].mxu0 %v11831_v27  ;;  %7990 = vmatmul.mubr.f32.gmra.mrb[56].mxu1 %v11831_v27 }
0x2043   : > { %7161 = vmatprep.mubr.f32.mxu0 %v12186_v11  ;;  %7995 = vmatprep.mubr.f32.mxu1 %v12186_v11 }
0x2046   : > { %7164 = vmatmul.mubr.f32.gmra.mrb[66].mxu0 %v11858_v32  ;;  %7998 = vmatmul.mubr.f32.gmra.mrb[58].mxu1 %v11858_v32 }
0x2047   : > { %7169 = vmatprep.mubr.f32.mxu0 %v12186_v11  ;;  %8003 = vmatprep.mubr.f32.mxu1 %v12186_v11 }
0x204a   : > { %7172 = vmatmul.mubr.f32.gmra.mrb[68].mxu0 %v11875_v62  ;;  %8006 = vmatmul.mubr.f32.gmra.mrb[60].mxu1 %v11875_v62 }
0x204b   : > { %7177 = vmatprep.mubr.f32.mxu0 %v12186_v11  ;;  %8011 = vmatprep.mubr.f32.mxu1 %v12186_v11 }
0x204e   : > { %7180 = vmatmul.mubr.f32.gmra.mrb[70].mxu0 %v11889_v5  ;;  %8014 = vmatmul.mubr.f32.gmra.mrb[62].mxu1 %v11889_v5 }
0x204f   : > { %7254 = vmatprep.mubr.f32.mxu0 %v12186_v11  ;;  %8088 = vmatprep.mubr.f32.mxu1 %v12186_v11 }
0x2052   : > { %7258 = vmatmul.mubr.f32.vlgmr.msra.gmra.mrb[56].mxu0 %v11695_v37  ;;  %8092 = vmatmul.mubr.f32.vlgmr.msra.gmra.mrb[48].mxu1 %v11695_v37 }
0x2053   : > { %9399 = vmatpush1.bf16.msra.mxu0 %v10865_v6  ;;  %9423 = vmatpush1.bf16.msra.mxu1 %v11016_v13 }
0x2054   : > { %7263 = vmatprep.mubr.f32.mxu0 %v12186_v11  ;;  %8097 = vmatprep.mubr.f32.mxu1 %v12186_v11 }
0x2055   : > { %9401 = vmatprep.subr.bf16.mxu0 %v10453_v58  ;;  %9425 = vmatprep.subr.bf16.mxu1 %v10757_v51 }
0x2056   : > { %7267 = vmatmul.mubr.f32.gmra.mrb[58].mxu0 %v11726_v3  ;;  %8101 = vmatmul.mubr.f32.gmra.mrb[50].mxu1 %v11726_v3 }
0x2057   : > { %7272 = vmatprep.mubr.f32.mxu0 %v12186_v11  ;;  %8106 = vmatprep.mubr.f32.mxu1 %v12186_v11 }
0x205a   : > { %7276 = vmatmul.mubr.f32.gmra.mrb[60].mxu0 %v11756_v36  ;;  %8110 = vmatmul.mubr.f32.gmra.mrb[52].mxu1 %v11756_v36 }
0x205b   : > { %7281 = vmatprep.mubr.f32.mxu0 %v12186_v11  ;;  %8115 = vmatprep.mubr.f32.mxu1 %v12186_v11 }
0x205e   : > { %7285 = vmatmul.mubr.f32.gmra.mrb[62].mxu0 %v11797_v56  ;;  %8119 = vmatmul.mubr.f32.gmra.mrb[54].mxu1 %v11797_v56 }
0x205f   : > { %7290 = vmatprep.mubr.f32.mxu0 %v12186_v11  ;;  %8124 = vmatprep.mubr.f32.mxu1 %v12186_v11 }
0x2062   : > { %7294 = vmatmul.mubr.f32.gmra.mrb[64].mxu0 %v11834_v28  ;;  %8128 = vmatmul.mubr.f32.gmra.mrb[56].mxu1 %v11834_v28 }
0x2063   : > { %7299 = vmatprep.mubr.f32.mxu0 %v12186_v11  ;;  %8133 = vmatprep.mubr.f32.mxu1 %v12186_v11 }
0x2066   : > { %7303 = vmatmul.mubr.f32.gmra.mrb[66].mxu0 %v11861_v45  ;;  %8137 = vmatmul.mubr.f32.gmra.mrb[58].mxu1 %v11861_v45 }
0x2067   : > { %7308 = vmatprep.mubr.f32.mxu0 %v12186_v11  ;;  %8142 = vmatprep.mubr.f32.mxu1 %v12186_v11 }
0x206a   : > { %7312 = vmatmul.mubr.f32.gmra.mrb[68].mxu0 %v11878_v63  ;;  %8146 = vmatmul.mubr.f32.gmra.mrb[60].mxu1 %v11878_v63 }
0x206b   : > { %7317 = vmatprep.mubr.f32.mxu0 %v12186_v11  ;;  %8151 = vmatprep.mubr.f32.mxu1 %v12186_v11 }
0x206e   : > { %7321 = vmatmul.mubr.f32.gmra.mrb[70].mxu0 %v11892_v40  ;;  %8155 = vmatmul.mubr.f32.gmra.mrb[62].mxu1 %v11892_v40 }
0x206f   : > { %7403 = vmatprep.mubr.f32.mxu0 %v12186_v11  ;;  %8237 = vmatprep.mubr.f32.mxu1 %v12186_v11 }
0x2072   : > { %7405 = vmatmul.mubr.f32.vlgmr.msra.gmra.mrb[56].mxu0 %v11687_v31  ;;  %8239 = vmatmul.mubr.f32.vlgmr.msra.gmra.mrb[48].mxu1 %v11687_v31 }
0x2073   : > { %9403 = vmatpush1.bf16.msra.mxu0 %v10459_v60  ;;  %9427 = vmatpush1.bf16.msra.mxu1 %v10821_v17 }
0x2074   : > { %7410 = vmatprep.mubr.f32.mxu0 %v12186_v11  ;;  %8244 = vmatprep.mubr.f32.mxu1 %v12186_v11 }
0x2076   : > { %7412 = vmatmul.mubr.f32.gmra.mrb[58].mxu0 %v11718_v2  ;;  %8246 = vmatmul.mubr.f32.gmra.mrb[50].mxu1 %v11718_v2 }
0x2077   : > { %7417 = vmatprep.mubr.f32.mxu0 %v12186_v11  ;;  %8251 = vmatprep.mubr.f32.mxu1 %v12186_v11 }
0x207a   : > { %7419 = vmatmul.mubr.f32.gmra.mrb[60].mxu0 %v11747_v35  ;;  %8253 = vmatmul.mubr.f32.gmra.mrb[52].mxu1 %v11747_v35 }
0x207b   : > { %7424 = vmatprep.mubr.f32.mxu0 %v12186_v11  ;;  %8258 = vmatprep.mubr.f32.mxu1 %v12186_v11 }
0x207e   : > { %7426 = vmatmul.mubr.f32.gmra.mrb[62].mxu0 %v11789_v57  ;;  %8260 = vmatmul.mubr.f32.gmra.mrb[54].mxu1 %v11789_v57 }
0x207f   : > { %7431 = vmatprep.mubr.f32.mxu0 %v12186_v11  ;;  %8265 = vmatprep.mubr.f32.mxu1 %v12186_v11 }
0x2082   : > { %7433 = vmatmul.mubr.f32.gmra.mrb[64].mxu0 %v11826_v22  ;;  %8267 = vmatmul.mubr.f32.gmra.mrb[56].mxu1 %v11826_v22 }
0x2083   : > { %7438 = vmatprep.mubr.f32.mxu0 %v12186_v11  ;;  %8272 = vmatprep.mubr.f32.mxu1 %v12186_v11 }
0x2086   : > { %7440 = vmatmul.mubr.f32.gmra.mrb[66].mxu0 %v11854_v23  ;;  %8274 = vmatmul.mubr.f32.gmra.mrb[58].mxu1 %v11854_v23 }
0x2087   : > { %7445 = vmatprep.mubr.f32.mxu0 %v12186_v11  ;;  %8279 = vmatprep.mubr.f32.mxu1 %v12186_v11 }
0x208a   : > { %7447 = vmatmul.mubr.f32.gmra.mrb[68].mxu0 %v11871_v10  ;;  %8281 = vmatmul.mubr.f32.gmra.mrb[60].mxu1 %v11871_v10 }
0x208b   : > { %7452 = vmatprep.mubr.f32.mxu0 %v12186_v11  ;;  %8286 = vmatprep.mubr.f32.mxu1 %v12186_v11 }
0x208e   : > { %7454 = vmatmul.mubr.f32.gmra.mrb[70].mxu0 %v11886_v33  ;;  %8288 = vmatmul.mubr.f32.gmra.mrb[62].mxu1 %v11886_v33 }
0x208f   : > { %7528 = vmatprep.mubr.f32.mxu0 %v12186_v11  ;;  %8362 = vmatprep.mubr.f32.mxu1 %v12186_v11 }
0x2092   : > { %7530 = vmatmul.mubr.f32.vlgmr.msra.gmra.mrb[56].mxu0 %v11687_v31  ;;  %8364 = vmatmul.mubr.f32.vlgmr.msra.gmra.mrb[48].mxu1 %v11687_v31 }
0x2093   : > { %7535 = vmatprep.mubr.f32.mxu0 %v12186_v11  ;;  %8369 = vmatprep.mubr.f32.mxu1 %v12186_v11 }
0x2096   : > { %7537 = vmatmul.mubr.f32.gmra.mrb[58].mxu0 %v11718_v2  ;;  %8371 = vmatmul.mubr.f32.gmra.mrb[50].mxu1 %v11718_v2 }
0x2097   : > { %7542 = vmatprep.mubr.f32.mxu0 %v12186_v11  ;;  %8376 = vmatprep.mubr.f32.mxu1 %v12186_v11 }
0x209a   : > { %7544 = vmatmul.mubr.f32.gmra.mrb[60].mxu0 %v11747_v35  ;;  %8378 = vmatmul.mubr.f32.gmra.mrb[52].mxu1 %v11747_v35 }
0x209b   : > { %7549 = vmatprep.mubr.f32.mxu0 %v12186_v11  ;;  %8383 = vmatprep.mubr.f32.mxu1 %v12186_v11 }
0x209e   : > { %7551 = vmatmul.mubr.f32.gmra.mrb[62].mxu0 %v11789_v57  ;;  %8385 = vmatmul.mubr.f32.gmra.mrb[54].mxu1 %v11789_v57 }
0x209f   : > { %7556 = vmatprep.mubr.f32.mxu0 %v12186_v11  ;;  %8390 = vmatprep.mubr.f32.mxu1 %v12186_v11 }
0x20a2   : > { %7558 = vmatmul.mubr.f32.gmra.mrb[64].mxu0 %v11826_v22  ;;  %8392 = vmatmul.mubr.f32.gmra.mrb[56].mxu1 %v11826_v22 }
0x20a3   : > { %7563 = vmatprep.mubr.f32.mxu0 %v12186_v11  ;;  %8397 = vmatprep.mubr.f32.mxu1 %v12186_v11 }
0x20a6   : > { %7565 = vmatmul.mubr.f32.gmra.mrb[66].mxu0 %v11854_v23  ;;  %8399 = vmatmul.mubr.f32.gmra.mrb[58].mxu1 %v11854_v23 }
0x20a7   : > { %7570 = vmatprep.mubr.f32.mxu0 %v12186_v11  ;;  %8404 = vmatprep.mubr.f32.mxu1 %v12186_v11 }
0x20aa   : > { %7572 = vmatmul.mubr.f32.gmra.mrb[68].mxu0 %v11871_v10  ;;  %8406 = vmatmul.mubr.f32.gmra.mrb[60].mxu1 %v11871_v10 }
0x20ab   : > { %7577 = vmatprep.mubr.f32.mxu0 %v12186_v11  ;;  %8411 = vmatprep.mubr.f32.mxu1 %v12186_v11 }
0x20ae   : > { %7579 = vmatmul.mubr.f32.gmra.mrb[70].mxu0 %v11886_v33  ;;  %8413 = vmatmul.mubr.f32.gmra.mrb[62].mxu1 %v11886_v33 }
0x2165   : > { %v7531_v58 = vpop.f32.mrb[56].mxu0  ;;  %v8365_v60 = vpop.f32.mrb[48].mxu1 }
0x2166   : > { %v8419_v51 = vmul.f32 %v8365_v60, %v7531_v58  ;;  %v7533_v54 = vpop.f32.mrb[57].mxu0  ;;  %v8367_v17 = vpop.f32.mrb[49].mxu1  ;;  %v8478_v58 = vld [vmem:[%s11163_s15 + $0x10] sm:$0xff] (%p10179_p4)  ;;  %v8480_v60 = vld [vmem:[%s11163_s15 + $0x18] sm:$0xff] (%p10179_p4) }
0x2167   : > { %v8420_v6 = vmul.f32 %v8367_v17, %v7533_v54  ;;  %8479 = vst [vmem:[%s8461_s8 + $0x20] sm:$0xff] (%p10179_p4), %v8478_v58  ;;  %8481 = vst [vmem:[%s8461_s8 + $0x28] sm:$0xff] (%p10179_p4), %v8480_v60 }
0x2169   : > { %v7538_v48 = vpop.f32.mrb[58].mxu0  ;;  %v8372_v9 = vpop.f32.mrb[50].mxu1 }
0x216a   : > { %v8421_v13 = vmul.f32 %v8372_v9, %v7538_v48  ;;  %v7540_v24 = vpop.f32.mrb[59].mxu0  ;;  %v8374_v31 = vpop.f32.mrb[51].mxu1 }
0x216b   : > { %v8422_v44 = vmul.f32 %v8374_v31, %v7540_v24 }
0x216c   : > { %v8435_v37 = vadd.f32 %v8421_v13, %v8419_v51 }
0x216d   : > { %v8436_v2 = vadd.f32 %v8422_v44, %v8420_v6  ;;  %v7545_v41 = vpop.f32.mrb[60].mxu0  ;;  %v8379_v11 = vpop.f32.mrb[52].mxu1 }
0x216e   : > { %v8423_v3 = vmul.f32 %v8379_v11, %v7545_v41  ;;  %v7547_v35 = vpop.f32.mrb[61].mxu0  ;;  %v8381_v42 = vpop.f32.mrb[53].mxu1 }
0x216f   : > { %v8424_v36 = vmul.f32 %v8381_v42, %v7547_v35 }
0x2170   : > { %v8437_v57 = vadd.f32 %v8435_v37, %v8423_v3 }
0x2171   : > { %v8438_v19 = vadd.f32 %v8436_v2, %v8424_v36  ;;  %v7552_v56 = vpop.f32.mrb[62].mxu0  ;;  %v8386_v22 = vpop.f32.mrb[54].mxu1 }
0x2172   : > { %v8425_v27 = vmul.f32 %v8386_v22, %v7552_v56  ;;  %v7554_v28 = vpop.f32.mrb[63].mxu0  ;;  %v8388_v23 = vpop.f32.mrb[55].mxu1 }
0x2173   : > { %v8426_v32 = vmul.f32 %v8388_v23, %v7554_v28 }
0x2174   : > { %v8439_v45 = vadd.f32 %v8437_v57, %v8425_v27 }
0x2175   : > { %v8440_v39 = vadd.f32 %v8438_v19, %v8426_v32  ;;  %v7559_v59 = vpop.f32.mrb[64].mxu0  ;;  %v8393_v0 = vpop.f32.mrb[56].mxu1 }
0x2176   : > { %v8427_v8 = vmul.f32 %v8393_v0, %v7559_v59  ;;  %v7561_v21 = vpop.f32.mrb[65].mxu0  ;;  %v8395_v38 = vpop.f32.mrb[57].mxu1 }
0x2177   : > { %v8428_v12 = vmul.f32 %v8395_v38, %v7561_v21 }
0x2178   : > { %v8441_v50 = vadd.f32 %v8439_v45, %v8427_v8 }
0x2179   : > { %v8442_v55 = vadd.f32 %v8440_v39, %v8428_v12  ;;  %v7566_v52 = vpop.f32.mrb[66].mxu0  ;;  %v8400_v47 = vpop.f32.mrb[58].mxu1 }
0x217a   : > { %v8429_v29 = vmul.f32 %v8400_v47, %v7566_v52  ;;  %v7568_v53 = vpop.f32.mrb[67].mxu0  ;;  %v8402_v49 = vpop.f32.mrb[59].mxu1 }
0x217b   : > { %v8430_v10 = vmul.f32 %v8402_v49, %v7568_v53 }
0x217c   : > { %v8443_v4 = vadd.f32 %v8441_v50, %v8429_v29 }
0x217d   : > { %v8444_v62 = vadd.f32 %v8442_v55, %v8430_v10  ;;  %v7573_v63 = vpop.f32.mrb[68].mxu0  ;;  %v8407_v1 = vpop.f32.mrb[60].mxu1 }
0x217e   : > { %v8431_v30 = vmul.f32 %v8407_v1, %v7573_v63  ;;  %v7575_v7 = vpop.f32.mrb[69].mxu0  ;;  %v8409_v18 = vpop.f32.mrb[61].mxu1 }
0x217f   : > { %v8432_v25 = vmul.f32 %v8409_v18, %v7575_v7 }
0x2180   : > { %v8445_v16 = vadd.f32 %v8443_v4, %v8431_v30 }
0x2181   : > { %v8446_v46 = vadd.f32 %v8444_v62, %v8432_v25  ;;  %v7580_v15 = vpop.f32.mrb[70].mxu0  ;;  %v8414_v43 = vpop.f32.mrb[62].mxu1  ;;  %8458 = sbr.rel (!%p10179_p4) target bundleno = 8592 (0x2190), region = 40 }
0x2182   : > { %v8433_v61 = vmul.f32 %v8414_v43, %v7580_v15  ;;  %v7582_v20 = vpop.f32.mrb[71].mxu0  ;;  %v8416_v14 = vpop.f32.mrb[63].mxu1 }
0x2183   : > { %v8434_v33 = vmul.f32 %v8416_v14, %v7582_v20 }
0x2184   : > { %v8447_v5 = vadd.f32 %v8445_v16, %v8433_v61 }
0x2185   : > { %v8448_v40 = vadd.f32 %v8446_v46, %v8434_v33 }
0x2186   : > { %8556 = vst [vmem:[%s11163_s15 + $0x20] sm:$0xff] %v8447_v5 }
0x2187   : > { %8557 = vst [vmem:[%s11163_s15 + $0x28] sm:$0xff] %v8448_v40 }
0x218d   : > { %v8482_v51 = vld [vmem:[%s11163_s15 + $0x20] sm:$0xff] }
0x218e   : > { %v8484_v54 = vld [vmem:[%s11163_s15 + $0x28] sm:$0xff]  ;;  %8483 = vst [vmem:[%s8461_s8 + $0x40] sm:$0xff] %v8482_v51 }
0x218f   : > { %8485 = vst [vmem:[%s8461_s8 + $0x48] sm:$0xff] %v8484_v54 }
0x2190 PF: > { %p11_p8 = scmp.ge.s32.totalorder %s10169_s19, 4   ;;  %s12267_s15 = smov %s10122_s16 }
0x2191   : > { %s12268_s16 = smov %s10177_s22  ;;  %s12269_s17 = smov %s10169_s19 }
0x2192   :  { %13 = sbr.rel (!%p11_p8) target bundleno = 2 (0x2), region = 93 }

</bundles_post_ra>
